<compile_context>
chip_gen: v5e
topology: v5e:2x2
jax: 0.10.0
libtpu: 0.0.40
codegen_flags: <defaults>
</compile_context>

<pallas_src>
import jax
import jax.numpy as jnp
from jax.experimental import pallas as pl
from jax.experimental.pallas import tpu as pltpu

EPS = 1e-5
_LANE = 128
_VMEM_LIMIT = 32 * 1024 * 1024  # scoped-VMEM budget, safe on v5e/v6e/v7x
_TAPS = tuple((kh, kw) for kh in range(3) for kw in range(3))


def _round_up(v, m):
    return (v + m - 1) // m * m


def _pick_tile_m(m, cap=2048):
    # Largest tile from the candidate list; prefer an even number of tiles so
    # the "parallel" grid axis splits evenly across v7x's two TensorCores.
    cands = [t for t in (2048, 1024, 512, 256, 128, 64, 32, 16, 8) if t <= cap]
    for t in cands:
        if m % t == 0 and (m // t) % 2 == 0:
            return t
    for t in cands:
        if m % t == 0:
            return t
    return cands[-1]


def _pad_rows(a, rows):
    if a.shape[0] == rows:
        return a
    return jnp.pad(a, ((0, rows - a.shape[0]), (0, 0)))


# ----------------------------- Pallas kernels ------------------------------

def _make_conv1_kernel(ho, wo, hpp, ci, co, stride, with_proj):
    """3x3 conv (stride folded away by phase decomposition) with per-channel
    sum / sum-of-squares side outputs; optionally fuses the 1x1 projection
    shortcut conv (+ its stats) on the same resident activation block."""
    m_img = ho * wo

    def kernel(*refs):
        if with_proj:
            (xph_ref, w_ref, wsc_ref,
             y_ref, s_ref, q_ref, ysc_ref, ssc_ref, qsc_ref) = refs
        else:
            xph_ref, w_ref, y_ref, s_ref, q_ref = refs

        acc = jnp.zeros((m_img, co), jnp.float32)
        for t, (kh, kw) in enumerate(_TAPS):
            p = (kh % stride) * stride + (kw % stride)   # phase sub-image
            r0 = p * hpp + kh // stride                  # row offset in packed phases
            c0 = kw // stride
            win = xph_ref[0, r0:r0 + ho, c0:c0 + wo, :]
            acc = acc + jnp.dot(win.reshape(m_img, ci),
                                w_ref[t * ci:(t + 1) * ci, :],
                                preferred_element_type=jnp.float32)
        # bf16 pre-BN result; stats from the f32 accumulator before the cast.
        y_ref[...] = acc.reshape(1, ho, wo, co).astype(y_ref.dtype)
        s_ref[...] = jnp.sum(acc, axis=0).reshape(1, 1, co)
        q_ref[...] = jnp.sum(acc * acc, axis=0).reshape(1, 1, co)

        if with_proj:
            # 1x1, stride-`stride`, no-pad shortcut: input pixel x[s*i, s*j]
            # is phase (1%s, 1%s) at offset (1//s, 1//s) of the padded image.
            a = 1 % stride
            psc = a * stride + a
            o = 1 // stride
            xw = xph_ref[0, psc * hpp + o:psc * hpp + o + ho, o:o + wo, :]
            accs = jnp.dot(xw.reshape(m_img, ci), wsc_ref[...],
                           preferred_element_type=jnp.float32)
            ysc_ref[...] = accs.reshape(1, m_img, co).astype(ysc_ref.dtype)
            ssc_ref[...] = jnp.sum(accs, axis=0).reshape(1, 1, co)
            qsc_ref[...] = jnp.sum(accs * accs, axis=0).reshape(1, 1, co)

    return kernel


def _make_conv2_kernel(ho, wo, c):
    """Fused relu(bn1(y1)) -> zero-halo VMEM scratch -> 3x3 conv + stats."""
    m_img = ho * wo

    def kernel(y1_ref, w_ref, s1_ref, b1_ref, y2_ref, s_ref, q_ref, xpad):
        # BN1 + ReLU applied in f32 on the loaded pre-BN tile (no HBM round
        # trip for out1); halo stays zero because the whole scratch is zeroed.
        xpad[...] = jnp.zeros(xpad.shape, xpad.dtype)
        act = jnp.maximum(
            y1_ref[0].astype(jnp.float32) * s1_ref[...] + b1_ref[...], 0.0)
        xpad[1:1 + ho, 1:1 + wo, :] = act.astype(xpad.dtype)

        acc = jnp.zeros((m_img, c), jnp.float32)
        for t, (kh, kw) in enumerate(_TAPS):
            win = xpad[kh:kh + ho, kw:kw + wo, :]
            acc = acc + jnp.dot(win.reshape(m_img, c),
                                w_ref[t * c:(t + 1) * c, :],
                                preferred_element_type=jnp.float32)
        y2_ref[...] = acc.reshape(1, m_img, c).astype(y2_ref.dtype)
        s_ref[...] = jnp.sum(acc, axis=0).reshape(1, 1, c)
        q_ref[...] = jnp.sum(acc * acc, axis=0).reshape(1, 1, c)

    return kernel


def _bn_add_relu_kernel(y_ref, xs_ref, s_ref, b_ref, o_ref):
    # identity shortcut: relu(bn2(y2) + x); epilogue math in f32 (v5e-safe).
    o_ref[...] = jnp.maximum(
        y_ref[...].astype(jnp.float32) * s_ref[...] + b_ref[...] + xs_ref[...],
        0.0).astype(o_ref.dtype)


def _bn2_add_relu_kernel(y_ref, ysc_ref, s_ref, b_ref, ssc_ref, bsc_ref, o_ref):
    # projection shortcut: relu(bn2(y2) + bn_sc(y_sc)).
    main = y_ref[...].astype(jnp.float32) * s_ref[...] + b_ref[...]
    sc = ysc_ref[...].astype(jnp.float32) * ssc_ref[...] + bsc_ref[...]
    o_ref[...] = jnp.maximum(main + sc, 0.0).astype(o_ref.dtype)


# --------------------------- pallas_call wrappers ---------------------------

def _conv1_call(xph, w, wsc, ho, wo, hpp, stride):
    n, hph, wpp, ci = xph.shape
    co = w.shape[1]
    m_img = ho * wo
    with_proj = wsc is not None
    kernel = _make_conv1_kernel(ho, wo, hpp, ci, co, stride, with_proj)

    in_specs = [pl.BlockSpec((1, hph, wpp, ci), lambda i: (i, 0, 0, 0)),
                pl.BlockSpec((w.shape[0], co), lambda i: (0, 0))]   # resident weight
    args = [xph, w]
    out_shape = [jax.ShapeDtypeStruct((n, ho, wo, co), jnp.bfloat16),
                 jax.ShapeDtypeStruct((n, 1, co), jnp.float32),
                 jax.ShapeDtypeStruct((n, 1, co), jnp.float32)]
    out_specs = [pl.BlockSpec((1, ho, wo, co), lambda i: (i, 0, 0, 0)),
                 pl.BlockSpec((1, 1, co), lambda i: (i, 0, 0)),
                 pl.BlockSpec((1, 1, co), lambda i: (i, 0, 0))]
    if with_proj:
        in_specs.append(pl.BlockSpec((ci, co), lambda i: (0, 0)))
        args.append(wsc)
        out_shape += [jax.ShapeDtypeStruct((n, m_img, co), jnp.bfloat16),
                      jax.ShapeDtypeStruct((n, 1, co), jnp.float32),
                      jax.ShapeDtypeStruct((n, 1, co), jnp.float32)]
        out_specs += [pl.BlockSpec((1, m_img, co), lambda i: (i, 0, 0)),
                      pl.BlockSpec((1, 1, co), lambda i: (i, 0, 0)),
                      pl.BlockSpec((1, 1, co), lambda i: (i, 0, 0))]

    return pl.pallas_call(
        kernel,
        out_shape=tuple(out_shape),
        grid=(n,),
        in_specs=in_specs,
        out_specs=tuple(out_specs),
        compiler_params=pltpu.CompilerParams(
            dimension_semantics=("parallel",),
            vmem_limit_bytes=_VMEM_LIMIT),
    )(*args)


def _conv2_call(y1, w, s1, b1, ho, wo):
    n = y1.shape[0]
    c = w.shape[1]
    m_img = ho * wo
    kernel = _make_conv2_kernel(ho, wo, c)
    return pl.pallas_call(
        kernel,
        out_shape=(jax.ShapeDtypeStruct((n, m_img, c), jnp.bfloat16),
                   jax.ShapeDtypeStruct((n, 1, c), jnp.float32),
                   jax.ShapeDtypeStruct((n, 1, c), jnp.float32)),
        grid=(n,),
        in_specs=[pl.BlockSpec((1, ho, wo, c), lambda i: (i, 0, 0, 0)),
                  pl.BlockSpec((w.shape[0], c), lambda i: (0, 0)),  # resident weight
                  pl.BlockSpec((1, c), lambda i: (0, 0)),           # folded scale1
                  pl.BlockSpec((1, c), lambda i: (0, 0))],          # folded shift1
        out_specs=(pl.BlockSpec((1, m_img, c), lambda i: (i, 0, 0)),
                   pl.BlockSpec((1, 1, c), lambda i: (i, 0, 0)),
                   pl.BlockSpec((1, 1, c), lambda i: (i, 0, 0))),
        scratch_shapes=[pltpu.VMEM((ho + 2, wo + 2, c), jnp.bfloat16)],
        compiler_params=pltpu.CompilerParams(
            dimension_semantics=("parallel",),
            vmem_limit_bytes=_VMEM_LIMIT),
    )(y1, w, s1, b1)


def _finalize_call(kernel, tiled_args, bcast_args, out_dtype):
    m, cp = tiled_args[0].shape
    tile_m = _pick_tile_m(m)                       # decoupled, larger M tile
    mp = _round_up(m, tile_m)
    tiled_args = [_pad_rows(a, mp) for a in tiled_args]
    in_specs = ([pl.BlockSpec((tile_m, cp), lambda i: (i, 0))] * len(tiled_args) +
                [pl.BlockSpec((1, cp), lambda i: (0, 0))] * len(bcast_args))
    out = pl.pallas_call(
        kernel,
        out_shape=jax.ShapeDtypeStruct((mp, cp), out_dtype),
        grid=(mp // tile_m,),
        in_specs=in_specs,
        out_specs=pl.BlockSpec((tile_m, cp), lambda i: (i, 0)),
        compiler_params=pltpu.CompilerParams(
            dimension_semantics=("parallel",),
            vmem_limit_bytes=_VMEM_LIMIT),
    )(*tiled_args, *bcast_args)
    return out[:m]


# ------------------------------- JAX glue -----------------------------------

def _make_phases(x_bf, stride, ho, wo):
    """Spatially pad by 1 and decompose into stride x stride phase sub-images
    concatenated along H -> (n, s*s*hpp, wpp, ci).  Every 3x3 tap (and the
    strided 1x1 shortcut) then reads a unit-stride window inside the kernel."""
    hpp = ho + 2 // stride
    wpp = wo + 2 // stride
    xp = jnp.pad(x_bf, ((0, 0), (1, 1), (1, 1), (0, 0)))
    phases = []
    for a in range(stride):
        for b in range(stride):
            ph = xp[:, a::stride, b::stride, :][:, :hpp, :wpp, :]
            ph = jnp.pad(ph, ((0, 0), (0, hpp - ph.shape[1]),
                              (0, wpp - ph.shape[2]), (0, 0)))
            phases.append(ph)
    return jnp.concatenate(phases, axis=1), hpp


def _pack_weight(w, ci, co):
    # HWIO -> (kh*kw*ci, co) bf16 with channels zero-padded to lane multiples.
    kh, kw, i, o = w.shape
    wp = jnp.pad(w.astype(jnp.float32),
                 ((0, 0), (0, 0), (0, ci - i), (0, co - o)))
    return wp.reshape(kh * kw * ci, co).astype(jnp.bfloat16)


def _bn_fold(sum_out, sq_out, count, gamma, beta, cp):
    # Reduce per-image partial sums -> folded BN scale/shift (O(C) glue).
    ssum = jnp.sum(sum_out[:, 0, :], axis=0)
    ssq = jnp.sum(sq_out[:, 0, :], axis=0)
    mean = ssum / count
    var = jnp.maximum(ssq / count - mean * mean, 0.0)
    g = jnp.pad(gamma.astype(jnp.float32), (0, cp - gamma.shape[0]))
    b = jnp.pad(beta.astype(jnp.float32), (0, cp - beta.shape[0]))
    scale = g * jax.lax.rsqrt(var + EPS)
    shift = b - mean * scale
    return scale.reshape(1, cp), shift.reshape(1, cp)


def basic_block_forward(x_nchw, params, *, stride):
    """Pallas implementation of BasicBlock.forward (training-mode batch-stat BN)."""
    x = jnp.transpose(x_nchw, (0, 2, 3, 1)).astype(jnp.float32)  # NHWC, f32
    n, h, w, cin = x.shape
    planes = params["w1"].shape[-1]
    ci = _round_up(cin, _LANE)            # lane-dense channel padding
    co = _round_up(planes, _LANE)
    ho = (h - 1) // stride + 1
    wo = (w - 1) // stride + 1
    m = n * ho * wo
    need_proj = (stride != 1) or (cin != planes)

    x_bf = jnp.pad(x, ((0, 0), (0, 0), (0, 0), (0, ci - cin))).astype(jnp.bfloat16)

    # ---- conv1 (3x3, stride, pad 1) [+ fused 1x1 projection shortcut] ------
    xph, hpp = _make_phases(x_bf, stride, ho, wo)
    w1 = _pack_weight(params["w1"], ci, co)
    wsc = _pack_weight(params["wsc"], ci, co) if need_proj else None
    conv1_out = _conv1_call(xph, w1, wsc, ho, wo, hpp, stride)
    y1, sum1, sq1 = conv1_out[:3]
    s1, b1 = _bn_fold(sum1, sq1, m, params["g1"], params["b1"], co)

    # ---- conv2 (3x3, stride 1, pad 1) with conv1's BN+ReLU fused in --------
    w2 = _pack_weight(params["w2"], co, co)
    y2, sum2, sq2 = _conv2_call(y1, w2, s1, b1, ho, wo)
    s2, b2 = _bn_fold(sum2, sq2, m, params["g2"], params["b2"], co)

    # ---- shortcut + residual add + relu (single lane-dense epilogue pass) --
    if need_proj:
        ysc, sumsc, sqsc = conv1_out[3:]
        ssc, bsc = _bn_fold(sumsc, sqsc, m, params["gsc"], params["bsc"], co)
        out2d = _finalize_call(_bn2_add_relu_kernel,
                               [y2.reshape(m, co), ysc.reshape(m, co)],
                               [s2, b2, ssc, bsc], jnp.float32)
    else:
        xs = jnp.pad(x.reshape(m, cin), ((0, 0), (0, co - cin)))  # f32 residual
        out2d = _finalize_call(_bn_add_relu_kernel,
                               [y2.reshape(m, co), xs],
                               [s2, b2], jnp.float32)

    out = out2d[:, :planes].reshape(n, ho, wo, planes)
    return jnp.transpose(out, (0, 3, 1, 2))  # back to NCHW


# --------------------------- pure-JAX reference ------------------------------

def _ref_forward(x_nchw, params, stride):
    x = jnp.transpose(x_nchw, (0, 2, 3, 1)).astype(jnp.float32)
    conv = lambda a, w, s, p: jax.lax.conv_general_dilated(
        a, w, (s, s), ((p, p), (p, p)),
        dimension_numbers=("NHWC", "HWIO", "NHWC"))

    def bn(y, g, b):
        mu = jnp.mean(y, axis=(0, 1, 2), keepdims=True)
        var = jnp.mean(jnp.square(y - mu), axis=(0, 1, 2), keepdims=True)
        return (y - mu) * jax.lax.rsqrt(var + EPS) * g + b

    out = jax.nn.relu(bn(conv(x, params["w1"], stride, 1), params["g1"], params["b1"]))
    out = bn(conv(out, params["w2"], 1, 1), params["g2"], params["b2"])
    if stride != 1 or x.shape[-1] != params["w1"].shape[-1]:
        sc = bn(conv(x, params["wsc"], stride, 0), params["gsc"], params["bsc"])
    else:
        sc = x
    out = jax.nn.relu(out + sc)
    return jnp.transpose(out, (0, 3, 1, 2))


# ---------------------------------- main -------------------------------------

def _make_params(key, in_planes, planes, need_proj):
    k1, k2, k3 = jax.random.split(key, 3)
    params = {
        "w1": 0.1 * jax.random.normal(k1, (3, 3, in_planes, planes), jnp.float32),
        "g1": jnp.ones((planes,), jnp.float32),
        "b1": jnp.zeros((planes,), jnp.float32),
        "w2": 0.1 * jax.random.normal(k2, (3, 3, planes, planes), jnp.float32),
        "g2": jnp.ones((planes,), jnp.float32),
        "b2": jnp.zeros((planes,), jnp.float32),
    }
    if need_proj:
        params.update({
            "wsc": 0.1 * jax.random.normal(k3, (1, 1, in_planes, planes), jnp.float32),
            "gsc": jnp.ones((planes,), jnp.float32),
            "bsc": jnp.zeros((planes,), jnp.float32),
        })
    return params


def _check(name, x, params, stride, out_planes):
    fwd = jax.jit(basic_block_forward, static_argnames=("stride",))
    out = jax.block_until_ready(fwd(x, params, stride=stride))
    ref = jax.block_until_ready(_ref_forward(x, params, stride))
    n, _, h, w = x.shape
    assert out.shape == (n, out_planes, h // stride, w // stride), (name, out.shape)
    err = float(jnp.max(jnp.abs(out - ref)))
    # bf16 MXU operands + bf16 pre-BN intermediates -> compare against the
    # f32 reference with a bf16-appropriate tolerance.
    assert err < 1e-1, (name, err)


if __name__ == "__main__":
    key = jax.random.PRNGKey(0)
    kx1, kp1, kx2, kp2 = jax.random.split(key, 4)

    # Projection-shortcut config (stride=2, channel change 4 -> 8).
    x1 = jax.random.normal(kx1, (2, 4, 16, 16), jnp.float32)
    _check("proj", x1, _make_params(kp1, 4, 8, need_proj=True), 2, 8)

    # Identity-shortcut config (stride=1, same channels).
    x2 = jax.random.normal(kx2, (2, 8, 16, 16), jnp.float32)
    _check("identity", x2, _make_params(kp2, 8, 8, need_proj=False), 1, 8)

    print("KERNEL_OK")
</pallas_src>

<mosaic_0001>
module attributes {stable_mosaic.version = 11 : i64} {
  func.func @kernel(%arg0: i32, %arg1: memref<1x36x9x128xbf16, #tpu.memory_space<vmem>>, %arg2: memref<1152x128xbf16, #tpu.memory_space<vmem>>, %arg3: memref<128x128xbf16, #tpu.memory_space<vmem>>, %arg4: memref<1x8x8x128xbf16, #tpu.memory_space<vmem>>, %arg5: memref<1x1x128xf32, #tpu.memory_space<vmem>>, %arg6: memref<1x1x128xf32, #tpu.memory_space<vmem>>, %arg7: memref<1x64x128xbf16, #tpu.memory_space<vmem>>, %arg8: memref<1x1x128xf32, #tpu.memory_space<vmem>>, %arg9: memref<1x1x128xf32, #tpu.memory_space<vmem>>) attributes {dimension_semantics = [#tpu.dimension_semantics<parallel>], iteration_bounds = array<i64: 2>, scalar_prefetch = 0 : i64, scratch_operands = 0 : i64, tpu.core_type = #tpu.core_type<tc>, window_params = [{transform_indices = @transform_0, window_bounds = array<i64: 1, 36, 9, 128>}, {pipeline_mode = #tpu.pipeline_mode<synchronous>, transform_indices = @transform_1, window_bounds = array<i64: 1152, 128>}, {pipeline_mode = #tpu.pipeline_mode<synchronous>, transform_indices = @transform_2, window_bounds = array<i64: 128, 128>}, {transform_indices = @transform_3, window_bounds = array<i64: 1, 8, 8, 128>}, {transform_indices = @transform_4, window_bounds = array<i64: 1, 1, 128>}, {transform_indices = @transform_5, window_bounds = array<i64: 1, 1, 128>}, {transform_indices = @transform_6, window_bounds = array<i64: 1, 64, 128>}, {transform_indices = @transform_7, window_bounds = array<i64: 1, 1, 128>}, {transform_indices = @transform_8, window_bounds = array<i64: 1, 1, 128>}]} {
    %cst = arith.constant 0.000000e+00 : f32
    %0 = vector.broadcast %cst : f32 to vector<64x128xf32>
    %c0 = arith.constant 0 : index
    %c0_0 = arith.constant 0 : index
    %c0_1 = arith.constant 0 : index
    %c0_2 = arith.constant 0 : index
    %1 = vector.load %arg1[%c0, %c0_0, %c0_1, %c0_2] : memref<1x36x9x128xbf16, #tpu.memory_space<vmem>>, vector<1x8x8x128xbf16>
    %2 = vector.shape_cast %1 : vector<1x8x8x128xbf16> to vector<8x8x128xbf16>
    %3 = vector.shape_cast %2 : vector<8x8x128xbf16> to vector<64x128xbf16>
    %c0_3 = arith.constant 0 : index
    %c0_4 = arith.constant 0 : index
    %4 = vector.load %arg2[%c0_3, %c0_4] : memref<1152x128xbf16, #tpu.memory_space<vmem>>, vector<128x128xbf16>
    %cst_5 = arith.constant dense<0.000000e+00> : vector<64x128xf32>
    %5 = tpu.matmul %3, %4, %cst_5 {dimension_numbers = #tpu.dot_dimension_numbers<[1], [0], [0], [1], [0, 0, 1, 1], [], []>} : vector<64x128xbf16>, vector<128x128xbf16>, vector<64x128xf32> -> vector<64x128xf32>
    %6 = arith.addf %0, %5 : vector<64x128xf32>
    %c0_6 = arith.constant 0 : index
    %c9 = arith.constant 9 : index
    %c0_7 = arith.constant 0 : index
    %c0_8 = arith.constant 0 : index
    %7 = vector.load %arg1[%c0_6, %c9, %c0_7, %c0_8] : memref<1x36x9x128xbf16, #tpu.memory_space<vmem>>, vector<1x8x8x128xbf16>
    %8 = vector.shape_cast %7 : vector<1x8x8x128xbf16> to vector<8x8x128xbf16>
    %9 = vector.shape_cast %8 : vector<8x8x128xbf16> to vector<64x128xbf16>
    %c128 = arith.constant 128 : index
    %c0_9 = arith.constant 0 : index
    %10 = vector.load %arg2[%c128, %c0_9] : memref<1152x128xbf16, #tpu.memory_space<vmem>>, vector<128x128xbf16>
    %cst_10 = arith.constant dense<0.000000e+00> : vector<64x128xf32>
    %11 = tpu.matmul %9, %10, %cst_10 {dimension_numbers = #tpu.dot_dimension_numbers<[1], [0], [0], [1], [0, 0, 1, 1], [], []>} : vector<64x128xbf16>, vector<128x128xbf16>, vector<64x128xf32> -> vector<64x128xf32>
    %12 = arith.addf %6, %11 : vector<64x128xf32>
    %c0_11 = arith.constant 0 : index
    %c0_12 = arith.constant 0 : index
    %c1 = arith.constant 1 : index
    %c0_13 = arith.constant 0 : index
    %13 = vector.load %arg1[%c0_11, %c0_12, %c1, %c0_13] : memref<1x36x9x128xbf16, #tpu.memory_space<vmem>>, vector<1x8x8x128xbf16>
    %14 = vector.shape_cast %13 : vector<1x8x8x128xbf16> to vector<8x8x128xbf16>
    %15 = vector.shape_cast %14 : vector<8x8x128xbf16> to vector<64x128xbf16>
    %c256 = arith.constant 256 : index
    %c0_14 = arith.constant 0 : index
    %16 = vector.load %arg2[%c256, %c0_14] : memref<1152x128xbf16, #tpu.memory_space<vmem>>, vector<128x128xbf16>
    %cst_15 = arith.constant dense<0.000000e+00> : vector<64x128xf32>
    %17 = tpu.matmul %15, %16, %cst_15 {dimension_numbers = #tpu.dot_dimension_numbers<[1], [0], [0], [1], [0, 0, 1, 1], [], []>} : vector<64x128xbf16>, vector<128x128xbf16>, vector<64x128xf32> -> vector<64x128xf32>
    %18 = arith.addf %12, %17 : vector<64x128xf32>
    %c0_16 = arith.constant 0 : index
    %c18 = arith.constant 18 : index
    %c0_17 = arith.constant 0 : index
    %c0_18 = arith.constant 0 : index
    %19 = vector.load %arg1[%c0_16, %c18, %c0_17, %c0_18] : memref<1x36x9x128xbf16, #tpu.memory_space<vmem>>, vector<1x8x8x128xbf16>
    %20 = vector.shape_cast %19 : vector<1x8x8x128xbf16> to vector<8x8x128xbf16>
    %21 = vector.shape_cast %20 : vector<8x8x128xbf16> to vector<64x128xbf16>
    %c384 = arith.constant 384 : index
    %c0_19 = arith.constant 0 : index
    %22 = vector.load %arg2[%c384, %c0_19] : memref<1152x128xbf16, #tpu.memory_space<vmem>>, vector<128x128xbf16>
    %cst_20 = arith.constant dense<0.000000e+00> : vector<64x128xf32>
    %23 = tpu.matmul %21, %22, %cst_20 {dimension_numbers = #tpu.dot_dimension_numbers<[1], [0], [0], [1], [0, 0, 1, 1], [], []>} : vector<64x128xbf16>, vector<128x128xbf16>, vector<64x128xf32> -> vector<64x128xf32>
    %24 = arith.addf %18, %23 : vector<64x128xf32>
    %c0_21 = arith.constant 0 : index
    %c27 = arith.constant 27 : index
    %c0_22 = arith.constant 0 : index
    %c0_23 = arith.constant 0 : index
    %25 = vector.load %arg1[%c0_21, %c27, %c0_22, %c0_23] : memref<1x36x9x128xbf16, #tpu.memory_space<vmem>>, vector<1x8x8x128xbf16>
    %26 = vector.shape_cast %25 : vector<1x8x8x128xbf16> to vector<8x8x128xbf16>
    %27 = vector.shape_cast %26 : vector<8x8x128xbf16> to vector<64x128xbf16>
    %c512 = arith.constant 512 : index
    %c0_24 = arith.constant 0 : index
    %28 = vector.load %arg2[%c512, %c0_24] : memref<1152x128xbf16, #tpu.memory_space<vmem>>, vector<128x128xbf16>
    %cst_25 = arith.constant dense<0.000000e+00> : vector<64x128xf32>
    %29 = tpu.matmul %27, %28, %cst_25 {dimension_numbers = #tpu.dot_dimension_numbers<[1], [0], [0], [1], [0, 0, 1, 1], [], []>} : vector<64x128xbf16>, vector<128x128xbf16>, vector<64x128xf32> -> vector<64x128xf32>
    %30 = arith.addf %24, %29 : vector<64x128xf32>
    %c0_26 = arith.constant 0 : index
    %c18_27 = arith.constant 18 : index
    %c1_28 = arith.constant 1 : index
    %c0_29 = arith.constant 0 : index
    %31 = vector.load %arg1[%c0_26, %c18_27, %c1_28, %c0_29] : memref<1x36x9x128xbf16, #tpu.memory_space<vmem>>, vector<1x8x8x128xbf16>
    %32 = vector.shape_cast %31 : vector<1x8x8x128xbf16> to vector<8x8x128xbf16>
    %33 = vector.shape_cast %32 : vector<8x8x128xbf16> to vector<64x128xbf16>
    %c640 = arith.constant 640 : index
    %c0_30 = arith.constant 0 : index
    %34 = vector.load %arg2[%c640, %c0_30] : memref<1152x128xbf16, #tpu.memory_space<vmem>>, vector<128x128xbf16>
    %cst_31 = arith.constant dense<0.000000e+00> : vector<64x128xf32>
    %35 = tpu.matmul %33, %34, %cst_31 {dimension_numbers = #tpu.dot_dimension_numbers<[1], [0], [0], [1], [0, 0, 1, 1], [], []>} : vector<64x128xbf16>, vector<128x128xbf16>, vector<64x128xf32> -> vector<64x128xf32>
    %36 = arith.addf %30, %35 : vector<64x128xf32>
    %c0_32 = arith.constant 0 : index
    %c1_33 = arith.constant 1 : index
    %c0_34 = arith.constant 0 : index
    %c0_35 = arith.constant 0 : index
    %37 = vector.load %arg1[%c0_32, %c1_33, %c0_34, %c0_35] : memref<1x36x9x128xbf16, #tpu.memory_space<vmem>>, vector<1x8x8x128xbf16>
    %38 = vector.shape_cast %37 : vector<1x8x8x128xbf16> to vector<8x8x128xbf16>
    %39 = vector.shape_cast %38 : vector<8x8x128xbf16> to vector<64x128xbf16>
    %c768 = arith.constant 768 : index
    %c0_36 = arith.constant 0 : index
    %40 = vector.load %arg2[%c768, %c0_36] : memref<1152x128xbf16, #tpu.memory_space<vmem>>, vector<128x128xbf16>
    %cst_37 = arith.constant dense<0.000000e+00> : vector<64x128xf32>
    %41 = tpu.matmul %39, %40, %cst_37 {dimension_numbers = #tpu.dot_dimension_numbers<[1], [0], [0], [1], [0, 0, 1, 1], [], []>} : vector<64x128xbf16>, vector<128x128xbf16>, vector<64x128xf32> -> vector<64x128xf32>
    %42 = arith.addf %36, %41 : vector<64x128xf32>
    %c0_38 = arith.constant 0 : index
    %c10 = arith.constant 10 : index
    %c0_39 = arith.constant 0 : index
    %c0_40 = arith.constant 0 : index
    %43 = vector.load %arg1[%c0_38, %c10, %c0_39, %c0_40] : memref<1x36x9x128xbf16, #tpu.memory_space<vmem>>, vector<1x8x8x128xbf16>
    %44 = vector.shape_cast %43 : vector<1x8x8x128xbf16> to vector<8x8x128xbf16>
    %45 = vector.shape_cast %44 : vector<8x8x128xbf16> to vector<64x128xbf16>
    %c896 = arith.constant 896 : index
    %c0_41 = arith.constant 0 : index
    %46 = vector.load %arg2[%c896, %c0_41] : memref<1152x128xbf16, #tpu.memory_space<vmem>>, vector<128x128xbf16>
    %cst_42 = arith.constant dense<0.000000e+00> : vector<64x128xf32>
    %47 = tpu.matmul %45, %46, %cst_42 {dimension_numbers = #tpu.dot_dimension_numbers<[1], [0], [0], [1], [0, 0, 1, 1], [], []>} : vector<64x128xbf16>, vector<128x128xbf16>, vector<64x128xf32> -> vector<64x128xf32>
    %48 = arith.addf %42, %47 : vector<64x128xf32>
    %c0_43 = arith.constant 0 : index
    %c1_44 = arith.constant 1 : index
    %c1_45 = arith.constant 1 : index
    %c0_46 = arith.constant 0 : index
    %49 = vector.load %arg1[%c0_43, %c1_44, %c1_45, %c0_46] : memref<1x36x9x128xbf16, #tpu.memory_space<vmem>>, vector<1x8x8x128xbf16>
    %50 = vector.shape_cast %49 : vector<1x8x8x128xbf16> to vector<8x8x128xbf16>
    %51 = vector.shape_cast %50 : vector<8x8x128xbf16> to vector<64x128xbf16>
    %c1024 = arith.constant 1024 : index
    %c0_47 = arith.constant 0 : index
    %52 = vector.load %arg2[%c1024, %c0_47] : memref<1152x128xbf16, #tpu.memory_space<vmem>>, vector<128x128xbf16>
    %cst_48 = arith.constant dense<0.000000e+00> : vector<64x128xf32>
    %53 = tpu.matmul %51, %52, %cst_48 {dimension_numbers = #tpu.dot_dimension_numbers<[1], [0], [0], [1], [0, 0, 1, 1], [], []>} : vector<64x128xbf16>, vector<128x128xbf16>, vector<64x128xf32> -> vector<64x128xf32>
    %54 = arith.addf %48, %53 : vector<64x128xf32>
    %55 = vector.shape_cast %54 : vector<64x128xf32> to vector<1x8x8x128xf32>
    %56 = arith.truncf %55 : vector<1x8x8x128xf32> to vector<1x8x8x128xbf16>
    %c0_49 = arith.constant 0 : index
    %c0_50 = arith.constant 0 : index
    %c0_51 = arith.constant 0 : index
    %c0_52 = arith.constant 0 : index
    %57 = vector.load %arg4[%c0_49, %c0_50, %c0_51, %c0_52] : memref<1x8x8x128xbf16, #tpu.memory_space<vmem>>, vector<1x8x8x128xbf16>
    tpu.vector_store %arg4[%c0_49, %c0_50, %c0_51, %c0_52], %56 {strides = array<i32>} : memref<1x8x8x128xbf16, #tpu.memory_space<vmem>>, vector<1x8x8x128xbf16>,
    %cst_53 = arith.constant dense<0.000000e+00> : vector<128xf32>
    %58 = vector.multi_reduction <add>, %54, %cst_53 [0] : vector<64x128xf32> to vector<128xf32>
    %59 = vector.shape_cast %58 : vector<128xf32> to vector<1x1x128xf32>
    %c0_54 = arith.constant 0 : index
    %c0_55 = arith.constant 0 : index
    %c0_56 = arith.constant 0 : index
    %60 = vector.load %arg5[%c0_54, %c0_55, %c0_56] : memref<1x1x128xf32, #tpu.memory_space<vmem>>, vector<1x1x128xf32>
    tpu.vector_store %arg5[%c0_54, %c0_55, %c0_56], %59 {strides = array<i32>} : memref<1x1x128xf32, #tpu.memory_space<vmem>>, vector<1x1x128xf32>,
    %61 = arith.mulf %54, %54 : vector<64x128xf32>
    %cst_57 = arith.constant dense<0.000000e+00> : vector<128xf32>
    %62 = vector.multi_reduction <add>, %61, %cst_57 [0] : vector<64x128xf32> to vector<128xf32>
    %63 = vector.shape_cast %62 : vector<128xf32> to vector<1x1x128xf32>
    %c0_58 = arith.constant 0 : index
    %c0_59 = arith.constant 0 : index
    %c0_60 = arith.constant 0 : index
    %64 = vector.load %arg6[%c0_58, %c0_59, %c0_60] : memref<1x1x128xf32, #tpu.memory_space<vmem>>, vector<1x1x128xf32>
    tpu.vector_store %arg6[%c0_58, %c0_59, %c0_60], %63 {strides = array<i32>} : memref<1x1x128xf32, #tpu.memory_space<vmem>>, vector<1x1x128xf32>,
    %c0_61 = arith.constant 0 : index
    %c27_62 = arith.constant 27 : index
    %c0_63 = arith.constant 0 : index
    %c0_64 = arith.constant 0 : index
    %65 = vector.load %arg1[%c0_61, %c27_62, %c0_63, %c0_64] : memref<1x36x9x128xbf16, #tpu.memory_space<vmem>>, vector<1x8x8x128xbf16>
    %66 = vector.shape_cast %65 : vector<1x8x8x128xbf16> to vector<8x8x128xbf16>
    %67 = vector.shape_cast %66 : vector<8x8x128xbf16> to vector<64x128xbf16>
    %c0_65 = arith.constant 0 : index
    %c0_66 = arith.constant 0 : index
    %68 = vector.load %arg3[%c0_65, %c0_66] : memref<128x128xbf16, #tpu.memory_space<vmem>>, vector<128x128xbf16>
    %cst_67 = arith.constant dense<0.000000e+00> : vector<64x128xf32>
    %69 = tpu.matmul %67, %68, %cst_67 {dimension_numbers = #tpu.dot_dimension_numbers<[1], [0], [0], [1], [0, 0, 1, 1], [], []>} : vector<64x128xbf16>, vector<128x128xbf16>, vector<64x128xf32> -> vector<64x128xf32>
    %70 = vector.shape_cast %69 : vector<64x128xf32> to vector<1x64x128xf32>
    %71 = arith.truncf %70 : vector<1x64x128xf32> to vector<1x64x128xbf16>
    %c0_68 = arith.constant 0 : index
    %c0_69 = arith.constant 0 : index
    %c0_70 = arith.constant 0 : index
    %72 = vector.load %arg7[%c0_68, %c0_69, %c0_70] : memref<1x64x128xbf16, #tpu.memory_space<vmem>>, vector<1x64x128xbf16>
    tpu.vector_store %arg7[%c0_68, %c0_69, %c0_70], %71 {strides = array<i32>} : memref<1x64x128xbf16, #tpu.memory_space<vmem>>, vector<1x64x128xbf16>,
    %cst_71 = arith.constant dense<0.000000e+00> : vector<128xf32>
    %73 = vector.multi_reduction <add>, %69, %cst_71 [0] : vector<64x128xf32> to vector<128xf32>
    %74 = vector.shape_cast %73 : vector<128xf32> to vector<1x1x128xf32>
    %c0_72 = arith.constant 0 : index
    %c0_73 = arith.constant 0 : index
    %c0_74 = arith.constant 0 : index
    %75 = vector.load %arg8[%c0_72, %c0_73, %c0_74] : memref<1x1x128xf32, #tpu.memory_space<vmem>>, vector<1x1x128xf32>
    tpu.vector_store %arg8[%c0_72, %c0_73, %c0_74], %74 {strides = array<i32>} : memref<1x1x128xf32, #tpu.memory_space<vmem>>, vector<1x1x128xf32>,
    %76 = arith.mulf %69, %69 : vector<64x128xf32>
    %cst_75 = arith.constant dense<0.000000e+00> : vector<128xf32>
    %77 = vector.multi_reduction <add>, %76, %cst_75 [0] : vector<64x128xf32> to vector<128xf32>
    %78 = vector.shape_cast %77 : vector<128xf32> to vector<1x1x128xf32>
    %c0_76 = arith.constant 0 : index
    %c0_77 = arith.constant 0 : index
    %c0_78 = arith.constant 0 : index
    %79 = vector.load %arg9[%c0_76, %c0_77, %c0_78] : memref<1x1x128xf32, #tpu.memory_space<vmem>>, vector<1x1x128xf32>
    tpu.vector_store %arg9[%c0_76, %c0_77, %c0_78], %78 {strides = array<i32>} : memref<1x1x128xf32, #tpu.memory_space<vmem>>, vector<1x1x128xf32>,
    return
  }
  func.func @transform_0(%arg0: i32) -> (i32, i32, i32, i32) {
    %c0_i32 = arith.constant 0 : i32
    %c0_i32_0 = arith.constant 0 : i32
    %c0_i32_1 = arith.constant 0 : i32
    %c0_i32_2 = arith.constant 0 : i32
    return %arg0, %c0_i32, %c0_i32_0, %c0_i32_1 : i32, i32, i32, i32
  }
  func.func @transform_1(%arg0: i32) -> (i32, i32) {
    %c0_i32 = arith.constant 0 : i32
    %c0_i32_0 = arith.constant 0 : i32
    %c0_i32_1 = arith.constant 0 : i32
    return %c0_i32, %c0_i32_0 : i32, i32
  }
  func.func @transform_2(%arg0: i32) -> (i32, i32) {
    %c0_i32 = arith.constant 0 : i32
    %c0_i32_0 = arith.constant 0 : i32
    %c0_i32_1 = arith.constant 0 : i32
    return %c0_i32, %c0_i32_0 : i32, i32
  }
  func.func @transform_3(%arg0: i32) -> (i32, i32, i32, i32) {
    %c0_i32 = arith.constant 0 : i32
    %c0_i32_0 = arith.constant 0 : i32
    %c0_i32_1 = arith.constant 0 : i32
    %c0_i32_2 = arith.constant 0 : i32
    return %arg0, %c0_i32, %c0_i32_0, %c0_i32_1 : i32, i32, i32, i32
  }
  func.func @transform_4(%arg0: i32) -> (i32, i32, i32) {
    %c0_i32 = arith.constant 0 : i32
    %c0_i32_0 = arith.constant 0 : i32
    %c0_i32_1 = arith.constant 0 : i32
    return %arg0, %c0_i32, %c0_i32_0 : i32, i32, i32
  }
  func.func @transform_5(%arg0: i32) -> (i32, i32, i32) {
    %c0_i32 = arith.constant 0 : i32
    %c0_i32_0 = arith.constant 0 : i32
    %c0_i32_1 = arith.constant 0 : i32
    return %arg0, %c0_i32, %c0_i32_0 : i32, i32, i32
  }
  func.func @transform_6(%arg0: i32) -> (i32, i32, i32) {
    %c0_i32 = arith.constant 0 : i32
    %c0_i32_0 = arith.constant 0 : i32
    %c0_i32_1 = arith.constant 0 : i32
    return %arg0, %c0_i32, %c0_i32_0 : i32, i32, i32
  }
  func.func @transform_7(%arg0: i32) -> (i32, i32, i32) {
    %c0_i32 = arith.constant 0 : i32
    %c0_i32_0 = arith.constant 0 : i32
    %c0_i32_1 = arith.constant 0 : i32
    return %arg0, %c0_i32, %c0_i32_0 : i32, i32, i32
  }
  func.func @transform_8(%arg0: i32) -> (i32, i32, i32) {
    %c0_i32 = arith.constant 0 : i32
    %c0_i32_0 = arith.constant 0 : i32
    %c0_i32_1 = arith.constant 0 : i32
    return %arg0, %c0_i32, %c0_i32_0 : i32, i32, i32
  }
}

module attributes {stable_mosaic.version = 11 : i64} {
  func.func @kernel(%arg0: i32, %arg1: memref<1x8x8x128xbf16, #tpu.memory_space<vmem>>, %arg2: memref<1152x128xbf16, #tpu.memory_space<vmem>>, %arg3: memref<1x128xf32, #tpu.memory_space<vmem>>, %arg4: memref<1x128xf32, #tpu.memory_space<vmem>>, %arg5: memref<1x64x128xbf16, #tpu.memory_space<vmem>>, %arg6: memref<1x1x128xf32, #tpu.memory_space<vmem>>, %arg7: memref<1x1x128xf32, #tpu.memory_space<vmem>>, %arg8: memref<10x10x128xbf16, #tpu.memory_space<vmem>>) attributes {dimension_semantics = [#tpu.dimension_semantics<parallel>], iteration_bounds = array<i64: 2>, scalar_prefetch = 0 : i64, scratch_operands = 1 : i64, tpu.core_type = #tpu.core_type<tc>, window_params = [{transform_indices = @transform_0, window_bounds = array<i64: 1, 8, 8, 128>}, {pipeline_mode = #tpu.pipeline_mode<synchronous>, transform_indices = @transform_1, window_bounds = array<i64: 1152, 128>}, {pipeline_mode = #tpu.pipeline_mode<synchronous>, transform_indices = @transform_2, window_bounds = array<i64: 1, 128>}, {pipeline_mode = #tpu.pipeline_mode<synchronous>, transform_indices = @transform_3, window_bounds = array<i64: 1, 128>}, {transform_indices = @transform_4, window_bounds = array<i64: 1, 64, 128>}, {transform_indices = @transform_5, window_bounds = array<i64: 1, 1, 128>}, {transform_indices = @transform_6, window_bounds = array<i64: 1, 1, 128>}]} {
    %cst = arith.constant 0.000000e+00 : bf16
    %0 = vector.broadcast %cst : bf16 to vector<10x10x128xbf16>
    %c0 = arith.constant 0 : index
    %c0_0 = arith.constant 0 : index
    %c0_1 = arith.constant 0 : index
    %1 = vector.load %arg8[%c0, %c0_0, %c0_1] : memref<10x10x128xbf16, #tpu.memory_space<vmem>>, vector<10x10x128xbf16>
    tpu.vector_store %arg8[%c0, %c0_0, %c0_1], %0 {strides = array<i32>} : memref<10x10x128xbf16, #tpu.memory_space<vmem>>, vector<10x10x128xbf16>,
    %c0_2 = arith.constant 0 : index
    %c0_3 = arith.constant 0 : index
    %c0_4 = arith.constant 0 : index
    %c0_5 = arith.constant 0 : index
    %2 = vector.load %arg1[%c0_2, %c0_3, %c0_4, %c0_5] : memref<1x8x8x128xbf16, #tpu.memory_space<vmem>>, vector<1x8x8x128xbf16>
    %3 = vector.shape_cast %2 : vector<1x8x8x128xbf16> to vector<8x8x128xbf16>
    %4 = arith.extf %3 : vector<8x8x128xbf16> to vector<8x8x128xf32>
    %c0_6 = arith.constant 0 : index
    %c0_7 = arith.constant 0 : index
    %5 = vector.load %arg3[%c0_6, %c0_7] : memref<1x128xf32, #tpu.memory_space<vmem>>, vector<1x128xf32>
    %6 = vector.shape_cast %5 : vector<1x128xf32> to vector<1x1x128xf32>
    %7 = vector.broadcast %6 : vector<1x1x128xf32> to vector<8x8x128xf32>
    %8 = arith.mulf %4, %7 : vector<8x8x128xf32>
    %c0_8 = arith.constant 0 : index
    %c0_9 = arith.constant 0 : index
    %9 = vector.load %arg4[%c0_8, %c0_9] : memref<1x128xf32, #tpu.memory_space<vmem>>, vector<1x128xf32>
    %10 = vector.shape_cast %9 : vector<1x128xf32> to vector<1x1x128xf32>
    %11 = vector.broadcast %10 : vector<1x1x128xf32> to vector<8x8x128xf32>
    %12 = arith.addf %8, %11 : vector<8x8x128xf32>
    %cst_10 = arith.constant 0.000000e+00 : f32
    %13 = vector.broadcast %cst_10 : f32 to vector<8x8x128xf32>
    %14 = arith.maximumf %12, %13 : vector<8x8x128xf32>
    %15 = arith.truncf %14 : vector<8x8x128xf32> to vector<8x8x128xbf16>
    %c1 = arith.constant 1 : index
    %c1_11 = arith.constant 1 : index
    %c0_12 = arith.constant 0 : index
    %16 = vector.load %arg8[%c1, %c1_11, %c0_12] : memref<10x10x128xbf16, #tpu.memory_space<vmem>>, vector<8x8x128xbf16>
    tpu.vector_store %arg8[%c1, %c1_11, %c0_12], %15 {strides = array<i32>} : memref<10x10x128xbf16, #tpu.memory_space<vmem>>, vector<8x8x128xbf16>,
    %cst_13 = arith.constant 0.000000e+00 : f32
    %17 = vector.broadcast %cst_13 : f32 to vector<64x128xf32>
    %c0_14 = arith.constant 0 : index
    %c0_15 = arith.constant 0 : index
    %c0_16 = arith.constant 0 : index
    %18 = vector.load %arg8[%c0_14, %c0_15, %c0_16] : memref<10x10x128xbf16, #tpu.memory_space<vmem>>, vector<8x8x128xbf16>
    %19 = vector.shape_cast %18 : vector<8x8x128xbf16> to vector<64x128xbf16>
    %c0_17 = arith.constant 0 : index
    %c0_18 = arith.constant 0 : index
    %20 = vector.load %arg2[%c0_17, %c0_18] : memref<1152x128xbf16, #tpu.memory_space<vmem>>, vector<128x128xbf16>
    %cst_19 = arith.constant dense<0.000000e+00> : vector<64x128xf32>
    %21 = tpu.matmul %19, %20, %cst_19 {dimension_numbers = #tpu.dot_dimension_numbers<[1], [0], [0], [1], [0, 0, 1, 1], [], []>} : vector<64x128xbf16>, vector<128x128xbf16>, vector<64x128xf32> -> vector<64x128xf32>
    %22 = arith.addf %17, %21 : vector<64x128xf32>
    %c0_20 = arith.constant 0 : index
    %c1_21 = arith.constant 1 : index
    %c0_22 = arith.constant 0 : index
    %23 = vector.load %arg8[%c0_20, %c1_21, %c0_22] : memref<10x10x128xbf16, #tpu.memory_space<vmem>>, vector<8x8x128xbf16>
    %24 = vector.shape_cast %23 : vector<8x8x128xbf16> to vector<64x128xbf16>
    %c128 = arith.constant 128 : index
    %c0_23 = arith.constant 0 : index
    %25 = vector.load %arg2[%c128, %c0_23] : memref<1152x128xbf16, #tpu.memory_space<vmem>>, vector<128x128xbf16>
    %cst_24 = arith.constant dense<0.000000e+00> : vector<64x128xf32>
    %26 = tpu.matmul %24, %25, %cst_24 {dimension_numbers = #tpu.dot_dimension_numbers<[1], [0], [0], [1], [0, 0, 1, 1], [], []>} : vector<64x128xbf16>, vector<128x128xbf16>, vector<64x128xf32> -> vector<64x128xf32>
    %27 = arith.addf %22, %26 : vector<64x128xf32>
    %c0_25 = arith.constant 0 : index
    %c2 = arith.constant 2 : index
    %c0_26 = arith.constant 0 : index
    %28 = vector.load %arg8[%c0_25, %c2, %c0_26] : memref<10x10x128xbf16, #tpu.memory_space<vmem>>, vector<8x8x128xbf16>
    %29 = vector.shape_cast %28 : vector<8x8x128xbf16> to vector<64x128xbf16>
    %c256 = arith.constant 256 : index
    %c0_27 = arith.constant 0 : index
    %30 = vector.load %arg2[%c256, %c0_27] : memref<1152x128xbf16, #tpu.memory_space<vmem>>, vector<128x128xbf16>
    %cst_28 = arith.constant dense<0.000000e+00> : vector<64x128xf32>
    %31 = tpu.matmul %29, %30, %cst_28 {dimension_numbers = #tpu.dot_dimension_numbers<[1], [0], [0], [1], [0, 0, 1, 1], [], []>} : vector<64x128xbf16>, vector<128x128xbf16>, vector<64x128xf32> -> vector<64x128xf32>
    %32 = arith.addf %27, %31 : vector<64x128xf32>
    %c1_29 = arith.constant 1 : index
    %c0_30 = arith.constant 0 : index
    %c0_31 = arith.constant 0 : index
    %33 = vector.load %arg8[%c1_29, %c0_30, %c0_31] : memref<10x10x128xbf16, #tpu.memory_space<vmem>>, vector<8x8x128xbf16>
    %34 = vector.shape_cast %33 : vector<8x8x128xbf16> to vector<64x128xbf16>
    %c384 = arith.constant 384 : index
    %c0_32 = arith.constant 0 : index
    %35 = vector.load %arg2[%c384, %c0_32] : memref<1152x128xbf16, #tpu.memory_space<vmem>>, vector<128x128xbf16>
    %cst_33 = arith.constant dense<0.000000e+00> : vector<64x128xf32>
    %36 = tpu.matmul %34, %35, %cst_33 {dimension_numbers = #tpu.dot_dimension_numbers<[1], [0], [0], [1], [0, 0, 1, 1], [], []>} : vector<64x128xbf16>, vector<128x128xbf16>, vector<64x128xf32> -> vector<64x128xf32>
    %37 = arith.addf %32, %36 : vector<64x128xf32>
    %c1_34 = arith.constant 1 : index
    %c1_35 = arith.constant 1 : index
    %c0_36 = arith.constant 0 : index
    %38 = vector.load %arg8[%c1_34, %c1_35, %c0_36] : memref<10x10x128xbf16, #tpu.memory_space<vmem>>, vector<8x8x128xbf16>
    %39 = vector.shape_cast %38 : vector<8x8x128xbf16> to vector<64x128xbf16>
    %c512 = arith.constant 512 : index
    %c0_37 = arith.constant 0 : index
    %40 = vector.load %arg2[%c512, %c0_37] : memref<1152x128xbf16, #tpu.memory_space<vmem>>, vector<128x128xbf16>
    %cst_38 = arith.constant dense<0.000000e+00> : vector<64x128xf32>
    %41 = tpu.matmul %39, %40, %cst_38 {dimension_numbers = #tpu.dot_dimension_numbers<[1], [0], [0], [1], [0, 0, 1, 1], [], []>} : vector<64x128xbf16>, vector<128x128xbf16>, vector<64x128xf32> -> vector<64x128xf32>
    %42 = arith.addf %37, %41 : vector<64x128xf32>
    %c1_39 = arith.constant 1 : index
    %c2_40 = arith.constant 2 : index
    %c0_41 = arith.constant 0 : index
    %43 = vector.load %arg8[%c1_39, %c2_40, %c0_41] : memref<10x10x128xbf16, #tpu.memory_space<vmem>>, vector<8x8x128xbf16>
    %44 = vector.shape_cast %43 : vector<8x8x128xbf16> to vector<64x128xbf16>
    %c640 = arith.constant 640 : index
    %c0_42 = arith.constant 0 : index
    %45 = vector.load %arg2[%c640, %c0_42] : memref<1152x128xbf16, #tpu.memory_space<vmem>>, vector<128x128xbf16>
    %cst_43 = arith.constant dense<0.000000e+00> : vector<64x128xf32>
    %46 = tpu.matmul %44, %45, %cst_43 {dimension_numbers = #tpu.dot_dimension_numbers<[1], [0], [0], [1], [0, 0, 1, 1], [], []>} : vector<64x128xbf16>, vector<128x128xbf16>, vector<64x128xf32> -> vector<64x128xf32>
    %47 = arith.addf %42, %46 : vector<64x128xf32>
    %c2_44 = arith.constant 2 : index
    %c0_45 = arith.constant 0 : index
    %c0_46 = arith.constant 0 : index
    %48 = vector.load %arg8[%c2_44, %c0_45, %c0_46] : memref<10x10x128xbf16, #tpu.memory_space<vmem>>, vector<8x8x128xbf16>
    %49 = vector.shape_cast %48 : vector<8x8x128xbf16> to vector<64x128xbf16>
    %c768 = arith.constant 768 : index
    %c0_47 = arith.constant 0 : index
    %50 = vector.load %arg2[%c768, %c0_47] : memref<1152x128xbf16, #tpu.memory_space<vmem>>, vector<128x128xbf16>
    %cst_48 = arith.constant dense<0.000000e+00> : vector<64x128xf32>
    %51 = tpu.matmul %49, %50, %cst_48 {dimension_numbers = #tpu.dot_dimension_numbers<[1], [0], [0], [1], [0, 0, 1, 1], [], []>} : vector<64x128xbf16>, vector<128x128xbf16>, vector<64x128xf32> -> vector<64x128xf32>
    %52 = arith.addf %47, %51 : vector<64x128xf32>
    %c2_49 = arith.constant 2 : index
    %c1_50 = arith.constant 1 : index
    %c0_51 = arith.constant 0 : index
    %53 = vector.load %arg8[%c2_49, %c1_50, %c0_51] : memref<10x10x128xbf16, #tpu.memory_space<vmem>>, vector<8x8x128xbf16>
    %54 = vector.shape_cast %53 : vector<8x8x128xbf16> to vector<64x128xbf16>
    %c896 = arith.constant 896 : index
    %c0_52 = arith.constant 0 : index
    %55 = vector.load %arg2[%c896, %c0_52] : memref<1152x128xbf16, #tpu.memory_space<vmem>>, vector<128x128xbf16>
    %cst_53 = arith.constant dense<0.000000e+00> : vector<64x128xf32>
    %56 = tpu.matmul %54, %55, %cst_53 {dimension_numbers = #tpu.dot_dimension_numbers<[1], [0], [0], [1], [0, 0, 1, 1], [], []>} : vector<64x128xbf16>, vector<128x128xbf16>, vector<64x128xf32> -> vector<64x128xf32>
    %57 = arith.addf %52, %56 : vector<64x128xf32>
    %c2_54 = arith.constant 2 : index
    %c2_55 = arith.constant 2 : index
    %c0_56 = arith.constant 0 : index
    %58 = vector.load %arg8[%c2_54, %c2_55, %c0_56] : memref<10x10x128xbf16, #tpu.memory_space<vmem>>, vector<8x8x128xbf16>
    %59 = vector.shape_cast %58 : vector<8x8x128xbf16> to vector<64x128xbf16>
    %c1024 = arith.constant 1024 : index
    %c0_57 = arith.constant 0 : index
    %60 = vector.load %arg2[%c1024, %c0_57] : memref<1152x128xbf16, #tpu.memory_space<vmem>>, vector<128x128xbf16>
    %cst_58 = arith.constant dense<0.000000e+00> : vector<64x128xf32>
    %61 = tpu.matmul %59, %60, %cst_58 {dimension_numbers = #tpu.dot_dimension_numbers<[1], [0], [0], [1], [0, 0, 1, 1], [], []>} : vector<64x128xbf16>, vector<128x128xbf16>, vector<64x128xf32> -> vector<64x128xf32>
    %62 = arith.addf %57, %61 : vector<64x128xf32>
    %63 = vector.shape_cast %62 : vector<64x128xf32> to vector<1x64x128xf32>
    %64 = arith.truncf %63 : vector<1x64x128xf32> to vector<1x64x128xbf16>
    %c0_59 = arith.constant 0 : index
    %c0_60 = arith.constant 0 : index
    %c0_61 = arith.constant 0 : index
    %65 = vector.load %arg5[%c0_59, %c0_60, %c0_61] : memref<1x64x128xbf16, #tpu.memory_space<vmem>>, vector<1x64x128xbf16>
    tpu.vector_store %arg5[%c0_59, %c0_60, %c0_61], %64 {strides = array<i32>} : memref<1x64x128xbf16, #tpu.memory_space<vmem>>, vector<1x64x128xbf16>,
    %cst_62 = arith.constant dense<0.000000e+00> : vector<128xf32>
    %66 = vector.multi_reduction <add>, %62, %cst_62 [0] : vector<64x128xf32> to vector<128xf32>
    %67 = vector.shape_cast %66 : vector<128xf32> to vector<1x1x128xf32>
    %c0_63 = arith.constant 0 : index
    %c0_64 = arith.constant 0 : index
    %c0_65 = arith.constant 0 : index
    %68 = vector.load %arg6[%c0_63, %c0_64, %c0_65] : memref<1x1x128xf32, #tpu.memory_space<vmem>>, vector<1x1x128xf32>
    tpu.vector_store %arg6[%c0_63, %c0_64, %c0_65], %67 {strides = array<i32>} : memref<1x1x128xf32, #tpu.memory_space<vmem>>, vector<1x1x128xf32>,
    %69 = arith.mulf %62, %62 : vector<64x128xf32>
    %cst_66 = arith.constant dense<0.000000e+00> : vector<128xf32>
    %70 = vector.multi_reduction <add>, %69, %cst_66 [0] : vector<64x128xf32> to vector<128xf32>
    %71 = vector.shape_cast %70 : vector<128xf32> to vector<1x1x128xf32>
    %c0_67 = arith.constant 0 : index
    %c0_68 = arith.constant 0 : index
    %c0_69 = arith.constant 0 : index
    %72 = vector.load %arg7[%c0_67, %c0_68, %c0_69] : memref<1x1x128xf32, #tpu.memory_space<vmem>>, vector<1x1x128xf32>
    tpu.vector_store %arg7[%c0_67, %c0_68, %c0_69], %71 {strides = array<i32>} : memref<1x1x128xf32, #tpu.memory_space<vmem>>, vector<1x1x128xf32>,
    return
  }
  func.func @transform_0(%arg0: i32) -> (i32, i32, i32, i32) {
    %c0_i32 = arith.constant 0 : i32
    %c0_i32_0 = arith.constant 0 : i32
    %c0_i32_1 = arith.constant 0 : i32
    %c0_i32_2 = arith.constant 0 : i32
    return %arg0, %c0_i32, %c0_i32_0, %c0_i32_1 : i32, i32, i32, i32
  }
  func.func @transform_1(%arg0: i32) -> (i32, i32) {
    %c0_i32 = arith.constant 0 : i32
    %c0_i32_0 = arith.constant 0 : i32
    %c0_i32_1 = arith.constant 0 : i32
    return %c0_i32, %c0_i32_0 : i32, i32
  }
  func.func @transform_2(%arg0: i32) -> (i32, i32) {
    %c0_i32 = arith.constant 0 : i32
    %c0_i32_0 = arith.constant 0 : i32
    %c0_i32_1 = arith.constant 0 : i32
    return %c0_i32, %c0_i32_0 : i32, i32
  }
  func.func @transform_3(%arg0: i32) -> (i32, i32) {
    %c0_i32 = arith.constant 0 : i32
    %c0_i32_0 = arith.constant 0 : i32
    %c0_i32_1 = arith.constant 0 : i32
    return %c0_i32, %c0_i32_0 : i32, i32
  }
  func.func @transform_4(%arg0: i32) -> (i32, i32, i32) {
    %c0_i32 = arith.constant 0 : i32
    %c0_i32_0 = arith.constant 0 : i32
    %c0_i32_1 = arith.constant 0 : i32
    return %arg0, %c0_i32, %c0_i32_0 : i32, i32, i32
  }
  func.func @transform_5(%arg0: i32) -> (i32, i32, i32) {
    %c0_i32 = arith.constant 0 : i32
    %c0_i32_0 = arith.constant 0 : i32
    %c0_i32_1 = arith.constant 0 : i32
    return %arg0, %c0_i32, %c0_i32_0 : i32, i32, i32
  }
  func.func @transform_6(%arg0: i32) -> (i32, i32, i32) {
    %c0_i32 = arith.constant 0 : i32
    %c0_i32_0 = arith.constant 0 : i32
    %c0_i32_1 = arith.constant 0 : i32
    return %arg0, %c0_i32, %c0_i32_0 : i32, i32, i32
  }
}

module attributes {stable_mosaic.version = 11 : i64} {
  func.func @_bn2_add_relu_kernel(%arg0: i32, %arg1: memref<64x128xbf16, #tpu.memory_space<vmem>>, %arg2: memref<64x128xbf16, #tpu.memory_space<vmem>>, %arg3: memref<1x128xf32, #tpu.memory_space<vmem>>, %arg4: memref<1x128xf32, #tpu.memory_space<vmem>>, %arg5: memref<1x128xf32, #tpu.memory_space<vmem>>, %arg6: memref<1x128xf32, #tpu.memory_space<vmem>>, %arg7: memref<64x128xf32, #tpu.memory_space<vmem>>) attributes {dimension_semantics = [#tpu.dimension_semantics<parallel>], iteration_bounds = array<i64: 2>, scalar_prefetch = 0 : i64, scratch_operands = 0 : i64, tpu.core_type = #tpu.core_type<tc>, window_params = [{transform_indices = @transform_0, window_bounds = array<i64: 64, 128>}, {transform_indices = @transform_1, window_bounds = array<i64: 64, 128>}, {pipeline_mode = #tpu.pipeline_mode<synchronous>, transform_indices = @transform_2, window_bounds = array<i64: 1, 128>}, {pipeline_mode = #tpu.pipeline_mode<synchronous>, transform_indices = @transform_3, window_bounds = array<i64: 1, 128>}, {pipeline_mode = #tpu.pipeline_mode<synchronous>, transform_indices = @transform_4, window_bounds = array<i64: 1, 128>}, {pipeline_mode = #tpu.pipeline_mode<synchronous>, transform_indices = @transform_5, window_bounds = array<i64: 1, 128>}, {transform_indices = @transform_6, window_bounds = array<i64: 64, 128>}]} {
    %c0 = arith.constant 0 : index
    %c0_0 = arith.constant 0 : index
    %0 = vector.load %arg1[%c0, %c0_0] : memref<64x128xbf16, #tpu.memory_space<vmem>>, vector<64x128xbf16>
    %1 = arith.extf %0 : vector<64x128xbf16> to vector<64x128xf32>
    %c0_1 = arith.constant 0 : index
    %c0_2 = arith.constant 0 : index
    %2 = vector.load %arg3[%c0_1, %c0_2] : memref<1x128xf32, #tpu.memory_space<vmem>>, vector<1x128xf32>
    %3 = vector.broadcast %2 : vector<1x128xf32> to vector<64x128xf32>
    %4 = arith.mulf %1, %3 : vector<64x128xf32>
    %c0_3 = arith.constant 0 : index
    %c0_4 = arith.constant 0 : index
    %5 = vector.load %arg4[%c0_3, %c0_4] : memref<1x128xf32, #tpu.memory_space<vmem>>, vector<1x128xf32>
    %6 = vector.broadcast %5 : vector<1x128xf32> to vector<64x128xf32>
    %7 = arith.addf %4, %6 : vector<64x128xf32>
    %c0_5 = arith.constant 0 : index
    %c0_6 = arith.constant 0 : index
    %8 = vector.load %arg2[%c0_5, %c0_6] : memref<64x128xbf16, #tpu.memory_space<vmem>>, vector<64x128xbf16>
    %9 = arith.extf %8 : vector<64x128xbf16> to vector<64x128xf32>
    %c0_7 = arith.constant 0 : index
    %c0_8 = arith.constant 0 : index
    %10 = vector.load %arg5[%c0_7, %c0_8] : memref<1x128xf32, #tpu.memory_space<vmem>>, vector<1x128xf32>
    %11 = vector.broadcast %10 : vector<1x128xf32> to vector<64x128xf32>
    %12 = arith.mulf %9, %11 : vector<64x128xf32>
    %c0_9 = arith.constant 0 : index
    %c0_10 = arith.constant 0 : index
    %13 = vector.load %arg6[%c0_9, %c0_10] : memref<1x128xf32, #tpu.memory_space<vmem>>, vector<1x128xf32>
    %14 = vector.broadcast %13 : vector<1x128xf32> to vector<64x128xf32>
    %15 = arith.addf %12, %14 : vector<64x128xf32>
    %16 = arith.addf %7, %15 : vector<64x128xf32>
    %cst = arith.constant 0.000000e+00 : f32
    %17 = vector.broadcast %cst : f32 to vector<64x128xf32>
    %18 = arith.maximumf %16, %17 : vector<64x128xf32>
    %c0_11 = arith.constant 0 : index
    %c0_12 = arith.constant 0 : index
    %19 = vector.load %arg7[%c0_11, %c0_12] : memref<64x128xf32, #tpu.memory_space<vmem>>, vector<64x128xf32>
    tpu.vector_store %arg7[%c0_11, %c0_12], %18 {strides = array<i32>} : memref<64x128xf32, #tpu.memory_space<vmem>>, vector<64x128xf32>,
    return
  }
  func.func @transform_0(%arg0: i32) -> (i32, i32) {
    %c0_i32 = arith.constant 0 : i32
    %c0_i32_0 = arith.constant 0 : i32
    return %arg0, %c0_i32 : i32, i32
  }
  func.func @transform_1(%arg0: i32) -> (i32, i32) {
    %c0_i32 = arith.constant 0 : i32
    %c0_i32_0 = arith.constant 0 : i32
    return %arg0, %c0_i32 : i32, i32
  }
  func.func @transform_2(%arg0: i32) -> (i32, i32) {
    %c0_i32 = arith.constant 0 : i32
    %c0_i32_0 = arith.constant 0 : i32
    %c0_i32_1 = arith.constant 0 : i32
    return %c0_i32, %c0_i32_0 : i32, i32
  }
  func.func @transform_3(%arg0: i32) -> (i32, i32) {
    %c0_i32 = arith.constant 0 : i32
    %c0_i32_0 = arith.constant 0 : i32
    %c0_i32_1 = arith.constant 0 : i32
    return %c0_i32, %c0_i32_0 : i32, i32
  }
  func.func @transform_4(%arg0: i32) -> (i32, i32) {
    %c0_i32 = arith.constant 0 : i32
    %c0_i32_0 = arith.constant 0 : i32
    %c0_i32_1 = arith.constant 0 : i32
    return %c0_i32, %c0_i32_0 : i32, i32
  }
  func.func @transform_5(%arg0: i32) -> (i32, i32) {
    %c0_i32 = arith.constant 0 : i32
    %c0_i32_0 = arith.constant 0 : i32
    %c0_i32_1 = arith.constant 0 : i32
    return %c0_i32, %c0_i32_0 : i32, i32
  }
  func.func @transform_6(%arg0: i32) -> (i32, i32) {
    %c0_i32 = arith.constant 0 : i32
    %c0_i32_0 = arith.constant 0 : i32
    return %arg0, %c0_i32 : i32, i32
  }
}

</mosaic_0001>

<bundles_post_ra>
// kernel: basic_block_forward.5
= control target key start
LH: loop header
LB: loop body
LE: loop exit
PB: predicated region body
PF: predicated region fallthrough
CT: control target
= control target key end

     0   :  { %s555_s21 = smov 0   ;;  %s653_s0 = inlined_call_operand.vmem [shape: bf16[128,128], index: 0, kind: input, shape index: {}]   ;;  %s654_s1 = inlined_call_operand.vmem [shape: bf16[128,128], index: 1, kind: input, shape index: {}]   ;;  %s655_s2 = inlined_call_operand.vmem [shape: f32[1,128], index: 2, kind: input, shape index: {}]   ;;  %s656_s3 = inlined_call_operand.vmem [shape: f32[1,128], index: 3, kind: input, shape index: {}]   ;;  %s657_s4 = inlined_call_operand.vmem [shape: f32[1,128], index: 4, kind: input, shape index: {}]   ;;  %s658_s5 = inlined_call_operand.vmem [shape: f32[1,128], index: 5, kind: input, shape index: {}]   ;;  %s659_s6 = inlined_call_operand.vmem [shape: f32[128,128], index: 6, kind: output, shape index: {}]  }
   0x1 LB: > { %s449_s22 = sadd.s32 4294967295, %s518_s21   ;;  %p453_p0 = scmp.ge.s32.totalorder %s518_s21, 1  ;;  %s518_s21 = sphi %s555_s21, %s16_s21  }
   0x2   : > { %p224_p1 = scmp.lt.s32.totalorder %s518_s21, 3 }
   0x4   : > { %p225_p2 = pnand %p453_p0, %p224_p1 }
   0x5   : > { %s454_s23 = sshll.u32 (!%p225_p2), %s449_s22, 3 }
   0x6   : > { %228 = sbr.rel (%p225_p2) target bundleno = 37 (0x25), region = 44  ;;  %p260_p3 = scmp.lt.s32.totalorder (!%p225_p2), %s454_s23, 15 }
   0xb   : > { %s661_s23 = smov (!%p260_p3, %s454_s23), 15  ;;  %v579_v0 = vld [vmem:[%s655_s2] ss:$0 sm:$0xff] }
   0xc   : > { %s455_s24 = sshll.u32 %s661_s23, 2  ;;  %v584_v1 = vld [vmem:[%s657_s4] ss:$0 sm:$0xff]  ;;  %s459_s15 = sshll.u32 %s661_s23, 3 }
   0xd   : > { %s569_s27 = scalar_lea.vmem %s653_s0, %s455_s24  ;;  %s574_s30 = scalar_lea.vmem %s654_s1, %s455_s24  ;;  %v592_v6 = vld [vmem:[%s656_s3] ss:$0 sm:$0xff] }
   0xe   : > { %v463_v2 = vld [vmem:[%s569_s27] sm:$0xff]   ;;  %v494_v4 = vld [vmem:[%s569_s27 + $0x8] sm:$0xff]   ;;  %v495_v24 = vld [vmem:[%s569_s27 + $0x10] sm:$0xff]   ;;  %s622_s18 = scalar_lea.vmem %s659_s6, %s459_s15 }
   0xf   : > { %v479_v3 = vld [vmem:[%s574_s30] sm:$0xff]   ;;  %v464_v5 = vunpack.c.l.bf16 %v463_v2  ;;  %v465_v9 = vunpack.c.h.bf16 %v463_v2  ;;  %v497_v11 = vld [vmem:[%s574_s30 + $0x8] sm:$0xff]   ;;  %v468_v12 = vunpack.c.l.bf16 %v494_v4  ;;  %v469_v14 = vunpack.c.h.bf16 %v494_v4  ;;  %v498_v25 = vld [vmem:[%s574_s30 + $0x10] sm:$0xff]  }
  0x10   : > { %v480_v7 = vunpack.c.l.bf16 %v479_v3  ;;  %v597_v8 = vld [vmem:[%s658_s5] ss:$0 sm:$0xff]  ;;  %v481_v10 = vunpack.c.h.bf16 %v479_v3  ;;  %v484_v13 = vunpack.c.l.bf16 %v497_v11  ;;  %v485_v15 = vunpack.c.h.bf16 %v497_v11  ;;  %v496_v42 = vld [vmem:[%s569_s27 + $0x18] sm:$0xff]  }
  0x11   : > { %v297_v16 = vmul.f32 %v579_v0, %v464_v5  ;;  %v298_v18 = vmul.f32 %v579_v0, %v465_v9  ;;  %v299_v20 = vmul.f32 %v579_v0, %v468_v12  ;;  %v300_v22 = vmul.f32 %v579_v0, %v469_v14  ;;  %v499_v43 = vld [vmem:[%s574_s30 + $0x18] sm:$0xff]  }
  0x12   : > { %v337_v17 = vmul.f32 %v584_v1, %v480_v7  ;;  %v338_v19 = vmul.f32 %v584_v1, %v481_v10  ;;  %v339_v21 = vmul.f32 %v584_v1, %v484_v13  ;;  %v340_v23 = vmul.f32 %v584_v1, %v485_v15 }
  0x13   : > { %v309_v26 = vadd.f32 %v592_v6, %v297_v16  ;;  %v310_v28 = vadd.f32 %v592_v6, %v298_v18  ;;  %v311_v30 = vadd.f32 %v592_v6, %v299_v20  ;;  %v312_v32 = vadd.f32 %v592_v6, %v300_v22 }
  0x14   : > { %v349_v27 = vadd.f32 %v597_v8, %v337_v17  ;;  %v350_v29 = vadd.f32 %v597_v8, %v338_v19  ;;  %v351_v31 = vadd.f32 %v597_v8, %v339_v21  ;;  %v352_v33 = vadd.f32 %v597_v8, %v340_v23 }
  0x15   : > { %v472_v36 = vunpack.c.l.bf16 %v495_v24  ;;  %v488_v37 = vunpack.c.l.bf16 %v498_v25  ;;  %v473_v40 = vunpack.c.h.bf16 %v495_v24  ;;  %v489_v41 = vunpack.c.h.bf16 %v498_v25 }
  0x16   : > { %v357_v34 = vadd.f32 %v349_v27, %v309_v26  ;;  %v358_v35 = vadd.f32 %v350_v29, %v310_v28  ;;  %v359_v38 = vadd.f32 %v351_v31, %v311_v30  ;;  %v360_v39 = vadd.f32 %v352_v33, %v312_v32 }
  0x17   : > { %v301_v46 = vmul.f32 %v579_v0, %v472_v36  ;;  %v341_v47 = vmul.f32 %v584_v1, %v488_v37  ;;  %v302_v50 = vmul.f32 %v579_v0, %v473_v40  ;;  %v342_v51 = vmul.f32 %v584_v1, %v489_v41 }
  0x18   : > { %v365_v44 = vmax.f32 %v357_v34, 0.0  ;;  %v366_v45 = vmax.f32 %v358_v35, 0.0  ;;  %v367_v48 = vmax.f32 %v359_v38, 0.0  ;;  %v368_v49 = vmax.f32 %v360_v39, 0.0 }
  0x19   : > { %v313_v52 = vadd.f32 %v592_v6, %v301_v46  ;;  %v353_v53 = vadd.f32 %v597_v8, %v341_v47  ;;  %v476_v54 = vunpack.c.l.bf16 %v496_v42  ;;  %v492_v55 = vunpack.c.l.bf16 %v499_v43 }
  0x1a   : > { %373 = vst [vmem:[%s622_s18] sm:$0xff] %v365_v44  ;;  %v314_v56 = vadd.f32 %v592_v6, %v302_v50  ;;  %v354_v57 = vadd.f32 %v597_v8, %v342_v51  ;;  %v477_v58 = vunpack.c.h.bf16 %v496_v42  ;;  %v493_v59 = vunpack.c.h.bf16 %v499_v43 }
  0x1b   : > { %374 = vst [vmem:[%s622_s18 + $0x8] sm:$0xff] %v366_v45  ;;  %v361_v60 = vadd.f32 %v353_v53, %v313_v52  ;;  %v303_v61 = vmul.f32 %v579_v0, %v476_v54  ;;  %v343_v62 = vmul.f32 %v584_v1, %v492_v55 }
  0x1c   : > { %375 = vst [vmem:[%s622_s18 + $0x10] sm:$0xff] %v367_v48  ;;  %v362_v63 = vadd.f32 %v354_v57, %v314_v56  ;;  %v304_v2 = vmul.f32 %v579_v0, %v477_v58  ;;  %v344_v3 = vmul.f32 %v584_v1, %v493_v59 }
  0x1d   : > { %376 = vst [vmem:[%s622_s18 + $0x18] sm:$0xff] %v368_v49  ;;  %v369_v4 = vmax.f32 %v361_v60, 0.0  ;;  %v315_v5 = vadd.f32 %v592_v6, %v303_v61  ;;  %v355_v7 = vadd.f32 %v597_v8, %v343_v62 }
  0x1e   : > { %v370_v9 = vmax.f32 %v362_v63, 0.0  ;;  %v316_v10 = vadd.f32 %v592_v6, %v304_v2  ;;  %v356_v11 = vadd.f32 %v597_v8, %v344_v3 }
  0x1f   : > { %377 = vst [vmem:[%s622_s18 + $0x20] sm:$0xff] %v369_v4  ;;  %v363_v12 = vadd.f32 %v355_v7, %v315_v5 }
  0x20   : > { %378 = vst [vmem:[%s622_s18 + $0x28] sm:$0xff] %v370_v9  ;;  %v364_v13 = vadd.f32 %v356_v11, %v316_v10 }
  0x21   : > { %v371_v14 = vmax.f32 %v363_v12, 0.0 }
  0x22   : > { %v372_v15 = vmax.f32 %v364_v13, 0.0 }
  0x23   : > { %379 = vst [vmem:[%s622_s18 + $0x30] sm:$0xff] %v371_v14 }
  0x24   : > { %380 = vst [vmem:[%s622_s18 + $0x38] sm:$0xff] %v372_v15 }
  0x25 PF: > { %s16_s21 = sadd.s32 1, %s518_s21  }
  0x26   : > { %p13_p4 = scmp.ge.s32.totalorder %s16_s21, 4  }
  0x28   :  { %15 = sbr.rel (!%p13_p4) target bundleno = 1 (0x1), region = 77 }

// kernel: basic_block_forward.3
= control target key start
LH: loop header
LB: loop body
LE: loop exit
PB: predicated region body
PF: predicated region fallthrough
CT: control target
= control target key end

     0   :  { %s3051_s27 = smov 0   ;;  %s3536_s0 = inlined_call_operand.vmem [shape: bf16[2,36,9,128], index: 0, kind: input, shape index: {}]   ;;  %s3537_s1 = inlined_call_operand.vmem [shape: bf16[1152,128], index: 1, kind: input, shape index: {}]   ;;  %s3538_s2 = inlined_call_operand.vmem [shape: bf16[128,128], index: 2, kind: input, shape index: {}]   ;;  %s3539_s3 = inlined_call_operand.vmem [shape: bf16[2,8,8,128], index: 3, kind: output, shape index: {0}]   ;;  %s3540_s4 = inlined_call_operand.vmem [shape: f32[2,1,128], index: 4, kind: output, shape index: {1}]   ;;  %s3541_s5 = inlined_call_operand.vmem [shape: f32[2,1,128], index: 5, kind: output, shape index: {2}]   ;;  %s3542_s6 = inlined_call_operand.vmem [shape: bf16[2,64,128], index: 6, kind: output, shape index: {3}]   ;;  %s3543_s7 = inlined_call_operand.vmem [shape: f32[2,1,128], index: 7, kind: output, shape index: {4}]   ;;  %s3544_s8 = inlined_call_operand.vmem [shape: f32[2,1,128], index: 8, kind: output, shape index: {5}]  }
   0x1 LB: > { %s2293_s28 = sadd.s32 4294967295, %s3004_s27   ;;  %p2297_p0 = scmp.ge.s32.totalorder %s3004_s27, 1  ;;  %s3004_s27 = sphi %s3051_s27, %s19_s27  }
   0x2   : > { %p273_p1 = scmp.lt.s32.totalorder %s3004_s27, 3 }
   0x4   : > { %p274_p2 = pnand %p2297_p0, %p273_p1 }
   0x5   : > { %p324_p3 = scmp.lt.s32.totalorder (!%p274_p2), %s2293_s28, 1 }
   0x6   : > { %277 = sbr.rel (%p274_p2) target bundleno = 352 (0x160), region = 32 }
   0xb   : > { %v2842_v0 = vld [vmem:[%s3537_s1 + $0x78] sm:$0xff]  ;;  %v2841_v2 = vld [vmem:[%s3537_s1 + $0x70] sm:$0xff]  ;;  %v2840_v4 = vld [vmem:[%s3537_s1 + $0x68] sm:$0xff]  ;;  %s3548_s28 = smov (!%p324_p3, %s2293_s28), 1  ;;  %vm618_vm0 = vsmask.f32 3328 }
   0xc   : > { %v2830_v1 = vld [vmem:[%s3537_s1 + $0x38] sm:$0xff]  ;;  %2973 = vmatpush.bf16.msra.mxu2 %v2842_v0  ;;  %v2829_v3 = vld [vmem:[%s3537_s1 + $0x30] sm:$0xff]  ;;  %472 = vmatpush.bf16.msra.mxu0 %v2842_v0  ;;  %v2828_v5 = vld [vmem:[%s3537_s1 + $0x28] sm:$0xff]  ;;  %s2989_s11 = smul.u32 288, %s3548_s28  ;;  %vm619_vm1 = vsmask.f32 7440  ;;  %s347_s26 = scalar_lea.vmem %s3543_s7, %s3548_s28 }
   0xd   : > { %573 = vmatpush.bf16.msra.mxu1 %v2830_v1  ;;  %2981 = vmatpush.bf16.msra.mxu3 %v2830_v1  ;;  %v2839_v6 = vld [vmem:[%s3537_s1 + $0x60] sm:$0xff]  ;;  %v2838_v8 = vld [vmem:[%s3537_s1 + $0x58] sm:$0xff]  ;;  %v2837_v10 = vld [vmem:[%s3537_s1 + $0x50] sm:$0xff]  ;;  %s350_s9 = scalar_lea.vmem %s3544_s8, %s3548_s28  ;;  %s336_s12 = scalar_lea.vmem %s3540_s4, %s3548_s28 }
   0xe   : > { %v2827_v7 = vld [vmem:[%s3537_s1 + $0x20] sm:$0xff]  ;;  %v2826_v9 = vld [vmem:[%s3537_s1 + $0x18] sm:$0xff]  ;;  %v2825_v11 = vld [vmem:[%s3537_s1 + $0x10] sm:$0xff]  ;;  %s3111_s18 = scalar_lea.vmem %s3536_s0, %s2989_s11  ;;  %s339_s15 = scalar_lea.vmem %s3541_s5, %s3548_s28 }
   0xf   : > { %v2836_v12 = vld [vmem:[%s3537_s1 + $0x48] sm:$0xff]  ;;  %v2835_v14 = vld [vmem:[%s3537_s1 + $0x40] sm:$0xff]  ;;  %v2833_v17 = vld [vmem:[%s3111_s18 + $0x6c] sm:$0xf0] }
  0x10   : > { %2974 = vmatpush.bf16.msra.mxu2 %v2841_v2  ;;  %473 = vmatpush.bf16.msra.mxu0 %v2841_v2  ;;  %v2824_v13 = vld [vmem:[%s3537_s1 + $0x8] sm:$0xff]  ;;  %v2823_v15 = vld [vmem:[%s3537_s1] sm:$0xff]  ;;  %v2850_v22 = vld [vmem:[%s3537_s1 + $0xb8] sm:$0xff] }
  0x11   : > { %574 = vmatpush.bf16.msra.mxu1 %v2829_v3  ;;  %2982 = vmatpush.bf16.msra.mxu3 %v2829_v3  ;;  %v2321_v16 = vld [vmem:[%s3111_s18 + $0x68] sm:$0xf]  ;;  %v2361_v18 = vld [vmem:[%s3111_s18] sm:$0xf]  ;;  %v2862_v23 = vld [vmem:[%s3537_s1 + $0xf8] sm:$0xff] }
  0x12   : > { %v2819_v19 = vld [vmem:[%s3111_s18 + $0x4] sm:$0xf0]  ;;  %v2369_v20 = vld [vmem:[%s3111_s18 + $0x20] sm:$0xf]  ;;  %v2831_v25 = vld [vmem:[%s3111_s18 + $0x4c] sm:$0xf0]  ;;  %v2322_v26 = vor.u32 %v2833_v17, %v2321_v16 }
  0x13   : > { %v2821_v21 = vld [vmem:[%s3111_s18 + $0x24] sm:$0xf0]  ;;  %v2362_v27 = vor.u32 %v2819_v19, %v2361_v18  ;;  %v2882_v29 = vld [vmem:[%s3537_s1 + $0x178] sm:$0xff]  ;;  %v2849_v32 = vld [vmem:[%s3537_s1 + $0xb0] sm:$0xff] }
  0x14   : > { %2975 = vmatpush.bf16.msra.mxu2 %v2840_v4  ;;  %474 = vmatpush.bf16.msra.mxu0 %v2840_v4  ;;  %v2313_v24 = vld [vmem:[%s3111_s18 + $0x48] sm:$0xf]  ;;  %v2370_v28 = vor.u32 %v2821_v21, %v2369_v20  ;;  %v2874_v31 = vld [vmem:[%s3537_s1 + $0x138] sm:$0xff]  ;;  %v602_v33 = vld [vmem:[%s3111_s18] sm:$0xf] }
  0x15   : > { %575 = vmatpush.bf16.msra.mxu1 %v2828_v5  ;;  %2983 = vmatpush.bf16.msra.mxu3 %v2828_v5  ;;  %v2314_v30 = vor.u32 %v2831_v25, %v2313_v24  ;;  %v604_v34 = vld [vmem:[%s3111_s18 + $0x8] sm:$0xf]  ;;  %v2861_v35 = vld [vmem:[%s3537_s1 + $0xf0] sm:$0xff]  ;;  %v2553_v37 = vld [vmem:[%s3111_s18 + $0x98] sm:$0xf]  ;;  %v622_v39 = vshrl.u32 %v602_v33, 16 }
  0x16   : > { %v2551_v36 = vld [vmem:[%s3111_s18 + $0x90] sm:$0xf]  ;;  %v625_v40 = vshll.u32 %v602_v33, 16  ;;  %v636_v41 = vshrl.u32 %v604_v34, 16  ;;  %v639_v42 = vshll.u32 %v604_v34, 16  ;;  %v2848_v44 = vld [vmem:[%s3537_s1 + $0xa8] sm:$0xff]  ;;  %vm3207_vm2 = vmor %vm618_vm0, %vm619_vm1 }
  0x17   : > { %v2881_v38 = vld [vmem:[%s3537_s1 + $0x170] sm:$0xff]  ;;  %v1135_v45 = vshrl.u32 %v2551_v36, 16  ;;  %v1138_v46 = vshll.u32 %v2551_v36, 16  ;;  %v1149_v47 = vshrl.u32 %v2553_v37, 16  ;;  %v1152_v48 = vshll.u32 %v2553_v37, 16  ;;  %v2860_v49 = vld [vmem:[%s3537_s1 + $0xe8] sm:$0xff] }
  0x18   : > { %2976 = vmatpush.bf16.msra.mxu2 %v2839_v6  ;;  %475 = vmatpush.bf16.msra.mxu0 %v2839_v6  ;;  %v2873_v43 = vld [vmem:[%s3537_s1 + $0x130] sm:$0xff]  ;;  %v2880_v50 = vld [vmem:[%s3537_s1 + $0x168] sm:$0xff]  ;;  %v2847_v52 = vld [vmem:[%s3537_s1 + $0xa0] sm:$0xff]  ;;  %v624_v55 = vrot.slane %v622_v39, 4  ;;  %v627_v56 = vrot.slane %v625_v40, 5  ;;  %v638_v57 = vrot.slane %v636_v41, 4 }
  0x19   : > { %576 = vmatpush.bf16.msra.mxu1 %v2827_v7  ;;  %2984 = vmatpush.bf16.msra.mxu3 %v2827_v7  ;;  %v2872_v51 = vld [vmem:[%s3537_s1 + $0x128] sm:$0xff]  ;;  %v2859_v53 = vld [vmem:[%s3537_s1 + $0xe0] sm:$0xff]  ;;  %v641_v58 = vrot.slane %v639_v42, 5  ;;  %v2325_v60 = vld [vmem:[%s3111_s18 + $0x78] sm:$0xf]  ;;  %v1137_v63 = vrot.slane %v1135_v45, 4 }
  0x1a   : > { %v603_v54 = vld [vmem:[%s3111_s18 + $0x4] sm:$0x1]  ;;  %v2834_v61 = vld [vmem:[%s3111_s18 + $0x7c] sm:$0xf0]  ;;  %v605_v62 = vld [vmem:[%s3111_s18 + $0xc] sm:$0x1] }
  0x1b   : > { %v2879_v59 = vld [vmem:[%s3537_s1 + $0x160] sm:$0xff]  ;;  %v1140_v0 = vrot.slane %v1138_v46, 5  ;;  %v1151_v1 = vrot.slane %v1149_v47, 4  ;;  %v1154_v2 = vrot.slane %v1152_v48, 5  ;;  %v2365_v3 = vld [vmem:[%s3111_s18 + $0x10] sm:$0xf]  ;;  %v2326_v21 = vor.u32 %v2834_v61, %v2325_v60 }
  0x1c   : > { %2977 = vmatpush.bf16.msra.mxu2 %v2838_v8  ;;  %476 = vmatpush.bf16.msra.mxu0 %v2838_v8  ;;  %v2552_v4 = vld [vmem:[%s3111_s18 + $0x94] sm:$0x1]  ;;  %v2554_v5 = vld [vmem:[%s3111_s18 + $0x9c] sm:$0x1]  ;;  %v2820_v6 = vld [vmem:[%s3111_s18 + $0x14] sm:$0xf0] }
  0x1d   : > { %577 = vmatpush.bf16.msra.mxu1 %v2826_v9  ;;  %2985 = vmatpush.bf16.msra.mxu3 %v2826_v9  ;;  %v2373_v7 = vld [vmem:[%s3111_s18 + $0x30] sm:$0xf]  ;;  %v2822_v8 = vld [vmem:[%s3111_s18 + $0x34] sm:$0xf0]  ;;  %v1141_v17 = vor.u32 %v1140_v0, %v1137_v63  ;;  %v1144_v18 = vshll.u32 %v2552_v4, 16  ;;  %v1155_v19 = vor.u32 %v1154_v2, %v1151_v1  ;;  %v1158_v20 = vshll.u32 %v2554_v5, 16 }
  0x1e   : > { %v2317_v9 = vld [vmem:[%s3111_s18 + $0x58] sm:$0xf]  ;;  %v606_v39 = vld [vmem:[%s3111_s18 + $0x10] sm:$0xf]  ;;  %v2844_v46 = vld [vmem:[%s3537_s1 + $0x88] sm:$0xff] }
  0x1f   : > { %v2846_v16 = vld [vmem:[%s3537_s1 + $0x98] sm:$0xff]  ;;  %v1142_v34 = vrot.slane %v1141_v17, 4  ;;  %v1156_v36 = vrot.slane %v1155_v19, 4  ;;  %v1160_v37 = vrot.slane %v1158_v20, 5  ;;  %v2857_v41 = vld [vmem:[%s3537_s1 + $0xd0] sm:$0xff]  ;;  %v2868_v60 = vld [vmem:[%s3537_s1 + $0x108] sm:$0xff] }
  0x20   : > { %2978 = vmatpush.bf16.msra.mxu2 %v2837_v10  ;;  %477 = vmatpush.bf16.msra.mxu0 %v2837_v10  ;;  %v2832_v10 = vld [vmem:[%s3111_s18 + $0x5c] sm:$0xf0]  ;;  %v2878_v24 = vld [vmem:[%s3537_s1 + $0x158] sm:$0xff]  ;;  %v2869_v45 = vld [vmem:[%s3537_s1 + $0x110] sm:$0xff] }
  0x21   : > { %578 = vmatpush.bf16.msra.mxu1 %v2825_v11  ;;  %2986 = vmatpush.bf16.msra.mxu3 %v2825_v11  ;;  %v628_v11 = vor.u32 %v627_v56, %v624_v55  ;;  %v2318_v25 = vor.u32 %v2832_v10, %v2317_v9  ;;  %v608_v40 = vld [vmem:[%s3111_s18 + $0x18] sm:$0xf]  ;;  %v2876_v55 = vld [vmem:[%s3537_s1 + $0x148] sm:$0xff]  ;;  %v2843_v61 = vld [vmem:[%s3537_s1 + $0x80] sm:$0xff] }
  0x22   : > { %v2875_v63 = vld [vmem:[%s3537_s1 + $0x140] sm:$0xff]  ;;  %v2851_v2 = vld [vmem:[%s3111_s18 + $0x94] sm:$0xf0]  ;;  %v2558_v20 = vld [vmem:[%s3111_s18 + $0xac] sm:$0x1] }
  0x23   : > { %v2894_v5 = vld [vmem:[%s3537_s1 + $0x1b8] sm:$0xff] }
  0x24   : > { %2979 = vmatpush.bf16.msra.mxu2 %v2836_v12  ;;  %478 = vmatpush.bf16.msra.mxu0 %v2836_v12  ;;  %v631_v12 = vshll.u32 %v603_v54, 16  ;;  %v2856_v54 = vld [vmem:[%s3537_s1 + $0xc8] sm:$0xff]  ;;  %v2926_v19 = vld [vmem:[%s3538_s2 + $0x38] sm:$0xff] }
  0x25   : > { %579 = vmatpush.bf16.msra.mxu1 %v2824_v13  ;;  %2987 = vmatpush.bf16.msra.mxu3 %v2824_v13  ;;  %v642_v13 = vor.u32 %v641_v58, %v638_v57 }
  0x28   : > { %2980 = vmatpush.bf16.msra.mxu2 %v2835_v14  ;;  %479 = vmatpush.bf16.msra.mxu0 %v2835_v14  ;;  %v645_v14 = vshll.u32 %v605_v62, 16  ;;  %v3248_v62 = vld [vmem:[%s3111_s18 + $0x90] sm:$0xf] }
  0x29   : > { %580 = vmatpush.bf16.msra.mxu1 %v2823_v15  ;;  %2988 = vmatpush.bf16.msra.mxu3 %v2823_v15  ;;  %v2871_v15 = vld [vmem:[%s3537_s1 + $0x120] sm:$0xff] }
  0x2b   : > { %490 = vmatmul.bf16.vlgmr.msra.gmra.mxu2 %v2322_v26  ;;  %480 = vmatmul.bf16.vlgmr.msra.gmra.mxu0 %v2314_v30  ;;  %v2858_v26 = vld [vmem:[%s3537_s1 + $0xd8] sm:$0xff]  ;;  %v647_v30 = vrot.slane %v645_v14, 5 }
  0x2c   : > { %813 = vmatpush.bf16.msrb.mxu2 %v2850_v22  ;;  %581 = vmatmul.bf16.vlgmr.msra.gmra.mxu1 %v2362_v27  ;;  %v2366_v22 = vor.u32 %v2820_v6, %v2365_v3  ;;  %v629_v27 = vrot.slane %v628_v11, 4  ;;  %v607_v6 = vld [vmem:[%s3111_s18 + $0x14] sm:$0x1] }
  0x2d   : > { %947 = vmatpush.bf16.msrb.mxu3 %v2862_v23  ;;  %1326 = vmatpush.bf16.msrb.mxu1 %v2882_v29  ;;  %v2374_v23 = vor.u32 %v2822_v8, %v2373_v7  ;;  %v643_v29 = vrot.slane %v642_v13, 4  ;;  %v2855_v7 = vld [vmem:[%s3537_s1 + $0xc0] sm:$0xff]  ;;  %v609_v8 = vld [vmem:[%s3111_s18 + $0x1c] sm:$0x1] }
  0x2e   : > { %591 = vmatmul.bf16.vlgmr.msra.gmra.mxu3 %v2370_v28  ;;  %1081 = vmatpush.bf16.msrb.mxu0 %v2874_v31  ;;  %v633_v28 = vrot.slane %v631_v12, 5  ;;  %v2870_v31 = vld [vmem:[%s3537_s1 + $0x118] sm:$0xff]  ;;  %v2556_v13 = vld [vmem:[%s3111_s18 + $0xa4] sm:$0x1] }
  0x2f   : > { %v648_v47 = vsel %vm3207_vm2, %v643_v29, %v647_v30  ;;  %v1172_v30 = vshll.u32 %v2556_v13, 16 }
  0x30   : > { %814 = vmatpush.bf16.msrb.mxu2 %v2849_v32  ;;  %v2845_v32 = vld [vmem:[%s3537_s1 + $0x90] sm:$0xff]  ;;  %v634_v42 = vsel %vm3207_vm2, %v629_v27, %v633_v28  ;;  %v750_v1 = vunpack.c.l.b16 %v648_v47 }
  0x31   : > { %948 = vmatpush.bf16.msrb.mxu3 %v2861_v35  ;;  %1327 = vmatpush.bf16.msrb.mxu1 %v2881_v38  ;;  %v1146_v35 = vrot.slane %v1144_v18, 5  ;;  %v2877_v38 = vld [vmem:[%s3537_s1 + $0x150] sm:$0xff]  ;;  %v749_v0 = vunpack.c.l.b16 %v634_v42  ;;  %v2505_v18 = vld [vmem:[%s3111_s18 + $0xd8] sm:$0xf] }
  0x32   : > { %1082 = vmatpush.bf16.msrb.mxu0 %v2873_v43  ;;  %v2555_v43 = vld [vmem:[%s3111_s18 + $0xa0] sm:$0xf]  ;;  %v2559_v47 = vld [vmem:[%s3111_s18 + $0xb0] sm:$0xf] }
  0x33   : > { %v1147_v48 = vsel %vm3207_vm2, %v1142_v34, %v1146_v35  ;;  %v1163_v56 = vshrl.u32 %v2555_v43, 16  ;;  %v1166_v57 = vshll.u32 %v2555_v43, 16  ;;  %v757_v27 = vpack.c.b16 %v750_v1, %v749_v0  ;;  %v610_v43 = vld [vmem:[%s3111_s18 + $0x20] sm:$0xf] }
  0x34   : > { %815 = vmatpush.bf16.msrb.mxu2 %v2848_v44  ;;  %v2557_v44 = vld [vmem:[%s3111_s18 + $0xa8] sm:$0xf]  ;;  %v1262_v3 = vunpack.c.l.b16 %v1147_v48  ;;  %v2561_v48 = vld [vmem:[%s3111_s18 + $0xb8] sm:$0xf]  ;;  %v2891_v1 = vld [vmem:[%s3537_s1 + $0x1a0] sm:$0xff] }
  0x35   : > { %949 = vmatpush.bf16.msrb.mxu3 %v2860_v49  ;;  %1328 = vmatpush.bf16.msrb.mxu1 %v2880_v50  ;;  %v1161_v49 = vsel %vm3207_vm2, %v1156_v36, %v1160_v37  ;;  %v650_v50 = vshrl.u32 %v606_v39, 16  ;;  %v1177_v58 = vshrl.u32 %v2557_v44, 16  ;;  %v1165_v14 = vrot.slane %v1163_v56, 4 }
  0x36   : > { %1083 = vmatpush.bf16.msrb.mxu0 %v2872_v51  ;;  %v653_v51 = vshll.u32 %v606_v39, 16  ;;  %v1263_v4 = vunpack.c.l.b16 %v1161_v49  ;;  %v1186_v36 = vshll.u32 %v2558_v20, 16  ;;  %v2914_v39 = vld [vmem:[%s3537_s1 + $0x238] sm:$0xff]  ;;  %v681_v56 = vshll.u32 %v610_v43, 16 }
  0x37   : > { %v652_v9 = vrot.slane %v650_v50, 4  ;;  %v1208_v0 = vshll.u32 %v2561_v48, 16 }
  0x38   : > { %816 = vmatpush.bf16.msrb.mxu2 %v2847_v52  ;;  %v664_v52 = vshrl.u32 %v608_v40, 16  ;;  %v655_v10 = vrot.slane %v653_v51, 5  ;;  %v1270_v28 = vpack.c.b16 %v1263_v4, %v1262_v3 }
  0x39   : > { %950 = vmatpush.bf16.msrb.mxu3 %v2859_v53  ;;  %1329 = vmatpush.bf16.msrb.mxu1 %v2879_v59  ;;  %v667_v53 = vshll.u32 %v608_v40, 16  ;;  %v1180_v59 = vshll.u32 %v2557_v44, 16  ;;  %v2925_v40 = vld [vmem:[%s3538_s2 + $0x30] sm:$0xff]  ;;  %v612_v44 = vld [vmem:[%s3111_s18 + $0x28] sm:$0xf] }
  0x3a   : > { %1084 = vmatpush.bf16.msrb.mxu0 %v2871_v15  ;;  %v666_v11 = vrot.slane %v664_v52, 4  ;;  %v1168_v15 = vrot.slane %v1166_v57, 5  ;;  %v656_v29 = vor.u32 %v655_v10, %v652_v9  ;;  %v1188_v52 = vrot.slane %v1186_v36, 5  ;;  %v2912_v9 = vld [vmem:[%s3537_s1 + $0x228] sm:$0xff] }
  0x3b   : > { %495 = vmatmul.bf16.gmra.mxu2 %v2326_v21  ;;  %485 = vmatmul.bf16.gmra.mxu0 %v2318_v25  ;;  %v669_v12 = vrot.slane %v667_v53, 5  ;;  %v1182_v17 = vrot.slane %v1180_v59, 5  ;;  %v2867_v21 = vld [vmem:[%s3537_s1 + $0x100] sm:$0xff]  ;;  %v659_v25 = vshll.u32 %v607_v6, 16  ;;  %v2892_v53 = vld [vmem:[%s3537_s1 + $0x1a8] sm:$0xff]  ;;  %v692_v57 = vshrl.u32 %v612_v44, 16 }
  0x3c   : > { %817 = vmatpush.bf16.msrb.mxu2 %v2846_v16  ;;  %586 = vmatmul.bf16.gmra.mxu1 %v2366_v22  ;;  %v1179_v16 = vrot.slane %v1177_v58, 4  ;;  %v2450_v22 = vor.u32 %v2851_v2, %v3248_v62  ;;  %v1169_v34 = vor.u32 %v1168_v15, %v1165_v14  ;;  %v695_v58 = vshll.u32 %v612_v44, 16  ;;  %v2904_v59 = vld [vmem:[%s3537_s1 + $0x1e8] sm:$0xff]  ;;  %v2903_v6 = vld [vmem:[%s3537_s1 + $0x1e0] sm:$0xff]  ;;  %v2560_v15 = vld [vmem:[%s3111_s18 + $0xb4] sm:$0x1] }
  0x3d   : > { %1330 = vmatpush.bf16.msrb.mxu1 %v2878_v24  ;;  %951 = vmatpush.bf16.msrb.mxu3 %v2858_v26  ;;  %v2906_v24 = vld [vmem:[%s3537_s1 + $0x1f8] sm:$0xff]  ;;  %v673_v26 = vshll.u32 %v609_v8, 16  ;;  %v1194_v62 = vshll.u32 %v2559_v47, 16  ;;  %v613_v8 = vld [vmem:[%s3111_s18 + $0x2c] sm:$0x1]  ;;  %v2923_v14 = vld [vmem:[%s3538_s2 + $0x20] sm:$0xff] }
  0x3e   : > { %596 = vmatmul.bf16.gmra.mxu3 %v2374_v23  ;;  %1085 = vmatpush.bf16.msrb.mxu0 %v2870_v31  ;;  %v2863_v23 = vld [vmem:[%s3111_s18 + $0xdc] sm:$0xf0]  ;;  %v2893_v31 = vld [vmem:[%s3537_s1 + $0x1b0] sm:$0xff]  ;;  %v1183_v35 = vor.u32 %v1182_v17, %v1179_v16  ;;  %v1170_v50 = vrot.slane %v1169_v34, 4  ;;  %v697_v13 = vrot.slane %v695_v58, 5  ;;  %v1200_v34 = vshll.u32 %v2560_v15, 16 }
  0x3f   : > { %v2506_v37 = vor.u32 %v2863_v23, %v2505_v18  ;;  %v675_v42 = vrot.slane %v673_v26, 5  ;;  %v1196_v17 = vrot.slane %v1194_v62, 5  ;;  %v2852_v26 = vld [vmem:[%s3111_s18 + $0xa4] sm:$0xf0]  ;;  %v616_v58 = vld [vmem:[%s3111_s18 + $0x38] sm:$0xf] }
  0x40   : > { %818 = vmatpush.bf16.msrb.mxu2 %v2845_v32  ;;  %v670_v32 = vor.u32 %v669_v12, %v666_v11  ;;  %v1184_v51 = vrot.slane %v1183_v35, 4  ;;  %v683_v11 = vrot.slane %v681_v56, 5  ;;  %v694_v12 = vrot.slane %v692_v57, 4  ;;  %v2922_v35 = vld [vmem:[%s3538_s2 + $0x18] sm:$0xff]  ;;  %v614_v57 = vld [vmem:[%s3111_s18 + $0x30] sm:$0xf] }
  0x41   : > { %1331 = vmatpush.bf16.msrb.mxu1 %v2877_v38  ;;  %952 = vmatpush.bf16.msrb.mxu3 %v2857_v41  ;;  %v2905_v38 = vld [vmem:[%s3537_s1 + $0x1f0] sm:$0xff]  ;;  %v661_v41 = vrot.slane %v659_v25, 5  ;;  %v2562_v25 = vld [vmem:[%s3111_s18 + $0xbc] sm:$0x1]  ;;  %v2565_v62 = vld [vmem:[%s3111_s18 + $0xc8] sm:$0xf] }
  0x42   : > { %1086 = vmatpush.bf16.msrb.mxu0 %v2869_v45  ;;  %v657_v45 = vrot.slane %v656_v29, 4  ;;  %v671_v49 = vrot.slane %v670_v32, 4  ;;  %v2864_v29 = vld [vmem:[%s3111_s18 + $0xec] sm:$0xf0]  ;;  %v701_v32 = vshll.u32 %v613_v8, 16  ;;  %v698_v36 = vor.u32 %v697_v13, %v694_v12  ;;  %v2910_v56 = vld [vmem:[%s3537_s1 + $0x218] sm:$0xff] }
  0x43   : > { %v723_v8 = vshll.u32 %v616_v58, 16  ;;  %v1233_v12 = vshrl.u32 %v2565_v62, 16  ;;  %v1236_v13 = vshll.u32 %v2565_v62, 16  ;;  %v2457_v15 = vld [vmem:[%s3111_s18 + $0xb0] sm:$0xf] }
  0x44   : > { %819 = vmatpush.bf16.msrb.mxu2 %v2844_v46  ;;  %v1174_v46 = vrot.slane %v1172_v30, 5  ;;  %v662_v2 = vsel %vm3207_vm2, %v657_v45, %v661_v41  ;;  %v676_v3 = vsel %vm3207_vm2, %v671_v49, %v675_v42  ;;  %v2911_v41 = vld [vmem:[%s3537_s1 + $0x220] sm:$0xff]  ;;  %v703_v49 = vrot.slane %v701_v32, 5 }
  0x45   : > { %1332 = vmatpush.bf16.msrb.mxu1 %v2876_v55  ;;  %953 = vmatpush.bf16.msrb.mxu3 %v2856_v54  ;;  %v2924_v54 = vld [vmem:[%s3538_s2 + $0x28] sm:$0xff]  ;;  %v678_v55 = vshrl.u32 %v610_v43, 16  ;;  %v751_v20 = vunpack.c.l.b16 %v662_v2 }
  0x46   : > { %1087 = vmatpush.bf16.msrb.mxu0 %v2868_v60  ;;  %v2913_v60 = vld [vmem:[%s3537_s1 + $0x230] sm:$0xff]  ;;  %v1175_v4 = vsel %vm3207_vm2, %v1170_v50, %v1174_v46  ;;  %v1202_v50 = vrot.slane %v1200_v34, 5  ;;  %v1235_v34 = vrot.slane %v1233_v12, 4  ;;  %v2517_v12 = vld [vmem:[%s3111_s18 + $0x108] sm:$0xf] }
  0x47   : > { %v680_v10 = vrot.slane %v678_v55, 4  ;;  %v1264_v23 = vunpack.c.l.b16 %v1175_v4  ;;  %v2889_v46 = vld [vmem:[%s3537_s1 + $0x190] sm:$0xff] }
  0x48   : > { %820 = vmatpush.bf16.msrb.mxu2 %v2843_v61  ;;  %v1191_v61 = vshrl.u32 %v2559_v47, 16  ;;  %v2901_v55 = vld [vmem:[%s3537_s1 + $0x1d0] sm:$0xff] }
  0x49   : > { %1333 = vmatpush.bf16.msrb.mxu1 %v2875_v63  ;;  %954 = vmatpush.bf16.msrb.mxu3 %v2855_v7  ;;  %v1205_v63 = vshrl.u32 %v2561_v48, 16  ;;  %v611_v7 = vld [vmem:[%s3111_s18 + $0x24] sm:$0x1]  ;;  %v684_v30 = vor.u32 %v683_v11, %v680_v10  ;;  %v2909_v4 = vld [vmem:[%s3537_s1 + $0x210] sm:$0xff] }
  0x4a   : > { %1088 = vmatpush.bf16.msrb.mxu0 %v2867_v21  ;;  %v1193_v16 = vrot.slane %v1191_v61, 4  ;;  %v752_v21 = vunpack.c.l.b16 %v676_v3  ;;  %v2563_v61 = vld [vmem:[%s3111_s18 + $0xc0] sm:$0xf]  ;;  %v2900_v3 = vld [vmem:[%s3537_s1 + $0x1c8] sm:$0xff] }
  0x4b   : > { %821 = vmatmul.bf16.vlgmr.msrb.gmra.mxu2 %v757_v27  ;;  %v1207_v18 = vrot.slane %v1205_v63, 4  ;;  %v2509_v27 = vld [vmem:[%s3111_s18 + $0xe8] sm:$0xf]  ;;  %v685_v47 = vrot.slane %v684_v30, 4  ;;  %v2921_v63 = vld [vmem:[%s3538_s2 + $0x10] sm:$0xff]  ;;  %v1219_v10 = vshrl.u32 %v2563_v61, 16 }
  0x4c   : > { %1460 = vmatpush.bf16.msra.mxu2 %v2894_v5  ;;  %1334 = vmatmul.bf16.vlgmr.msrb.gmra.mxu1 %v1270_v28  ;;  %v1189_v5 = vsel %vm3207_vm2, %v1184_v51, %v1188_v52  ;;  %v2890_v28 = vld [vmem:[%s3537_s1 + $0x198] sm:$0xff]  ;;  %v758_v42 = vpack.c.b16 %v752_v21, %v751_v20  ;;  %v2510_v45 = vor.u32 %v2864_v29, %v2509_v27  ;;  %v699_v51 = vrot.slane %v698_v36, 4  ;;  %v615_v21 = vld [vmem:[%s3111_s18 + $0x34] sm:$0x1]  ;;  %v2919_v29 = vld [vmem:[%s3538_s2] sm:$0xff] }
  0x4d   : > { %2024 = vmatpush.bf16.msra.mxu1 %v2926_v19  ;;  %1594 = vmatpush.bf16.msra.mxu3 %v2906_v24  ;;  %v1210_v19 = vrot.slane %v1208_v0, 5  ;;  %v1265_v24 = vunpack.c.l.b16 %v1189_v5  ;;  %v706_v5 = vshrl.u32 %v614_v57, 16  ;;  %v1222_v11 = vshll.u32 %v2563_v61, 16  ;;  %v2564_v30 = vld [vmem:[%s3111_s18 + $0xc4] sm:$0x1] }
  0x4e   : > { %955 = vmatmul.bf16.vlgmr.msrb.gmra.mxu3 %v2450_v22  ;;  %1089 = vmatmul.bf16.vlgmr.msrb.gmra.mxu0 %v2506_v37  ;;  %v2453_v22 = vld [vmem:[%s3111_s18 + $0xa0] sm:$0xf]  ;;  %v1197_v37 = vor.u32 %v1196_v17, %v1193_v16  ;;  %v704_v0 = vsel %vm3207_vm2, %v699_v51, %v703_v49  ;;  %v2853_v16 = vld [vmem:[%s3111_s18 + $0xb4] sm:$0xf0]  ;;  %v2566_v36 = vld [vmem:[%s3111_s18 + $0xcc] sm:$0x1] }
  0x4f   : > { %1839 = vmatpush.bf16.msra.mxu0 %v2914_v39  ;;  %v1214_v39 = vshll.u32 %v2562_v25, 16  ;;  %v1271_v43 = vpack.c.b16 %v1265_v24, %v1264_v23  ;;  %v2454_v44 = vor.u32 %v2852_v26, %v2453_v22  ;;  %v617_v22 = vld [vmem:[%s3111_s18 + $0x3c] sm:$0x1]  ;;  %v2899_v23 = vld [vmem:[%s3537_s1 + $0x1c0] sm:$0xff]  ;;  %v2908_v24 = vld [vmem:[%s3537_s1 + $0x208] sm:$0xff]  ;;  %v708_v25 = vrot.slane %v706_v5, 4 }
  0x50   : > { %1461 = vmatpush.bf16.msra.mxu2 %v2893_v31  ;;  %v687_v31 = vshll.u32 %v611_v7, 16  ;;  %v1198_v52 = vrot.slane %v1197_v37, 4  ;;  %v720_v7 = vshrl.u32 %v616_v58, 16  ;;  %v1224_v32 = vrot.slane %v1222_v11, 5  ;;  %v2713_v61 = vld [vmem:[%s3111_s18 + $0x10] sm:$0xf] }
  0x51   : > { %2025 = vmatpush.bf16.msra.mxu1 %v2925_v40  ;;  %1595 = vmatpush.bf16.msra.mxu3 %v2905_v38  ;;  %v1211_v38 = vor.u32 %v1210_v19, %v1207_v18  ;;  %v2902_v40 = vld [vmem:[%s3537_s1 + $0x1d8] sm:$0xff]  ;;  %v754_v18 = vunpack.c.l.b16 %v704_v0  ;;  %v1665_v5 = vshll.u32 %v2713_v61, 16  ;;  %v2854_v11 = vld [vmem:[%s3111_s18 + $0xc4] sm:$0xf0] }
  0x52   : > { %v689_v48 = vrot.slane %v687_v31, 5  ;;  %v722_v27 = vrot.slane %v720_v7, 4  ;;  %v1221_v31 = vrot.slane %v1219_v10, 4  ;;  %v2461_v10 = vld [vmem:[%s3111_s18 + $0xc0] sm:$0xf] }
  0x53   : > { %1840 = vmatpush.bf16.msra.mxu0 %v2913_v60 }
  0x54   : > { %1462 = vmatpush.bf16.msra.mxu2 %v2892_v53  ;;  %v1212_v53 = vrot.slane %v1211_v38, 4  ;;  %v690_v60 = vsel %vm3207_vm2, %v685_v47, %v689_v48  ;;  %v2458_v38 = vor.u32 %v2853_v16, %v2457_v15  ;;  %v1225_v48 = vor.u32 %v1224_v32, %v1221_v31 }
  0x55   : > { %2026 = vmatpush.bf16.msra.mxu1 %v2924_v54  ;;  %1596 = vmatpush.bf16.msra.mxu3 %v2904_v59  ;;  %v1216_v54 = vrot.slane %v1214_v39, 5  ;;  %v2888_v59 = vld [vmem:[%s3537_s1 + $0x188] sm:$0xff]  ;;  %v753_v17 = vunpack.c.l.b16 %v690_v60 }
  0x56   : > { %v2711_v60 = vld [vmem:[%s3111_s18 + $0x8] sm:$0xf] }
  0x57   : > { %1841 = vmatpush.bf16.msra.mxu0 %v2912_v9  ;;  %v1217_v2 = vsel %vm3207_vm2, %v1212_v53, %v1216_v54  ;;  %v2920_v9 = vld [vmem:[%s3538_s2 + $0x8] sm:$0xff]  ;;  %v759_v37 = vpack.c.b16 %v754_v18, %v753_v17  ;;  %v1667_v17 = vrot.slane %v1665_v5, 5 }
  0x58   : > { %1463 = vmatpush.bf16.msra.mxu2 %v2891_v1  ;;  %v1203_v1 = vsel %vm3207_vm2, %v1198_v52, %v1202_v50  ;;  %v1267_v20 = vunpack.c.l.b16 %v1217_v2  ;;  %v1242_v50 = vshll.u32 %v2566_v36, 16  ;;  %v1648_v2 = vshrl.u32 %v2711_v60, 16 }
  0x59   : > { %2027 = vmatpush.bf16.msra.mxu1 %v2923_v14  ;;  %1597 = vmatpush.bf16.msra.mxu3 %v2903_v6  ;;  %v709_v6 = vshll.u32 %v614_v57, 16  ;;  %v2887_v14 = vld [vmem:[%s3537_s1 + $0x180] sm:$0xff]  ;;  %v1266_v19 = vunpack.c.l.b16 %v1203_v1  ;;  %v1226_v57 = vrot.slane %v1225_v48, 4 }
  0x5b   : > { %1842 = vmatpush.bf16.msra.mxu0 %v2911_v41  ;;  %826 = vmatmul.bf16.gmra.mxu2 %v758_v42  ;;  %v711_v26 = vrot.slane %v709_v6, 5  ;;  %v1272_v39 = vpack.c.b16 %v1267_v20, %v1266_v19  ;;  %v2865_v41 = vld [vmem:[%s3111_s18 + $0xfc] sm:$0xf0]  ;;  %v2712_v20 = vld [vmem:[%s3111_s18 + $0xc] sm:$0x1] }
  0x5c   : > { %1464 = vmatpush.bf16.msra.mxu2 %v2890_v28  ;;  %1339 = vmatmul.bf16.gmra.mxu1 %v1271_v43  ;;  %v725_v28 = vrot.slane %v723_v8, 5  ;;  %v2907_v42 = vld [vmem:[%s3537_s1 + $0x200] sm:$0xff] }
  0x5d   : > { %2028 = vmatpush.bf16.msra.mxu1 %v2922_v35  ;;  %1598 = vmatpush.bf16.msra.mxu3 %v2902_v40  ;;  %v1238_v35 = vrot.slane %v1236_v13, 5  ;;  %v2513_v40 = vld [vmem:[%s3111_s18 + $0xf8] sm:$0xf]  ;;  %v712_v43 = vor.u32 %v711_v26, %v708_v25  ;;  %v2866_v13 = vld [vmem:[%s3111_s18 + $0x10c] sm:$0xf0]  ;;  %v1657_v25 = vshll.u32 %v2712_v20, 16 }
  0x5e   : > { %960 = vmatmul.bf16.gmra.mxu3 %v2454_v44  ;;  %1094 = vmatmul.bf16.gmra.mxu0 %v2510_v45  ;;  %v715_v44 = vshll.u32 %v615_v21, 16  ;;  %v729_v45 = vshll.u32 %v617_v22, 16  ;;  %v726_v47 = vor.u32 %v725_v28, %v722_v27  ;;  %v2514_v51 = vor.u32 %v2865_v41, %v2513_v40  ;;  %v2714_v21 = vld [vmem:[%s3111_s18 + $0x14] sm:$0x1]  ;;  %v2715_v28 = vld [vmem:[%s3111_s18 + $0x18] sm:$0xf] }
  0x5f   : > { %1843 = vmatpush.bf16.msra.mxu0 %v2910_v56  ;;  %v1239_v49 = vor.u32 %v1238_v35, %v1235_v34  ;;  %v713_v52 = vrot.slane %v712_v43, 4  ;;  %v2462_v22 = vor.u32 %v2854_v11, %v2461_v10  ;;  %v1671_v27 = vshll.u32 %v2714_v21, 16  ;;  %v2883_v40 = vld [vmem:[%s3111_s18 + $0xc] sm:$0xf0]  ;;  %v2613_v11 = vld [vmem:[%s3111_s18 + $0x18] sm:$0xf] }
  0x60   : > { %1465 = vmatpush.bf16.msra.mxu2 %v2889_v46  ;;  %v1228_v46 = vshll.u32 %v2564_v30, 16  ;;  %v717_v53 = vrot.slane %v715_v44, 5  ;;  %v731_v54 = vrot.slane %v729_v45, 5  ;;  %v727_v56 = vrot.slane %v726_v47, 4  ;;  %v2665_v43 = vld [vmem:[%s3111_s18 + $0x50] sm:$0xf] }
  0x61   : > { %1599 = vmatpush.bf16.msra.mxu3 %v2901_v55  ;;  %2029 = vmatpush.bf16.msra.mxu1 %v2921_v63  ;;  %v1240_v58 = vrot.slane %v1239_v49, 4  ;;  %v1659_v31 = vrot.slane %v1657_v25, 5  ;;  %v1673_v34 = vrot.slane %v1671_v27, 5  ;;  %v1676_v35 = vshrl.u32 %v2715_v28, 16  ;;  %v2895_v44 = vld [vmem:[%s3111_s18 + $0x54] sm:$0xf0] }
  0x62   : > { %v1230_v55 = vrot.slane %v1228_v46, 5  ;;  %v718_v62 = vsel %vm3207_vm2, %v713_v52, %v717_v53  ;;  %v732_v63 = vsel %vm3207_vm2, %v727_v56, %v731_v54  ;;  %v1679_v36 = vshll.u32 %v2715_v28, 16  ;;  %v2769_v45 = vld [vmem:[%s3111_s18 + $0xd8] sm:$0xf]  ;;  %v2915_v46 = vld [vmem:[%s3111_s18 + $0xdc] sm:$0xf0] }
  0x63   : > { %1844 = vmatpush.bf16.msra.mxu0 %v2909_v4  ;;  %v1662_v4 = vshrl.u32 %v2713_v61, 16  ;;  %v755_v6 = vunpack.c.l.b16 %v718_v62  ;;  %v756_v7 = vunpack.c.l.b16 %v732_v63  ;;  %v1678_v47 = vrot.slane %v1676_v35, 4  ;;  %v2716_v53 = vld [vmem:[%s3111_s18 + $0x1c] sm:$0x1]  ;;  %v2718_v54 = vld [vmem:[%s3111_s18 + $0x24] sm:$0x1] }
  0x64   : > { %1466 = vmatpush.bf16.msra.mxu2 %v2888_v59  ;;  %v1244_v59 = vrot.slane %v1242_v50, 5  ;;  %v1231_v0 = vsel %vm3207_vm2, %v1226_v57, %v1230_v55  ;;  %v1681_v48 = vrot.slane %v1679_v36, 5  ;;  %v2666_v56 = vor.u32 %v2895_v44, %v2665_v43 }
  0x65   : > { %1600 = vmatpush.bf16.msra.mxu3 %v2900_v3  ;;  %2030 = vmatpush.bf16.msra.mxu1 %v2920_v9  ;;  %v1651_v3 = vshll.u32 %v2711_v60, 16  ;;  %v1268_v8 = vunpack.c.l.b16 %v1231_v0  ;;  %v1664_v16 = vrot.slane %v1662_v4, 4  ;;  %v760_v18 = vpack.c.b16 %v756_v7, %v755_v6  ;;  %v2721_v4 = vld [vmem:[%s3111_s18 + $0x30] sm:$0xf] }
  0x66   : > { %v1245_v1 = vsel %vm3207_vm2, %v1240_v58, %v1244_v59  ;;  %v2770_v57 = vor.u32 %v2915_v46, %v2769_v45  ;;  %v1682_v58 = vor.u32 %v1681_v48, %v1678_v47  ;;  %v1685_v59 = vshll.u32 %v2716_v53, 16  ;;  %v2617_v46 = vld [vmem:[%s3111_s18 + $0x28] sm:$0xf]  ;;  %v2885_v47 = vld [vmem:[%s3111_s18 + $0x2c] sm:$0xf0] }
  0x67   : > { %1845 = vmatpush.bf16.msra.mxu0 %v2908_v24  ;;  %v1269_v9 = vunpack.c.l.b16 %v1245_v1  ;;  %v1653_v15 = vrot.slane %v1651_v3, 5  ;;  %v1668_v26 = vor.u32 %v1667_v17, %v1664_v16  ;;  %v1699_v61 = vshll.u32 %v2718_v54, 16  ;;  %v2719_v3 = vld [vmem:[%s3111_s18 + $0x28] sm:$0xf]  ;;  %v2777_v48 = vld [vmem:[%s3111_s18 + $0xf8] sm:$0xf] }
  0x68   : > { %1467 = vmatpush.bf16.msra.mxu2 %v2887_v14  ;;  %v1650_v14 = vrot.slane %v1648_v2, 4  ;;  %v1683_v63 = vrot.slane %v1682_v58, 4  ;;  %v1687_v0 = vrot.slane %v1685_v59, 5  ;;  %v1704_v7 = vshrl.u32 %v2719_v3, 16 }
  0x69   : > { %1601 = vmatpush.bf16.msra.mxu3 %v2899_v23  ;;  %2031 = vmatpush.bf16.msra.mxu1 %v2919_v29  ;;  %v1273_v19 = vpack.c.b16 %v1269_v9, %v1268_v8  ;;  %v2518_v23 = vor.u32 %v2866_v13, %v2517_v12  ;;  %v2717_v29 = vld [vmem:[%s3111_s18 + $0x20] sm:$0xf]  ;;  %v1669_v32 = vrot.slane %v1668_v26, 4  ;;  %v1701_v2 = vrot.slane %v1699_v61, 5  ;;  %v2726_v61 = vld [vmem:[%s3111_s18 + $0x44] sm:$0x1] }
  0x6a   : > { %v1654_v24 = vor.u32 %v1653_v15, %v1650_v14  ;;  %v1688_v5 = vsel %vm3207_vm2, %v1683_v63, %v1687_v0  ;;  %v1707_v8 = vshll.u32 %v2719_v3, 16  ;;  %v1718_v9 = vshrl.u32 %v2721_v4, 16  ;;  %v2884_v12 = vld [vmem:[%s3111_s18 + $0x1c] sm:$0xf0]  ;;  %v2773_v14 = vld [vmem:[%s3111_s18 + $0xe8] sm:$0xf] }
  0x6b   : > { %1846 = vmatpush.bf16.msra.mxu0 %v2907_v42  ;;  %831 = vmatmul.bf16.gmra.mxu2 %v759_v37  ;;  %v1690_v37 = vshrl.u32 %v2717_v29, 16  ;;  %v1674_v42 = vsel %vm3207_vm2, %v1669_v32, %v1673_v34  ;;  %v1721_v10 = vshll.u32 %v2721_v4, 16  ;;  %v2669_v13 = vld [vmem:[%s3111_s18 + $0x60] sm:$0xf]  ;;  %v2916_v15 = vld [vmem:[%s3111_s18 + $0xec] sm:$0xf0]  ;;  %v1777_v16 = vunpack.c.l.b16 %v1688_v5 }
  0x6c   : > { %1344 = vmatmul.bf16.gmra.mxu1 %v1272_v39  ;;  %v1655_v30 = vrot.slane %v1654_v24, 4  ;;  %v2609_v39 = vld [vmem:[%s3111_s18 + $0x8] sm:$0xf]  ;;  %v1776_v52 = vunpack.c.l.b16 %v1674_v42  ;;  %v1709_v20 = vrot.slane %v1707_v8, 5  ;;  %v1720_v21 = vrot.slane %v1718_v9, 4 }
  0x6d   : > { %v1692_v49 = vrot.slane %v1690_v37, 4  ;;  %v2610_v55 = vor.u32 %v2883_v40, %v2609_v39  ;;  %v2722_v24 = vld [vmem:[%s3111_s18 + $0x34] sm:$0x1]  ;;  %v2614_v25 = vor.u32 %v2884_v12, %v2613_v11  ;;  %v2774_v26 = vor.u32 %v2916_v15, %v2773_v14  ;;  %v2725_v39 = vld [vmem:[%s3111_s18 + $0x40] sm:$0xf] }
  0x6e   : > { %965 = vmatmul.bf16.gmra.mxu3 %v2458_v38  ;;  %1099 = vmatmul.bf16.gmra.mxu0 %v2514_v51  ;;  %v1693_v38 = vshll.u32 %v2717_v29, 16  ;;  %v1660_v41 = vsel %vm3207_vm2, %v1655_v30, %v1659_v31  ;;  %v1727_v32 = vshll.u32 %v2722_v24, 16  ;;  %v1746_v44 = vshrl.u32 %v2725_v39, 16  ;;  %v2898_v24 = vld [vmem:[%s3111_s18 + $0x84] sm:$0xf0] }
  0x6f   : > { %v1775_v51 = vunpack.c.l.b16 %v1660_v41  ;;  %v1749_v45 = vshll.u32 %v2725_v39, 16  ;;  %v2618_v58 = vor.u32 %v2885_v47, %v2617_v46  ;;  %v1755_v5 = vshll.u32 %v2726_v61, 16 }
  0x70   : > { %v1695_v50 = vrot.slane %v1693_v38, 5  ;;  %v1729_v37 = vrot.slane %v1727_v32, 5  ;;  %v2723_v38 = vld [vmem:[%s3111_s18 + $0x38] sm:$0xf] }
  0x71   : > { %v1783_v62 = vpack.c.b16 %v1776_v52, %v1775_v51  ;;  %v1732_v42 = vshrl.u32 %v2723_v38, 16  ;;  %v1735_v43 = vshll.u32 %v2723_v38, 16  ;;  %v2897_v51 = vld [vmem:[%s3111_s18 + $0x74] sm:$0xf0]  ;;  %v1757_v11 = vrot.slane %v1755_v5, 5 }
  0x72   : > { %v1696_v60 = vor.u32 %v1695_v50, %v1692_v49  ;;  %v2917_v49 = vld [vmem:[%s3111_s18 + $0xfc] sm:$0xf0]  ;;  %v2673_v50 = vld [vmem:[%s3111_s18 + $0x70] sm:$0xf] }
  0x73   : > { %v1734_v54 = vrot.slane %v1732_v42, 4  ;;  %v2778_v59 = vor.u32 %v2917_v49, %v2777_v48  ;;  %v2674_v63 = vor.u32 %v2897_v51, %v2673_v50 }
  0x74   : > { %v1697_v1 = vrot.slane %v1696_v60, 4  ;;  %v2724_v60 = vld [vmem:[%s3111_s18 + $0x3c] sm:$0x1] }
  0x75   : > { %v1741_v3 = vshll.u32 %v2724_v60, 16 }
  0x76   : > { %v1702_v6 = vsel %vm3207_vm2, %v1697_v1, %v1701_v2 }
  0x77   : > { %v1778_v17 = vunpack.c.l.b16 %v1702_v6  ;;  %v1743_v9 = vrot.slane %v1741_v3, 5 }
  0x79   : > { %v1784_v28 = vpack.c.b16 %v1778_v17, %v1777_v16 }
  0x7b   : > { %836 = vmatmul.bf16.gmra.mxu2 %v760_v18  ;;  %v2896_v18 = vld [vmem:[%s3111_s18 + $0x64] sm:$0xf0] }
  0x7c   : > { %1349 = vmatmul.bf16.gmra.mxu1 %v1273_v19  ;;  %v1706_v19 = vrot.slane %v1704_v7, 4  ;;  %v2670_v27 = vor.u32 %v2896_v18, %v2669_v13 }
  0x7e   : > { %970 = vmatmul.bf16.gmra.mxu3 %v2462_v22  ;;  %1104 = vmatmul.bf16.gmra.mxu0 %v2518_v23  ;;  %v1723_v22 = vrot.slane %v1721_v10, 5  ;;  %v2720_v23 = vld [vmem:[%s3111_s18 + $0x2c] sm:$0x1]  ;;  %v1710_v29 = vor.u32 %v1709_v20, %v1706_v19  ;;  %v2621_v19 = vld [vmem:[%s3111_s18 + $0x38] sm:$0xf] }
  0x7f   : > { %v1713_v30 = vshll.u32 %v2720_v23, 16  ;;  %v2886_v20 = vld [vmem:[%s3111_s18 + $0x3c] sm:$0xf0] }
  0x80   : > { %v1724_v31 = vor.u32 %v1723_v22, %v1720_v21  ;;  %v1711_v34 = vrot.slane %v1710_v29, 4  ;;  %v2781_v21 = vld [vmem:[%s3111_s18 + $0x108] sm:$0xf]  ;;  %v2918_v22 = vld [vmem:[%s3111_s18 + $0x10c] sm:$0xf0]  ;;  %v2622_v29 = vor.u32 %v2886_v20, %v2621_v19 }
  0x81   : > { %v1715_v35 = vrot.slane %v1713_v30, 5  ;;  %v2677_v23 = vld [vmem:[%s3111_s18 + $0x80] sm:$0xf]  ;;  %v2782_v30 = vor.u32 %v2918_v22, %v2781_v21  ;;  %s2817_s18 = sshll.u32 %s3548_s28, 5 }
  0x82   : > { %v1725_v36 = vrot.slane %v1724_v31, 4  ;;  %s3492_s20 = scalar_lea.vmem %s3542_s6, %s2817_s18  ;;  %s3499_s23 = scalar_lea.vmem %s3539_s3, %s2817_s18 }
  0x83   : > { %v1716_v40 = vsel %vm3207_vm2, %v1711_v34, %v1715_v35  ;;  %v2678_v34 = vor.u32 %v2898_v24, %v2677_v23 }
  0x84   : > { %v1730_v41 = vsel %vm3207_vm2, %v1725_v36, %v1729_v37  ;;  %v1779_v52 = vunpack.c.l.b16 %v1716_v40 }
  0x85   : > { %v1780_v53 = vunpack.c.l.b16 %v1730_v41 }
  0x87   : > { %v1785_v0 = vpack.c.b16 %v1780_v53, %v1779_v52 }
  0x8b   : > { %1468 = vmatmul.bf16.vlgmr.msra.gmra.mxu2 %v2610_v55  ;;  %v1737_v55 = vrot.slane %v1735_v43, 5 }
  0x8c   : > { %2032 = vmatmul.bf16.vlgmr.msra.gmra.mxu1 %v2770_v57  ;;  %v1751_v57 = vrot.slane %v1749_v45, 5 }
  0x8d   : > { %v1738_v2 = vor.u32 %v1737_v55, %v1734_v54 }
  0x8e   : > { %1602 = vmatmul.bf16.vlgmr.msra.gmra.mxu3 %v2666_v56  ;;  %1847 = vmatmul.bf16.vlgmr.msra.gmra.mxu0 %v1783_v62  ;;  %v1748_v56 = vrot.slane %v1746_v44, 4 }
  0x8f   : > { %v1739_v8 = vrot.slane %v1738_v2, 4 }
  0x90   : > { %v1752_v4 = vor.u32 %v1751_v57, %v1748_v56 }
  0x91   : > { %v1744_v16 = vsel %vm3207_vm2, %v1739_v8, %v1743_v9 }
  0x92   : > { %v1753_v10 = vrot.slane %v1752_v4, 4 }
  0x94   : > { %v1758_v17 = vsel %vm3207_vm2, %v1753_v10, %v1757_v11 }
  0x9b   : > { %1473 = vmatmul.bf16.gmra.mxu2 %v2614_v25  ;;  %v1781_v25 = vunpack.c.l.b16 %v1744_v16 }
  0x9c   : > { %2037 = vmatmul.bf16.gmra.mxu1 %v2774_v26  ;;  %v1782_v26 = vunpack.c.l.b16 %v1758_v17 }
  0x9e   : > { %1607 = vmatmul.bf16.gmra.mxu3 %v2670_v27  ;;  %1852 = vmatmul.bf16.gmra.mxu0 %v1784_v28  ;;  %v1786_v35 = vpack.c.b16 %v1782_v26, %v1781_v25 }
  0xa8   : > { %v481_v1 = vpop.f32.mrf.mxu0 }
  0xa9   : > { %v582_v62 = vpop.f32.mrf.mxu1 }
  0xaa   : > { %v583_v6 = vadd.f32 %v582_v62, %v481_v1 }
  0xab   : > { %1478 = vmatmul.bf16.gmra.mxu2 %v2618_v58 }
  0xac   : > { %2042 = vmatmul.bf16.gmra.mxu1 %v2778_v59 }
  0xae   : > { %1612 = vmatmul.bf16.gmra.mxu3 %v2674_v63  ;;  %1857 = vmatmul.bf16.gmra.mxu0 %v1785_v0  ;;  %v491_v7 = vpop.f32.mrf.mxu2 }
  0xb0   : > { %v483_v15 = vpop.f32.mrf.mxu0 }
  0xb1   : > { %v592_v12 = vpop.f32.mrf.mxu3  ;;  %v584_v14 = vpop.f32.mrf.mxu1 }
  0xb2   : > { %v3461_v13 = vadd.f32 %v592_v12, %v491_v7  ;;  %v585_v18 = vadd.f32 %v584_v14, %v483_v15 }
  0xb6   : > { %v493_v27 = vpop.f32.mrf.mxu2 }
  0xb8   : > { %v486_v36 = vpop.f32.mrf.mxu0 }
  0xb9   : > { %v594_v28 = vpop.f32.mrf.mxu3  ;;  %v587_v32 = vpop.f32.mrf.mxu1 }
  0xba   : > { %v595_v31 = vadd.f32 %v594_v28, %v493_v27  ;;  %v588_v33 = vadd.f32 %v587_v32, %v486_v36 }
  0xbb   : > { %1483 = vmatmul.bf16.gmra.mxu2 %v2622_v29 }
  0xbc   : > { %2047 = vmatmul.bf16.gmra.mxu1 %v2782_v30 }
  0xbe   : > { %1617 = vmatmul.bf16.gmra.mxu3 %v2678_v34  ;;  %1862 = vmatmul.bf16.gmra.mxu0 %v1786_v35  ;;  %v496_v37 = vpop.f32.mrf.mxu2 }
  0xc0   : > { %v488_v41 = vpop.f32.mrf.mxu0 }
  0xc1   : > { %v597_v38 = vpop.f32.mrf.mxu3  ;;  %v589_v40 = vpop.f32.mrf.mxu1 }
  0xc2   : > { %v598_v39 = vadd.f32 %v597_v38, %v496_v37  ;;  %v590_v42 = vadd.f32 %v589_v40, %v488_v41 }
  0xc6   : > { %v498_v43 = vpop.f32.mrf.mxu2 }
  0xc9   : > { %v599_v44 = vpop.f32.mrf.mxu3  ;;  %v1335_v46 = vpop.f32.mrf.mxu1 }
  0xca   : > { %v600_v45 = vadd.f32 %v599_v44, %v498_v43 }
  0xcb   : > { %v1090_v47 = vpop.f32.mrf.mxu0 }
  0xce   : > { %v822_v48 = vpop.f32.mrf.mxu2 }
  0xcf   : > { %v842_v49 = vadd.f32 %v822_v48, %v583_v6 }
  0xd1   : > { %v956_v50 = vpop.f32.mrf.mxu3  ;;  %v1337_v51 = vpop.f32.mrf.mxu1 }
  0xd2   : > { %v976_v52 = vadd.f32 %v956_v50, %v842_v49 }
  0xd3   : > { %v1092_v53 = vpop.f32.mrf.mxu0 }
  0xd4   : > { %v1110_v54 = vadd.f32 %v1090_v47, %v976_v52 }
  0xd6   : > { %v1355_v55 = vadd.f32 %v1335_v46, %v1110_v54  ;;  %v824_v56 = vpop.f32.mrf.mxu2 }
  0xd7   : > { %v843_v57 = vadd.f32 %v824_v56, %v585_v18 }
  0xd9   : > { %v958_v58 = vpop.f32.mrf.mxu3  ;;  %v1340_v59 = vpop.f32.mrf.mxu1 }
  0xda   : > { %v977_v60 = vadd.f32 %v958_v58, %v843_v57 }
  0xdb   : > { %v1095_v61 = vpop.f32.mrf.mxu0 }
  0xdc   : > { %v1111_v62 = vadd.f32 %v1092_v53, %v977_v60 }
  0xde   : > { %v1356_v63 = vadd.f32 %v1337_v51, %v1111_v62  ;;  %v827_v0 = vpop.f32.mrf.mxu2 }
  0xdf   : > { %v844_v1 = vadd.f32 %v827_v0, %v588_v33 }
  0xe1   : > { %v961_v2 = vpop.f32.mrf.mxu3  ;;  %v1342_v3 = vpop.f32.mrf.mxu1 }
  0xe2   : > { %v978_v4 = vadd.f32 %v961_v2, %v844_v1 }
  0xe3   : > { %v1097_v5 = vpop.f32.mrf.mxu0 }
  0xe4   : > { %v1112_v6 = vadd.f32 %v1095_v61, %v978_v4 }
  0xe6   : > { %v3473_v7 = vadd.f32 %v1340_v59, %v1112_v6  ;;  %v829_v8 = vpop.f32.mrf.mxu2 }
  0xe7   : > { %v845_v9 = vadd.f32 %v829_v8, %v590_v42 }
  0xe9   : > { %v963_v10 = vpop.f32.mrf.mxu3  ;;  %v1345_v11 = vpop.f32.mrf.mxu1 }
  0xea   : > { %v979_v12 = vadd.f32 %v963_v10, %v845_v9 }
  0xeb   : > { %v1100_v14 = vpop.f32.mrf.mxu0 }
  0xec   : > { %v1113_v15 = vadd.f32 %v1097_v5, %v979_v12 }
  0xee   : > { %v3475_v16 = vadd.f32 %v1342_v3, %v1113_v15  ;;  %v832_v17 = vpop.f32.mrf.mxu2 }
  0xef   : > { %v846_v18 = vadd.f32 %v832_v17, %v3461_v13 }
  0xf1   : > { %v966_v19 = vpop.f32.mrf.mxu3  ;;  %v1347_v20 = vpop.f32.mrf.mxu1 }
  0xf2   : > { %v980_v21 = vadd.f32 %v966_v19, %v846_v18 }
  0xf3   : > { %v1102_v22 = vpop.f32.mrf.mxu0 }
  0xf4   : > { %v1114_v23 = vadd.f32 %v1100_v14, %v980_v21 }
  0xf6   : > { %v3478_v24 = vadd.f32 %v1345_v11, %v1114_v23  ;;  %v834_v25 = vpop.f32.mrf.mxu2 }
  0xf7   : > { %v847_v26 = vadd.f32 %v834_v25, %v595_v31 }
  0xf9   : > { %v968_v27 = vpop.f32.mrf.mxu3  ;;  %v1350_v28 = vpop.f32.mrf.mxu1 }
  0xfa   : > { %v981_v29 = vadd.f32 %v968_v27, %v847_v26 }
  0xfb   : > { %v1105_v30 = vpop.f32.mrf.mxu0 }
  0xfc   : > { %v1115_v32 = vadd.f32 %v1102_v22, %v981_v29 }
  0xfe   : > { %v3480_v34 = vadd.f32 %v1347_v20, %v1115_v32  ;;  %v837_v35 = vpop.f32.mrf.mxu2 }
  0xff   : > { %v848_v36 = vadd.f32 %v837_v35, %v598_v39 }
 0x101   : > { %v971_v13 = vpop.f32.mrf.mxu3  ;;  %v1352_v33 = vpop.f32.mrf.mxu1 }
 0x102   : > { %v982_v37 = vadd.f32 %v971_v13, %v848_v36 }
 0x103   : > { %v1107_v38 = vpop.f32.mrf.mxu0 }
 0x104   : > { %v1116_v40 = vadd.f32 %v1105_v30, %v982_v37 }
 0x106   : > { %v3482_v41 = vadd.f32 %v1350_v28, %v1116_v40  ;;  %v839_v42 = vpop.f32.mrf.mxu2 }
 0x107   : > { %v849_v43 = vadd.f32 %v839_v42, %v600_v45 }
 0x109   : > { %v973_v31 = vpop.f32.mrf.mxu3  ;;  %v3484_v44 = vpop.f32.mrf.mxu1 }
 0x10a   : > { %v983_v46 = vadd.f32 %v973_v31, %v849_v43 }
 0x10b   : > { %v1848_v47 = vpop.f32.mrf.mxu0 }
 0x10c   : > { %v1117_v48 = vadd.f32 %v1107_v38, %v983_v46 }
 0x10e   : > { %v3487_v49 = vadd.f32 %v1352_v33, %v1117_v48  ;;  %v1469_v50 = vpop.f32.mrf.mxu2 }
 0x10f   : > { %v1489_v52 = vadd.f32 %v1469_v50, %v1355_v55 }
 0x111   : > { %v1603_v39 = vpop.f32.mrf.mxu3  ;;  %v2035_v51 = vpop.f32.mrf.mxu1 }
 0x112   : > { %v2950_v45 = vpack.c.bf16 %v2035_v51, %v3484_v44  ;;  %v1623_v54 = vadd.f32 %v1603_v39, %v1489_v52  ;;  %v2084_v33 = vmul.f32 %v2035_v51, %v2035_v51  ;;  %v2069_v40 = vadd.f32 %v2035_v51, %v3484_v44 }
 0x113   : > { %v1850_v53 = vpop.f32.mrf.mxu0 }
 0x114   : > { %2951 = vst [vmem:[%s3492_s20] sm:$0xff] %v2950_v45   ;;  %v1868_v60 = vadd.f32 %v1848_v47, %v1623_v54 }
 0x116   : > { %v1471_v56 = vpop.f32.mrf.mxu2  ;;  %v1906_v55 = vmul.f32 %v1868_v60, %v1868_v60 }
 0x117   : > { %v1490_v57 = vadd.f32 %v1471_v56, %v1356_v63 }
 0x119   : > { %v1605_v58 = vpop.f32.mrf.mxu3  ;;  %v2038_v59 = vpop.f32.mrf.mxu1 }
 0x11a   : > { %v1624_v61 = vadd.f32 %v1605_v58, %v1490_v57  ;;  %v2085_v38 = vmul.f32 %v2038_v59, %v2038_v59 }
 0x11b   : > { %v1853_v62 = vpop.f32.mrf.mxu0 }
 0x11c   : > { %v1869_v0 = vadd.f32 %v1850_v53, %v1624_v61 }
 0x11e   : > { %v2930_v1 = vpack.c.bf16 %v1869_v0, %v1868_v60  ;;  %v1892_v2 = vadd.f32 %v1869_v0, %v1868_v60  ;;  %v1907_v3 = vmul.f32 %v1869_v0, %v1869_v0  ;;  %v1474_v4 = vpop.f32.mrf.mxu2 }
 0x11f   : > { %v1491_v5 = vadd.f32 %v1474_v4, %v3473_v7 }
 0x120   : > { %2931 = vst [vmem:[%s3499_s23] sm:$0xff] %v2930_v1   ;;  %v1914_v63 = vadd.f32 %v1907_v3, %v1906_v55 }
 0x121   : > { %v1608_v6 = vpop.f32.mrf.mxu3  ;;  %v2040_v8 = vpop.f32.mrf.mxu1 }
 0x122   : > { %v1625_v9 = vadd.f32 %v1608_v6, %v1491_v5  ;;  %v2955_v10 = vpack.c.bf16 %v2040_v8, %v2038_v59  ;;  %v2086_v46 = vmul.f32 %v2040_v8, %v2040_v8 }
 0x123   : > { %v1855_v11 = vpop.f32.mrf.mxu0 }
 0x124   : > { %v1870_v12 = vadd.f32 %v1853_v62, %v1625_v9  ;;  %2970 = vst [vmem:[%s3492_s20 + $0x8] sm:$0xff] %v2955_v10  }
 0x126   : > { %v1893_v14 = vadd.f32 %v1892_v2, %v1870_v12  ;;  %v1908_v15 = vmul.f32 %v1870_v12, %v1870_v12  ;;  %v1476_v17 = vpop.f32.mrf.mxu2 }
 0x127   : > { %v1492_v19 = vadd.f32 %v1476_v17, %v3475_v16  ;;  %v2083_v16 = vmul.f32 %v3484_v44, %v3484_v44 }
 0x128   : > { %v1915_v18 = vadd.f32 %v1914_v63, %v1908_v15 }
 0x129   : > { %v1610_v20 = vpop.f32.mrf.mxu3  ;;  %v2043_v21 = vpop.f32.mrf.mxu1  ;;  %v2091_v31 = vadd.f32 %v2084_v33, %v2083_v16 }
 0x12a   : > { %v1626_v22 = vadd.f32 %v1610_v20, %v1492_v19  ;;  %v2087_v53 = vmul.f32 %v2043_v21, %v2043_v21 }
 0x12b   : > { %v1858_v7 = vpop.f32.mrf.mxu0  ;;  %v2092_v45 = vadd.f32 %v2091_v31, %v2085_v38 }
 0x12c   : > { %v1871_v23 = vadd.f32 %v1855_v11, %v1626_v22 }
 0x12d   : > { %v2093_v58 = vadd.f32 %v2092_v45, %v2086_v46 }
 0x12e   : > { %v2935_v25 = vpack.c.bf16 %v1871_v23, %v1870_v12  ;;  %v1894_v26 = vadd.f32 %v1893_v14, %v1871_v23  ;;  %v1909_v27 = vmul.f32 %v1871_v23, %v1871_v23  ;;  %v1479_v28 = vpop.f32.mrf.mxu2 }
 0x12f   : > { %v1493_v30 = vadd.f32 %v1479_v28, %v3478_v24  ;;  %v2070_v24 = vadd.f32 %v2069_v40, %v2038_v59  ;;  %v2094_v61 = vadd.f32 %v2093_v58, %v2087_v53 }
 0x130   : > { %2967 = vst [vmem:[%s3499_s23 + $0x8] sm:$0xff] %v2935_v25   ;;  %v1916_v29 = vadd.f32 %v1915_v18, %v1909_v27 }
 0x131   : > { %v1613_v32 = vpop.f32.mrf.mxu3  ;;  %v2045_v35 = vpop.f32.mrf.mxu1  ;;  %v2071_v56 = vadd.f32 %v2070_v24, %v2040_v8 }
 0x132   : > { %v1627_v36 = vadd.f32 %v1613_v32, %v1493_v30  ;;  %v2960_v13 = vpack.c.bf16 %v2045_v35, %v2043_v21  ;;  %v2088_v60 = vmul.f32 %v2045_v35, %v2045_v35 }
 0x133   : > { %v1860_v47 = vpop.f32.mrf.mxu0  ;;  %v2072_v44 = vadd.f32 %v2071_v56, %v2043_v21 }
 0x134   : > { %v1872_v37 = vadd.f32 %v1858_v7, %v1627_v36  ;;  %2971 = vst [vmem:[%s3492_s20 + $0x10] sm:$0xff] %v2960_v13   ;;  %v2095_v2 = vadd.f32 %v2094_v61, %v2088_v60 }
 0x135   : > { %v2073_v0 = vadd.f32 %v2072_v44, %v2045_v35 }
 0x136   : > { %v1895_v42 = vadd.f32 %v1894_v26, %v1872_v37  ;;  %v1910_v43 = vmul.f32 %v1872_v37, %v1872_v37  ;;  %v1481_v48 = vpop.f32.mrf.mxu2 }
 0x137   : > { %v1494_v39 = vadd.f32 %v1481_v48, %v3480_v34 }
 0x138   : > { %v1917_v50 = vadd.f32 %v1916_v29, %v1910_v43 }
 0x139   : > { %v1615_v52 = vpop.f32.mrf.mxu3  ;;  %v2048_v54 = vpop.f32.mrf.mxu1 }
 0x13a   : > { %v1628_v57 = vadd.f32 %v1615_v52, %v1494_v39  ;;  %v2089_v62 = vmul.f32 %v2048_v54, %v2048_v54  ;;  %v2074_v4 = vadd.f32 %v2073_v0, %v2048_v54 }
 0x13b   : > { %v1863_v8 = vpop.f32.mrf.mxu0 }
 0x13c   : > { %v1873_v51 = vadd.f32 %v1860_v47, %v1628_v57  ;;  %v2096_v6 = vadd.f32 %v2095_v2, %v2089_v62 }
 0x13e   : > { %v2940_v55 = vpack.c.bf16 %v1873_v51, %v1872_v37  ;;  %v1896_v1 = vadd.f32 %v1895_v42, %v1873_v51  ;;  %v1911_v59 = vmul.f32 %v1873_v51, %v1873_v51  ;;  %v1484_v34 = vpop.f32.mrf.mxu2 }
 0x13f   : > { %v1495_v63 = vadd.f32 %v1484_v34, %v3482_v41 }
 0x140   : > { %2968 = vst [vmem:[%s3499_s23 + $0x10] sm:$0xff] %v2940_v55   ;;  %v1918_v3 = vadd.f32 %v1917_v50, %v1911_v59 }
 0x141   : > { %v1618_v5 = vpop.f32.mrf.mxu3  ;;  %v2050_v9 = vpop.f32.mrf.mxu1 }
 0x142   : > { %v1629_v10 = vadd.f32 %v1618_v5, %v1495_v63  ;;  %v2965_v11 = vpack.c.bf16 %v2050_v9, %v2048_v54  ;;  %v2075_v12 = vadd.f32 %v2074_v4, %v2050_v9  ;;  %v2090_v14 = vmul.f32 %v2050_v9, %v2050_v9 }
 0x143   : > { %v1865_v32 = vpop.f32.mrf.mxu0 }
 0x144   : > { %v1874_v15 = vadd.f32 %v1863_v8, %v1629_v10  ;;  %2972 = vst [vmem:[%s3492_s20 + $0x18] sm:$0xff] %v2965_v11   ;;  %v2076_v17 = vrot.slane %v2075_v12, 4  ;;  %v2097_v18 = vadd.f32 %v2096_v6, %v2090_v14 }
 0x146   : > { %v1897_v19 = vadd.f32 %v1896_v1, %v1874_v15  ;;  %v1912_v20 = vmul.f32 %v1874_v15, %v1874_v15  ;;  %v2077_v21 = vadd.f32 %v2076_v17, %v2075_v12  ;;  %v2098_v22 = vrot.slane %v2097_v18, 4  ;;  %v1486_v23 = vpop.f32.mrf.mxu2 }
 0x147   : > { %v1496_v26 = vadd.f32 %v1486_v23, %v3487_v49 }
 0x148   : > { %v1919_v7 = vadd.f32 %v1918_v3, %v1912_v20  ;;  %v2078_v41 = vrot.slane %v2077_v21, 2  ;;  %v2099_v25 = vadd.f32 %v2098_v22, %v2097_v18 }
 0x149   : > { %v1620_v27 = vpop.f32.mrf.mxu3 }
 0x14a   : > { %v2079_v28 = vadd.f32 %v2078_v41, %v2077_v21  ;;  %v2100_v29 = vrot.slane %v2099_v25, 2  ;;  %v1630_v30 = vadd.f32 %v1620_v27, %v1496_v26 }
 0x14c   : > { %v2080_v35 = vrot.slane %v2079_v28, 1  ;;  %v2101_v36 = vadd.f32 %v2100_v29, %v2099_v25  ;;  %v1875_v13 = vadd.f32 %v1865_v32, %v1630_v30 }
 0x14e   : > { %v2081_v16 = vadd.f32 %v2080_v35, %v2079_v28  ;;  %v2102_v33 = vrot.slane %v2101_v36, 1  ;;  %v2945_v37 = vpack.c.bf16 %v1875_v13, %v1874_v15  ;;  %v1898_v38 = vadd.f32 %v1897_v19, %v1875_v13 }
 0x14f   : > { %v1913_v49 = vmul.f32 %v1875_v13, %v1875_v13 }
 0x150   : > { %2082 = vst [vmem:[%s347_s26] sm:$0x1] %v2081_v16  ;;  %v2103_v40 = vadd.f32 %v2102_v33, %v2101_v36  ;;  %v1899_v42 = vrot.slane %v1898_v38, 4 }
 0x151   : > { %2969 = vst [vmem:[%s3499_s23 + $0x18] sm:$0xff] %v2945_v37   ;;  %v1920_v43 = vadd.f32 %v1919_v7, %v1913_v49 }
 0x152   : > { %2104 = vst [vmem:[%s350_s9] sm:$0x1] %v2103_v40  ;;  %v1900_v31 = vadd.f32 %v1899_v42, %v1898_v38 }
 0x153   : > { %v1921_v46 = vrot.slane %v1920_v43, 4 }
 0x154   : > { %v1901_v47 = vrot.slane %v1900_v31, 2 }
 0x155   : > { %v1922_v48 = vadd.f32 %v1921_v46, %v1920_v43 }
 0x156   : > { %v1902_v24 = vadd.f32 %v1901_v47, %v1900_v31 }
 0x157   : > { %v1923_v50 = vrot.slane %v1922_v48, 2 }
 0x158   : > { %v1903_v39 = vrot.slane %v1902_v24, 1 }
 0x159   : > { %v1924_v52 = vadd.f32 %v1923_v50, %v1922_v48 }
 0x15a   : > { %v1904_v45 = vadd.f32 %v1903_v39, %v1902_v24 }
 0x15b   : > { %v1925_v53 = vrot.slane %v1924_v52, 1 }
 0x15c   : > { %1905 = vst [vmem:[%s336_s12] sm:$0x1] %v1904_v45 }
 0x15d   : > { %v1926_v54 = vadd.f32 %v1925_v53, %v1924_v52 }
 0x15f   : > { %1927 = vst [vmem:[%s339_s15] sm:$0x1] %v1926_v54 }
 0x160 PF: > { %s19_s27 = sadd.s32 1, %s3004_s27  }
 0x161   : > { %p16_p4 = scmp.ge.s32.totalorder %s19_s27, 4  }
 0x163   :  { %18 = sbr.rel (!%p16_p4) target bundleno = 1 (0x1), region = 127 }

// kernel: basic_block_forward.4
= control target key start
LH: loop header
LB: loop body
LE: loop exit
PB: predicated region body
PF: predicated region fallthrough
CT: control target
= control target key end

     0   :  { %s2844_s21 = smov 0   ;;  %s3479_s0 = inlined_call_operand.vmem [shape: bf16[2,8,8,128], index: 0, kind: input, shape index: {}]   ;;  %s3480_s1 = inlined_call_operand.vmem [shape: bf16[1152,128], index: 1, kind: input, shape index: {}]   ;;  %s3481_s2 = inlined_call_operand.vmem [shape: f32[1,128], index: 2, kind: input, shape index: {}]   ;;  %s3482_s3 = inlined_call_operand.vmem [shape: f32[1,128], index: 3, kind: input, shape index: {}]   ;;  %s3483_s4 = inlined_call_operand.vmem [shape: bf16[2,64,128], index: 4, kind: output, shape index: {0}]   ;;  %s3484_s5 = inlined_call_operand.vmem [shape: f32[2,1,128], index: 5, kind: output, shape index: {1}]   ;;  %s3485_s6 = inlined_call_operand.vmem [shape: f32[2,1,128], index: 6, kind: output, shape index: {2}]  }
   0x1 LB: > { %s2274_s22 = sadd.s32 4294967295, %s2806_s21   ;;  %p2278_p0 = scmp.ge.s32.totalorder %s2806_s21, 1  ;;  %s2806_s21 = sphi %s2844_s21, %s17_s21  }
   0x2   : > { %p217_p1 = scmp.lt.s32.totalorder %s2806_s21, 3 }
   0x4   : > { %p218_p2 = pnand %p2278_p0, %p217_p1 }
   0x5   : > { %p253_p3 = scmp.lt.s32.totalorder (!%p218_p2), %s2274_s22, 1 }
   0x6   : > { %221 = sbr.rel (%p218_p2) target bundleno = 358 (0x166), region = 36 }
   0xb   : > { %v2666_v0 = vld [vmem:[%s3480_s1 + $0x78] sm:$0xff]  ;;  %v2808_v2 = vmov 0   ;;  %v2665_v3 = vld [vmem:[%s3480_s1 + $0x70] sm:$0xff]  ;;  %s3495_s22 = smov (!%p253_p3, %s2274_s22), 1  ;;  %v2664_v6 = vld [vmem:[%s3480_s1 + $0x68] sm:$0xff]  ;;  %vm427_vm0 = vcmask 1043456  }
   0xc   : > { %v2674_v1 = vld [vmem:[%s3480_s1 + $0xb8] sm:$0xff]  ;;  %278 = vst [vmem:[#allocation2 + $0x20] sm:$0xf] %v2808_v2  ;;  %2773 = vmatpush.bf16.msra.mxu1 %v2666_v0  ;;  %708 = vmatpush.bf16.msra.mxu0 %v2666_v0  ;;  %v2673_v4 = vld [vmem:[%s3480_s1 + $0xb0] sm:$0xff]  ;;  %s2645_s9 = sshll.u32 %s3495_s22, 5  ;;  %v2672_v11 = vld [vmem:[%s3480_s1 + $0xa8] sm:$0xff]  ;;  %s265_s7 = scalar_lea.vmem %s3484_s5, %s3495_s22 }
   0xd   : > { %279 = vst [vmem:[#allocation2 + $0x24] sm:$0x1] %v2808_v2  ;;  %977 = vmatpush.bf16.msra.mxu2 %v2674_v1  ;;  %v2686_v5 = vld [vmem:[%s3480_s1 + $0xf8] sm:$0xff]  ;;  %v2685_v7 = vld [vmem:[%s3480_s1 + $0xf0] sm:$0xff]  ;;  %s257_s16 = scalar_lea.vmem %s3479_s0, %s2645_s9  ;;  %v2888_v10 = vld [vmem:[%s3481_s2] ss:$0 sm:$0xff]  ;;  %s3453_s29 = scalar_lea.vmem %s3483_s4, %s2645_s9 }
   0xe   : > { %280 = vst [vmem:[#allocation2 + $0x28] sm:$0xf] %v2808_v2  ;;  %1110 = vmatpush.bf16.msra.mxu3 %v2686_v5  ;;  %v2767_v8 = vld [vmem:[%s257_s16 + $0x8] sm:$0xff]   ;;  %v2768_v9 = vld [vmem:[%s257_s16 + $0x10] sm:$0xff]   ;;  %v2896_v14 = vld [vmem:[%s3482_s3] ss:$0 sm:$0xff]  ;;  %s268_s11 = scalar_lea.vmem %s3485_s6, %s3495_s22 }
   0xf   : > { %281 = vst [vmem:[#allocation2 + $0x2c] sm:$0x1] %v2808_v2  ;;  %v2738_v12 = vunpack.c.h.bf16 %v2767_v8  ;;  %v2741_v13 = vunpack.c.l.bf16 %v2768_v9  ;;  %v2742_v15 = vunpack.c.h.bf16 %v2768_v9  ;;  %v2737_v16 = vunpack.c.l.bf16 %v2767_v8  ;;  %v2684_v17 = vld [vmem:[%s3480_s1 + $0xe8] sm:$0xff]  ;;  %v2905_v20 = vld [vmem:[%s257_s16] sm:$0xff]   ;;  %v2912_v23 = vld [vmem:[%s257_s16 + $0x18] sm:$0xff]  }
  0x10   : > { %2774 = vmatpush.bf16.msra.mxu1 %v2665_v3  ;;  %709 = vmatpush.bf16.msra.mxu0 %v2665_v3  ;;  %270 = vst [vmem:[#allocation2] sm:$0xf] %v2808_v2  ;;  %v2663_v21 = vld [vmem:[%s3480_s1 + $0x60] sm:$0xff]  ;;  %v2733_v22 = vunpack.c.l.bf16 %v2905_v20  ;;  %v2745_v29 = vunpack.c.l.bf16 %v2912_v23  ;;  %vm433_vm1 = vcmask 1040384   ;;  %vm428_vm2 = vsmask.f32 7938 }
  0x11   : > { %978 = vmatpush.bf16.msra.mxu2 %v2673_v4  ;;  %v313_v18 = vmul.f32 %v2888_v10, %v2738_v12  ;;  %v314_v19 = vmul.f32 %v2888_v10, %v2741_v13  ;;  %271 = vst [vmem:[#allocation2 + $0x4] sm:$0x1] %v2808_v2  ;;  %v315_v24 = vmul.f32 %v2888_v10, %v2742_v15  ;;  %v2671_v26 = vld [vmem:[%s3480_s1 + $0xa0] sm:$0xff]  ;;  %v2662_v33 = vld [vmem:[%s3480_s1 + $0x58] sm:$0xff]  ;;  %vm434_vm3 = vsmask.f32 256  ;;  %vm2959_vm7 = vmand %vm427_vm0, %vm428_vm2 }
  0x12   : > { %1111 = vmatpush.bf16.msra.mxu3 %v2685_v7  ;;  %272 = vst [vmem:[#allocation2 + $0x8] sm:$0xf] %v2808_v2  ;;  %v312_v25 = vmul.f32 %v2888_v10, %v2737_v16  ;;  %v310_v30 = vmul.f32 %v2888_v10, %v2733_v22  ;;  %v2670_v37 = vld [vmem:[%s3480_s1 + $0x98] sm:$0xff]  ;;  %v2683_v40 = vld [vmem:[%s3480_s1 + $0xe0] sm:$0xff]  ;;  %v316_v41 = vmul.f32 %v2888_v10, %v2745_v29  ;;  %v2734_v42 = vunpack.c.h.bf16 %v2905_v20  ;;  %v2661_v43 = vld [vmem:[%s3480_s1 + $0x50] sm:$0xff] }
  0x13   : > { %v325_v27 = vadd.f32 %v2896_v14, %v313_v18  ;;  %v326_v28 = vadd.f32 %v2896_v14, %v314_v19  ;;  %273 = vst [vmem:[#allocation2 + $0xc] sm:$0x1] %v2808_v2  ;;  %v2932_v35 = vadd.f32 %v2896_v14, %v315_v24  ;;  %v2669_v50 = vld [vmem:[%s3480_s1 + $0x90] sm:$0xff]  ;;  %v451_v51 = vld [vmem:[#allocation2 + $0x20] sm:$0xf]  ;;  %vm862_vm6 = vcmask 1042432   ;;  %vm2972_vm8 = vmand %vm433_vm1, %vm434_vm3 }
  0x14   : > { %2775 = vmatpush.bf16.msra.mxu1 %v2664_v6  ;;  %710 = vmatpush.bf16.msra.mxu0 %v2664_v6  ;;  %274 = vst [vmem:[#allocation2 + $0x10] sm:$0xf] %v2808_v2  ;;  %v322_v34 = vadd.f32 %v2896_v14, %v310_v30  ;;  %v2935_v36 = vadd.f32 %v2896_v14, %v312_v25  ;;  %v454_v52 = vld [vmem:[#allocation2 + $0x24] sm:$0x1]  ;;  %vm513_vm4 = vsmask.f32 3328 }
  0x15   : > { %979 = vmatpush.bf16.msra.mxu2 %v2672_v11  ;;  %v333_v31 = vmax.f32 %v325_v27, 0.0  ;;  %v334_v32 = vmax.f32 %v326_v28, 0.0  ;;  %275 = vst [vmem:[#allocation2 + $0x14] sm:$0x1] %v2808_v2  ;;  %v457_v53 = vld [vmem:[#allocation2 + $0x28] sm:$0xf]  ;;  %v2967_v62 = vadd.f32 %v2896_v14, %v316_v41  ;;  %v311_v63 = vmul.f32 %v2888_v10, %v2734_v42 }
  0x16   : > { %1112 = vmatpush.bf16.msra.mxu3 %v2684_v17  ;;  %276 = vst [vmem:[#allocation2 + $0x18] sm:$0xf] %v2808_v2  ;;  %v330_v44 = vmax.f32 %v322_v34, 0.0  ;;  %vm514_vm5 = vsmask.f32 7440  ;;  %v335_v55 = vmax.f32 %v2932_v35, 0.0 }
  0x17   : > { %v341_v38 = vpack.c.bf16 %v333_v31, %v333_v31  ;;  %v342_v39 = vpack.c.bf16 %v334_v32, %v334_v32  ;;  %277 = vst [vmem:[#allocation2 + $0x1c] sm:$0x1] %v2808_v2  ;;  %v481_v45 = vld [vmem:[#allocation2] sm:$0xf]  ;;  %v332_v56 = vmax.f32 %v2935_v36, 0.0  ;;  %v2660_v6 = vld [vmem:[%s3480_s1 + $0x48] sm:$0xff]  ;;  %v323_v34 = vadd.f32 %v2896_v14, %v311_v63  ;;  %vm3040_vm11 = vmor %vm513_vm4, %vm514_vm5 }
  0x18   : > { %2776 = vmatpush.bf16.msra.mxu1 %v2663_v21  ;;  %711 = vmatpush.bf16.msra.mxu0 %v2663_v21  ;;  %282 = vst [vmem:[#allocation2 + $0x30] sm:$0xf] %v2808_v2  ;;  %v338_v54 = vpack.c.bf16 %v330_v44, %v330_v44  ;;  %v460_v60 = vld [vmem:[#allocation2 + $0x2c] sm:$0x1]  ;;  %v2964_v61 = vld [vmem:[#allocation2 + $0x4] sm:$0x1]  ;;  %v343_v25 = vpack.c.bf16 %v335_v55, %v335_v55 }
  0x19   : > { %980 = vmatpush.bf16.msra.mxu2 %v2671_v26  ;;  %v371_v46 = vshrl.u32 %v341_v38, 16  ;;  %v374_v47 = vshll.u32 %v341_v38, 16  ;;  %v379_v48 = vshrl.u32 %v342_v39, 16  ;;  %v382_v49 = vshll.u32 %v342_v39, 16  ;;  %283 = vst [vmem:[#allocation2 + $0x34] sm:$0x1] %v2808_v2 }
  0x1a   : > { %1113 = vmatpush.bf16.msra.mxu3 %v2683_v40  ;;  %284 = vst [vmem:[#allocation2 + $0x38] sm:$0xf] %v2808_v2  ;;  %v347_v1 = vshrl.u32 %v338_v54, 16  ;;  %v350_v3 = vshll.u32 %v338_v54, 16  ;;  %v517_v4 = vshrl.u32 %v481_v45, 16  ;;  %v520_v5 = vshll.u32 %v481_v45, 16 }
  0x1b   : > { %v373_v57 = vrot.slane %v371_v46, 7  ;;  %v381_v58 = vrot.slane %v379_v48, 7  ;;  %285 = vst [vmem:[#allocation2 + $0x3c] sm:$0x1] %v2808_v2  ;;  %v2682_v12 = vld [vmem:[%s3480_s1 + $0xd8] sm:$0xff]  ;;  %v526_v17 = vshll.u32 %v2964_v61, 16 }
  0x1c   : > { %2777 = vmatpush.bf16.msra.mxu1 %v2662_v33  ;;  %712 = vmatpush.bf16.msra.mxu0 %v2662_v33  ;;  %286 = vst [vmem:[#allocation2 + $0x40] sm:$0xf] %v2808_v2  ;;  %v349_v13 = vrot.slane %v347_v1, 7  ;;  %v519_v15 = vrot.slane %v517_v4, 4  ;;  %v522_v16 = vrot.slane %v520_v5, 5  ;;  %v2668_v21 = vld [vmem:[%s3480_s1 + $0x88] sm:$0xff] }
  0x1d   : > { %981 = vmatpush.bf16.msra.mxu2 %v2670_v37  ;;  %v376_v7 = vor.u32 %v374_v47, %v373_v57  ;;  %v377_v8 = vrot.slane %v373_v57, 4  ;;  %v384_v9 = vor.u32 %v382_v49, %v381_v58  ;;  %v385_v11 = vrot.slane %v381_v58, 4  ;;  %287 = vst [vmem:[#allocation2 + $0x44] sm:$0x1] %v2808_v2  ;;  %v430_v22 = vld [vmem:[#allocation2 + $0x8] sm:$0xf] }
  0x1e   : > { %288 = vst [vmem:[#allocation2 + $0x48] sm:$0xf] %v2808_v2  ;;  %v838_v24 = vld [vmem:[#allocation2] sm:$0xe]  ;;  %v352_v27 = vor.u32 %v350_v3, %v349_v13  ;;  %v353_v28 = vrot.slane %v349_v13, 4  ;;  %v523_v30 = vor.u32 %v522_v16, %v519_v15  ;;  %1114 = vmatpush.bf16.msra.mxu3 %v2682_v12  ;;  %v2681_v31 = vld [vmem:[%s3480_s1 + $0xd0] sm:$0xff]  ;;  %v3029_v47 = vpack.c.bf16 %v332_v56, %v332_v56 }
  0x1f   : > { %v452_v18 = vsel %vm2959_vm7, %v376_v7, %v451_v51  ;;  %v455_v19 = vsel %vm2972_vm8, %v377_v8, %v454_v52  ;;  %v458_v20 = vsel %vm2959_vm7, %v384_v9, %v457_v53  ;;  %v461_v26 = vsel %vm2972_vm8, %v385_v11, %v460_v60  ;;  %v436_v29 = vld [vmem:[#allocation2 + $0xc] sm:$0x1]  ;;  %v2659_v35 = vld [vmem:[%s3480_s1 + $0x40] sm:$0xff]  ;;  %v2658_v41 = vld [vmem:[%s3480_s1 + $0x38] sm:$0xff]  ;;  %289 = vst [vmem:[#allocation2 + $0x4c] sm:$0x1] %v2808_v2 }
  0x20   : > { %2778 = vmatpush.bf16.msra.mxu1 %v2661_v43  ;;  %713 = vmatpush.bf16.msra.mxu0 %v2661_v43  ;;  %453 = vst [vmem:[#allocation2 + $0x20] sm:$0xf] %v452_v18  ;;  %v3000_v32 = vrot.slane %v526_v17, 5  ;;  %vm863_vm9 = vcmask 1046532   ;;  %v2363_v33 = vrot.slane %v838_v24, 9  ;;  %v431_v37 = vsel %vm2959_vm7, %v352_v27, %v430_v22  ;;  %v2667_v42 = vld [vmem:[%s3480_s1 + $0x80] sm:$0xff] }
  0x21   : > { %982 = vmatpush.bf16.msra.mxu2 %v2669_v50  ;;  %456 = vst [vmem:[#allocation2 + $0x24] sm:$0x1] %v455_v19  ;;  %v3008_v38 = vrot.slane %v523_v30, 4  ;;  %v867_v39 = vrot.slane %v2964_v61, 5  ;;  %v336_v40 = vmax.f32 %v2967_v62, 0.0  ;;  %v437_v43 = vsel %vm2972_vm8, %v353_v28, %v436_v29  ;;  %vm3022_vm10 = vmor %vm862_vm6, %vm863_vm9  ;;  %v2694_v48 = vld [vmem:[%s3480_s1 + $0x138] sm:$0xff] }
  0x22   : > { %459 = vst [vmem:[#allocation2 + $0x28] sm:$0xf] %v458_v20  ;;  %v387_v45 = vshrl.u32 %v343_v25, 16  ;;  %v390_v46 = vshll.u32 %v343_v25, 16  ;;  %1115 = vmatpush.bf16.msra.mxu3 %v2681_v31  ;;  %v2680_v49 = vld [vmem:[%s3480_s1 + $0xc8] sm:$0xff]  ;;  %v2657_v2 = vld [vmem:[%s3480_s1 + $0x30] sm:$0xff] }
  0x23   : > { %462 = vst [vmem:[#allocation2 + $0x2c] sm:$0x1] %v461_v26  ;;  %v344_v50 = vpack.c.bf16 %v336_v40, %v336_v40  ;;  %v463_v52 = vld [vmem:[#allocation2 + $0x30] sm:$0xf]  ;;  %v331_v53 = vmax.f32 %v323_v34, 0.0  ;;  %v529_v54 = vsel %vm3040_vm11, %v3008_v38, %v3000_v32  ;;  %v3053_v55 = vsel %vm3022_vm10, %v2363_v33, %v867_v39  ;;  %v2714_v1 = vld [vmem:[%s3480_s1 + $0x1b8] sm:$0xff] }
  0x24   : > { %2779 = vmatpush.bf16.msra.mxu1 %v2660_v6  ;;  %714 = vmatpush.bf16.msra.mxu0 %v2660_v6  ;;  %432 = vst [vmem:[#allocation2 + $0x8] sm:$0xf] %v431_v37  ;;  %v389_v36 = vrot.slane %v387_v45, 7  ;;  %v2693_v56 = vld [vmem:[%s3480_s1 + $0x130] sm:$0xff]  ;;  %v2679_v3 = vld [vmem:[%s3480_s1 + $0xc0] sm:$0xff]  ;;  %v363_v5 = vshrl.u32 %v3029_v47, 16  ;;  %v913_v40 = vunpack.c.l.b16 %v3053_v55 }
  0x25   : > { %983 = vmatpush.bf16.msra.mxu2 %v2668_v21  ;;  %438 = vst [vmem:[#allocation2 + $0xc] sm:$0x1] %v437_v43  ;;  %v395_v57 = vshrl.u32 %v344_v50, 16  ;;  %v398_v58 = vshll.u32 %v344_v50, 16  ;;  %v466_v60 = vld [vmem:[#allocation2 + $0x34] sm:$0x1]  ;;  %v3064_v4 = vpack.c.bf16 %v331_v53, %v331_v53 }
  0x26   : > { %v392_v62 = vor.u32 %v390_v46, %v389_v36  ;;  %v393_v63 = vrot.slane %v389_v36, 4  ;;  %1116 = vmatpush.bf16.msra.mxu3 %v2680_v49  ;;  %v366_v11 = vshll.u32 %v3029_v47, 16  ;;  %v2656_v15 = vld [vmem:[%s3480_s1 + $0x28] sm:$0xff]  ;;  %v469_v25 = vld [vmem:[#allocation2 + $0x38] sm:$0xf]  ;;  %v2655_v53 = vld [vmem:[%s3480_s1 + $0x20] sm:$0xff] }
  0x27   : > { %v485_v61 = vld [vmem:[#allocation2 + $0x20] sm:$0xf]  ;;  %v397_v9 = vrot.slane %v395_v57, 7  ;;  %v355_v18 = vshrl.u32 %v3064_v4, 16  ;;  %v472_v26 = vld [vmem:[#allocation2 + $0x3c] sm:$0x1] }
  0x28   : > { %2780 = vmatpush.bf16.msra.mxu1 %v2659_v35  ;;  %715 = vmatpush.bf16.msra.mxu0 %v2659_v35  ;;  %v3067_v6 = vld [vmem:[#allocation2 + $0x24] sm:$0x1]  ;;  %v573_v7 = vshrl.u32 %v485_v61, 16  ;;  %v576_v8 = vshll.u32 %v485_v61, 16  ;;  %v464_v16 = vsel %vm2959_vm7, %v392_v62, %v463_v52  ;;  %v467_v17 = vsel %vm2972_vm8, %v393_v63, %v466_v60  ;;  %v2692_v29 = vld [vmem:[%s3480_s1 + $0x128] sm:$0xff]  ;;  %v2713_v32 = vld [vmem:[%s3480_s1 + $0x1b0] sm:$0xff] }
  0x29   : > { %984 = vmatpush.bf16.msra.mxu2 %v2667_v42  ;;  %v486_v12 = vld [vmem:[#allocation2 + $0x28] sm:$0xf]  ;;  %v582_v13 = vshll.u32 %v3067_v6, 16  ;;  %v400_v30 = vor.u32 %v398_v58, %v397_v9  ;;  %v401_v31 = vrot.slane %v397_v9, 4  ;;  %465 = vst [vmem:[#allocation2 + $0x30] sm:$0xf] %v464_v16 }
  0x2a   : > { %v3079_v19 = vld [vmem:[#allocation2 + $0x2c] sm:$0x1]  ;;  %v575_v20 = vrot.slane %v573_v7, 4  ;;  %v578_v21 = vrot.slane %v576_v8, 5  ;;  %v587_v22 = vshrl.u32 %v486_v12, 16  ;;  %v590_v24 = vshll.u32 %v486_v12, 16  ;;  %1117 = vmatpush.bf16.msra.mxu3 %v2679_v3 }
  0x2b   : > { %v584_v27 = vrot.slane %v582_v13, 5  ;;  %v596_v28 = vshll.u32 %v3079_v19, 16  ;;  %v482_v37 = vld [vmem:[#allocation2 + $0x8] sm:$0xf]  ;;  %468 = vst [vmem:[#allocation2 + $0x34] sm:$0x1] %v467_v17  ;;  %v470_v55 = vsel %vm2959_vm7, %v400_v30, %v469_v25  ;;  %v644_v12 = vunpack.c.l.b16 %v529_v54 }
  0x2c   : > { %809 = vmatpush.bf16.msrb.mxu1 %v2658_v41  ;;  %1355 = vmatpush.bf16.msrb.mxu0 %v2694_v48  ;;  %v579_v33 = vor.u32 %v578_v21, %v575_v20  ;;  %v589_v34 = vrot.slane %v587_v22, 4  ;;  %v592_v35 = vrot.slane %v590_v24, 5  ;;  %v839_v39 = vld [vmem:[#allocation2 + $0x8] sm:$0xe]  ;;  %v506_v42 = vld [vmem:[#allocation2 + $0xc] sm:$0x1] }
  0x2d   : > { %1662 = vmatpush.bf16.msrb.mxu2 %v2714_v1  ;;  %v598_v41 = vrot.slane %v596_v28, 5  ;;  %v531_v43 = vshrl.u32 %v482_v37, 16  ;;  %v534_v45 = vshll.u32 %v482_v37, 16  ;;  %v2364_v46 = vrot.slane %v839_v39, 9  ;;  %471 = vst [vmem:[#allocation2 + $0x38] sm:$0xf] %v470_v55 }
  0x2e   : > { %v580_v48 = vrot.slane %v579_v33, 4  ;;  %v593_v49 = vor.u32 %v592_v35, %v589_v34  ;;  %v540_v50 = vshll.u32 %v506_v42, 16  ;;  %v2691_v62 = vld [vmem:[%s3480_s1 + $0x120] sm:$0xff]  ;;  %v357_v7 = vrot.slane %v355_v18, 7  ;;  %v439_v8 = vld [vmem:[#allocation2 + $0x10] sm:$0xf] }
  0x2f   : > { %v533_v36 = vrot.slane %v531_v43, 4  ;;  %v536_v52 = vrot.slane %v534_v45, 5  ;;  %v365_v16 = vrot.slane %v363_v5, 7  ;;  %v442_v17 = vld [vmem:[#allocation2 + $0x14] sm:$0x1]  ;;  %v2654_v24 = vld [vmem:[%s3480_s1 + $0x18] sm:$0xff] }
  0x30   : > { %810 = vmatpush.bf16.msrb.mxu1 %v2657_v2  ;;  %1356 = vmatpush.bf16.msrb.mxu0 %v2693_v56  ;;  %v871_v2 = vrot.slane %v506_v42, 5  ;;  %v473_v56 = vsel %vm2972_vm8, %v401_v31, %v472_v26  ;;  %v585_v57 = vsel %vm3040_vm11, %v580_v48, %v584_v27  ;;  %v594_v58 = vrot.slane %v593_v49, 4  ;;  %v487_v13 = vld [vmem:[#allocation2 + $0x30] sm:$0xf]  ;;  %v445_v25 = vld [vmem:[#allocation2 + $0x18] sm:$0xf] }
  0x31   : > { %v542_v60 = vrot.slane %v540_v50, 5  ;;  %v648_v63 = vunpack.c.l.b16 %v585_v57  ;;  %v537_v1 = vor.u32 %v536_v52, %v533_v36  ;;  %474 = vst [vmem:[#allocation2 + $0x3c] sm:$0x1] %v473_v56  ;;  %v601_v22 = vshrl.u32 %v487_v13, 16  ;;  %v448_v26 = vld [vmem:[#allocation2 + $0x1c] sm:$0x1]  ;;  %1663 = vmatpush.bf16.msrb.mxu2 %v2713_v32 }
  0x32   : > { %v872_v61 = vsel %vm3022_vm10, %v2364_v46, %v871_v2  ;;  %v599_v9 = vsel %vm3040_vm11, %v594_v58, %v598_v41  ;;  %v604_v38 = vshll.u32 %v487_v13, 16  ;;  %v368_v5 = vor.u32 %v366_v11, %v365_v16  ;;  %v2690_v27 = vld [vmem:[%s3480_s1 + $0x118] sm:$0xff]  ;;  %v3126_v31 = vld [vmem:[#allocation2 + $0x34] sm:$0x1]  ;;  %v2712_v45 = vld [vmem:[%s3480_s1 + $0x1a8] sm:$0xff] }
  0x33   : > { %v914_v3 = vunpack.c.l.b16 %v872_v61  ;;  %v649_v20 = vunpack.c.l.b16 %v599_v9  ;;  %v538_v21 = vrot.slane %v537_v1, 4  ;;  %v2722_v28 = vld [vmem:[%s3480_s1 + $0x1f8] sm:$0xff]  ;;  %v603_v33 = vrot.slane %v601_v22, 4  ;;  %v3143_v46 = vld [vmem:[#allocation2 + $0x8] sm:$0xf]  ;;  %v2689_v36 = vld [vmem:[%s3480_s1 + $0x110] sm:$0xff] }
  0x34   : > { %811 = vmatpush.bf16.msrb.mxu1 %v2656_v15  ;;  %1357 = vmatpush.bf16.msrb.mxu0 %v2692_v29  ;;  %v358_v15 = vshll.u32 %v3064_v4, 16  ;;  %v361_v4 = vrot.slane %v357_v7, 4  ;;  %v369_v34 = vrot.slane %v365_v16, 4  ;;  %v606_v11 = vrot.slane %v604_v38, 5  ;;  %v488_v39 = vld [vmem:[#allocation2 + $0x38] sm:$0xf] }
  0x35   : > { %v921_v18 = vpack.c.b16 %v914_v3, %v913_v40  ;;  %v654_v29 = vpack.c.b16 %v649_v20, %v648_v63  ;;  %v543_v30 = vsel %vm3040_vm11, %v538_v21, %v542_v60  ;;  %v610_v35 = vshll.u32 %v3126_v31, 16  ;;  %1907 = vmatpush.bf16.msrb.mxu3 %v2722_v28  ;;  %v2653_v40 = vld [vmem:[%s3480_s1 + $0x10] sm:$0xff]  ;;  %1664 = vmatpush.bf16.msrb.mxu2 %v2712_v45  ;;  %v2405_v60 = vld [vmem:[#allocation2 + $0x8] sm:$0xf]  ;;  %v2687_v16 = vld [vmem:[%s3480_s1 + $0x100] sm:$0xff] }
  0x36   : > { %v360_v54 = vor.u32 %v358_v15, %v357_v7  ;;  %v645_v47 = vunpack.c.l.b16 %v543_v30  ;;  %v443_v41 = vsel %vm2972_vm8, %v361_v4, %v442_v17  ;;  %v446_v42 = vsel %vm2959_vm7, %v368_v5, %v445_v25  ;;  %v2652_v61 = vld [vmem:[%s3480_s1 + $0x8] sm:$0xff]  ;;  %v2651_v15 = vld [vmem:[%s3480_s1] sm:$0xff]  ;;  %v2702_v30 = vld [vmem:[%s3480_s1 + $0x178] sm:$0xff] }
  0x37   : > { %985 = vmatmul.bf16.vlgmr.msra.gmra.mxu2 %v921_v18  ;;  %726 = vmatmul.bf16.vlgmr.msra.gmra.mxu1 %v654_v29  ;;  %v449_v43 = vsel %vm2972_vm8, %v369_v34, %v448_v26  ;;  %v607_v50 = vor.u32 %v606_v11, %v603_v33  ;;  %v615_v2 = vshrl.u32 %v488_v39, 16  ;;  %444 = vst [vmem:[#allocation2 + $0x14] sm:$0x1] %v443_v41  ;;  %v612_v52 = vrot.slane %v610_v35, 5  ;;  %v2711_v35 = vld [vmem:[%s3480_s1 + $0x1a0] sm:$0xff] }
  0x38   : > { %812 = vmatpush.bf16.msrb.mxu1 %v2655_v53  ;;  %1358 = vmatpush.bf16.msrb.mxu0 %v2691_v62  ;;  %v440_v37 = vsel %vm2959_vm7, %v360_v54, %v439_v8  ;;  %v652_v48 = vpack.c.b16 %v645_v47, %v644_v12  ;;  %v3145_v49 = vld [vmem:[#allocation2 + $0x3c] sm:$0x1]  ;;  %v618_v53 = vshll.u32 %v488_v39, 16  ;;  %447 = vst [vmem:[#allocation2 + $0x18] sm:$0xf] %v446_v42  ;;  %v2688_v62 = vld [vmem:[%s3480_s1 + $0x108] sm:$0xff] }
  0x39   : > { %441 = vst [vmem:[#allocation2 + $0x10] sm:$0xf] %v440_v37  ;;  %v624_v55 = vshll.u32 %v3145_v49, 16  ;;  %v608_v56 = vrot.slane %v607_v50, 4  ;;  %v617_v57 = vrot.slane %v615_v2, 4  ;;  %v1164_v63 = vshrl.u32 %v3143_v46, 16  ;;  %1665 = vmatpush.bf16.msrb.mxu2 %v2711_v35 }
  0x3a   : > { %716 = vmatmul.bf16.vlgmr.msra.gmra.mxu0 %v652_v48  ;;  %450 = vst [vmem:[#allocation2 + $0x1c] sm:$0x1] %v449_v43  ;;  %v620_v58 = vrot.slane %v618_v53, 5  ;;  %v1167_v8 = vshll.u32 %v3143_v46, 16  ;;  %v2720_v42 = vld [vmem:[%s3480_s1 + $0x1e8] sm:$0xff]  ;;  %v2701_v53 = vld [vmem:[%s3480_s1 + $0x170] sm:$0xff] }
  0x3b   : > { %v613_v1 = vsel %vm3040_vm11, %v608_v56, %v612_v52  ;;  %v626_v7 = vrot.slane %v624_v55, 5  ;;  %v2699_v35 = vld [vmem:[%s3480_s1 + $0x160] sm:$0xff]  ;;  %v3295_v59 = vld [vmem:[#allocation2 + $0x34] sm:$0x1] }
  0x3c   : > { %813 = vmatpush.bf16.msrb.mxu1 %v2654_v24  ;;  %1359 = vmatpush.bf16.msrb.mxu0 %v2690_v27  ;;  %v621_v3 = vor.u32 %v620_v58, %v617_v57  ;;  %v2721_v24 = vld [vmem:[%s3480_s1 + $0x1f0] sm:$0xff]  ;;  %v650_v25 = vunpack.c.l.b16 %v613_v1  ;;  %v1169_v52 = vrot.slane %v1167_v8, 5 }
  0x3d   : > { %1908 = vmatpush.bf16.msrb.mxu3 %v2721_v24  ;;  %v2676_v24 = vld [vmem:[#allocation2 + $0x1c] sm:$0xf0] }
  0x3e   : > { %v622_v17 = vrot.slane %v621_v3, 4  ;;  %v507_v20 = vld [vmem:[#allocation2 + $0x14] sm:$0x1]  ;;  %v2710_v3 = vld [vmem:[%s3480_s1 + $0x198] sm:$0xff] }
  0x3f   : > { %v484_v32 = vld [vmem:[#allocation2 + $0x18] sm:$0xf]  ;;  %v554_v38 = vshll.u32 %v507_v20, 16  ;;  %1666 = vmatpush.bf16.msrb.mxu2 %v2710_v3  ;;  %v844_v3 = vld [vmem:[#allocation2 + $0x30] sm:$0xe] }
  0x40   : > { %814 = vmatpush.bf16.msrb.mxu1 %v2653_v40  ;;  %1360 = vmatpush.bf16.msrb.mxu0 %v2689_v36  ;;  %v483_v9 = vld [vmem:[#allocation2 + $0x10] sm:$0xf]  ;;  %v841_v54 = vld [vmem:[#allocation2 + $0x18] sm:$0xe]  ;;  %v627_v5 = vsel %vm3040_vm11, %v622_v17, %v626_v7  ;;  %v559_v29 = vshrl.u32 %v484_v32, 16  ;;  %v562_v47 = vshll.u32 %v484_v32, 16 }
  0x41   : > { %v2675_v12 = vld [vmem:[#allocation2 + $0xc] sm:$0xf0]  ;;  %v545_v21 = vshrl.u32 %v483_v9, 16  ;;  %v548_v18 = vshll.u32 %v483_v9, 16  ;;  %v508_v26 = vld [vmem:[#allocation2 + $0x1c] sm:$0x1]  ;;  %v651_v33 = vunpack.c.l.b16 %v627_v5  ;;  %1909 = vmatpush.bf16.msrb.mxu3 %v2720_v42 }
  0x42   : > { %v840_v13 = vld [vmem:[#allocation2 + $0x10] sm:$0xe]  ;;  %v2406_v22 = vor.u32 %v2675_v12, %v2405_v60  ;;  %v556_v34 = vrot.slane %v554_v38, 5  ;;  %v568_v11 = vshll.u32 %v508_v26, 16  ;;  %v561_v39 = vrot.slane %v559_v29, 4  ;;  %v3198_v7 = vld [vmem:[%s3480_s1 + $0x238] sm:$0xff] }
  0x43   : > { %v2365_v4 = vrot.slane %v840_v13, 9  ;;  %v547_v27 = vrot.slane %v545_v21, 4  ;;  %v550_v28 = vrot.slane %v548_v18, 5  ;;  %v875_v40 = vrot.slane %v507_v20, 5  ;;  %v1149_v48 = vld [vmem:[#allocation2 + $0x10] sm:$0xf] }
  0x44   : > { %815 = vmatpush.bf16.msrb.mxu1 %v2652_v61  ;;  %1361 = vmatpush.bf16.msrb.mxu0 %v2688_v62  ;;  %v2366_v41 = vrot.slane %v841_v54, 9  ;;  %v655_v43 = vpack.c.b16 %v651_v33, %v650_v25  ;;  %v564_v45 = vrot.slane %v562_v47, 5  ;;  %v879_v46 = vrot.slane %v508_v26, 5  ;;  %v3190_v62 = vld [vmem:[#allocation2 + $0xc] sm:$0x1] }
  0x45   : > { %1118 = vmatmul.bf16.vlgmr.msra.gmra.mxu3 %v2406_v22  ;;  %v551_v37 = vor.u32 %v550_v28, %v547_v27  ;;  %v876_v2 = vsel %vm3022_vm10, %v2365_v4, %v875_v40  ;;  %v1166_v36 = vrot.slane %v1164_v63, 4  ;;  %v570_v56 = vrot.slane %v568_v11, 5  ;;  %v842_v9 = vld [vmem:[#allocation2 + $0x20] sm:$0xe]  ;;  %v843_v12 = vld [vmem:[#allocation2 + $0x28] sm:$0xe] }
  0x46   : > { %v565_v55 = vor.u32 %v564_v45, %v561_v39  ;;  %v880_v57 = vsel %vm3022_vm10, %v2366_v41, %v879_v46  ;;  %v915_v58 = vunpack.c.l.b16 %v876_v2  ;;  %v1178_v63 = vshrl.u32 %v1149_v48, 16  ;;  %v2700_v21 = vld [vmem:[%s3480_s1 + $0x168] sm:$0xff]  ;;  %v2409_v22 = vld [vmem:[#allocation2 + $0x18] sm:$0xf]  ;;  %v2317_v33 = vld [vmem:[#allocation2] sm:$0xf] }
  0x47   : > { %v552_v50 = vrot.slane %v551_v37, 4  ;;  %731 = vmatmul.bf16.gmra.mxu1 %v655_v43  ;;  %v916_v61 = vunpack.c.l.b16 %v880_v57  ;;  %v1181_v1 = vshll.u32 %v1149_v48, 16  ;;  %v1173_v25 = vshll.u32 %v3190_v62, 16  ;;  %v2647_v37 = vld [vmem:[#allocation2 + $0x4] sm:$0xf0]  ;;  %v3228_v43 = vld [vmem:[%s3480_s1 + $0x230] sm:$0xff] }
  0x48   : > { %816 = vmatpush.bf16.msrb.mxu1 %v2651_v15  ;;  %1362 = vmatpush.bf16.msrb.mxu0 %v2687_v16  ;;  %v566_v8 = vrot.slane %v565_v55, 4  ;;  %v3200_v16 = vld [vmem:[#allocation2 + $0x14] sm:$0x1]  ;;  %v1180_v17 = vrot.slane %v1178_v63, 4  ;;  %v1170_v38 = vor.u32 %v1169_v52, %v1166_v36  ;;  %v2367_v54 = vrot.slane %v842_v9, 9 }
  0x49   : > { %v557_v60 = vsel %vm3040_vm11, %v552_v50, %v556_v34  ;;  %v922_v15 = vpack.c.b16 %v916_v61, %v915_v58  ;;  %v1183_v20 = vrot.slane %v1181_v1, 5  ;;  %v883_v4 = vrot.slane %v3067_v6, 5  ;;  %v1151_v34 = vld [vmem:[#allocation2 + $0x18] sm:$0xf]  ;;  %v2719_v6 = vld [vmem:[%s3480_s1 + $0x1e0] sm:$0xff] }
  0x4a   : > { %v646_v13 = vunpack.c.l.b16 %v557_v60  ;;  %v571_v18 = vsel %vm3040_vm11, %v566_v8, %v570_v56  ;;  %v1187_v26 = vshll.u32 %v3200_v16, 16  ;;  %v2368_v27 = vrot.slane %v843_v12, 9  ;;  %v1153_v45 = vld [vmem:[#allocation2 + $0x20] sm:$0xf]  ;;  %1910 = vmatpush.bf16.msrb.mxu3 %v2719_v6  ;;  %v2718_v50 = vld [vmem:[%s3480_s1 + $0x1d8] sm:$0xff] }
  0x4b   : > { %v647_v32 = vunpack.c.l.b16 %v571_v18  ;;  %990 = vmatmul.bf16.gmra.mxu2 %v922_v15  ;;  %v1184_v5 = vor.u32 %v1183_v20, %v1180_v17  ;;  %v887_v28 = vrot.slane %v3079_v19, 5  ;;  %v1171_v47 = vrot.slane %v1170_v38, 4  ;;  %v2709_v19 = vld [vmem:[%s3480_s1 + $0x190] sm:$0xff]  ;;  %v3240_v61 = vld [vmem:[#allocation2 + $0x1c] sm:$0x1] }
  0x4c   : > { %1528 = vmatpush.bf16.msra.mxu1 %v2702_v30  ;;  %2080 = vmatpush.bf16.msra.mxu0 %v3198_v7  ;;  %v2410_v30 = vor.u32 %v2676_v24, %v2409_v22  ;;  %v884_v11 = vsel %vm3022_vm10, %v2367_v54, %v883_v4  ;;  %v1175_v39 = vrot.slane %v1173_v25, 5  ;;  %v1189_v41 = vrot.slane %v1187_v26, 5  ;;  %v2698_v12 = vld [vmem:[%s3480_s1 + $0x158] sm:$0xff]  ;;  %v2413_v18 = vld [vmem:[#allocation2 + $0x28] sm:$0xf]  ;;  %v2707_v24 = vld [vmem:[%s3480_s1 + $0x180] sm:$0xff] }
  0x4d   : > { %v653_v29 = vpack.c.b16 %v647_v32, %v646_v13  ;;  %v1185_v40 = vrot.slane %v1184_v5, 4  ;;  %v888_v42 = vsel %vm3022_vm10, %v2368_v27, %v887_v28  ;;  %v1192_v46 = vshrl.u32 %v1151_v34, 16  ;;  %1667 = vmatpush.bf16.msrb.mxu2 %v2709_v19  ;;  %v2708_v13 = vld [vmem:[%s3480_s1 + $0x188] sm:$0xff]  ;;  %v3254_v22 = vld [vmem:[#allocation2 + $0x24] sm:$0x1] }
  0x4e   : > { %v1195_v48 = vshll.u32 %v1151_v34, 16  ;;  %v2318_v2 = vor.u32 %v2647_v37, %v2317_v33  ;;  %v917_v36 = vunpack.c.l.b16 %v884_v11  ;;  %v918_v52 = vunpack.c.l.b16 %v888_v42  ;;  %1911 = vmatpush.bf16.msrb.mxu3 %v2718_v50  ;;  %v2677_v32 = vld [vmem:[#allocation2 + $0x2c] sm:$0xf0]  ;;  %v2648_v34 = vld [vmem:[#allocation2 + $0x14] sm:$0xf0] }
  0x4f   : > { %721 = vmatmul.bf16.gmra.mxu0 %v653_v29  ;;  %v1176_v55 = vsel %vm3040_vm11, %v1171_v47, %v1175_v39  ;;  %v1190_v56 = vsel %vm3040_vm11, %v1185_v40, %v1189_v41  ;;  %v1206_v57 = vshrl.u32 %v1153_v45, 16  ;;  %v1209_v58 = vshll.u32 %v1153_v45, 16  ;;  %v2321_v33 = vld [vmem:[#allocation2 + $0x10] sm:$0xf]  ;;  %v478_v50 = vld [vmem:[#allocation2 + $0x44] sm:$0x1] }
  0x50   : > { %1529 = vmatpush.bf16.msra.mxu1 %v2701_v53  ;;  %2081 = vmatpush.bf16.msra.mxu0 %v3228_v43  ;;  %v2746_v53 = vunpack.c.h.bf16 %v2912_v23  ;;  %v1194_v63 = vrot.slane %v1192_v46, 4  ;;  %v1197_v1 = vrot.slane %v1195_v48, 5  ;;  %v1291_v8 = vunpack.c.l.b16 %v1176_v55  ;;  %v1157_v37 = vld [vmem:[#allocation2 + $0x30] sm:$0xf]  ;;  %v475_v48 = vld [vmem:[#allocation2 + $0x40] sm:$0xf] }
  0x51   : > { %v1292_v9 = vunpack.c.l.b16 %v1190_v56  ;;  %v923_v23 = vpack.c.b16 %v918_v52, %v917_v36  ;;  %v1208_v17 = vrot.slane %v1206_v57, 4  ;;  %v1211_v20 = vrot.slane %v1209_v58, 5  ;;  %1668 = vmatpush.bf16.msrb.mxu2 %v2708_v13  ;;  %v2717_v41 = vld [vmem:[%s3480_s1 + $0x1d0] sm:$0xff] }
  0x52   : > { %v317_v60 = vmul.f32 %v2888_v10, %v2746_v53  ;;  %v3251_v10 = vld [vmem:[%s3480_s1 + $0x228] sm:$0xff]  ;;  %v1198_v38 = vor.u32 %v1197_v1, %v1194_v63  ;;  %v1201_v54 = vshll.u32 %v3240_v61, 16  ;;  %v2369_v4 = vrot.slane %v844_v3, 9  ;;  %v2697_v42 = vld [vmem:[%s3480_s1 + $0x150] sm:$0xff]  ;;  %1912 = vmatpush.bf16.msrb.mxu3 %v2717_v41 }
  0x53   : > { %v1299_v5 = vpack.c.b16 %v1292_v9, %v1291_v8  ;;  %v895_v27 = vrot.slane %v3145_v49, 5  ;;  %v1212_v29 = vor.u32 %v1211_v20, %v1208_v17  ;;  %v2414_v47 = vor.u32 %v2677_v32, %v2413_v18  ;;  %v1699_v9 = vld [vmem:[#allocation2 + $0x10] sm:$0xf] }
  0x54   : > { %1530 = vmatpush.bf16.msra.mxu1 %v2700_v21  ;;  %v329_v15 = vadd.f32 %v2896_v14, %v317_v60  ;;  %v845_v21 = vld [vmem:[#allocation2 + $0x38] sm:$0xe]  ;;  %v891_v14 = vrot.slane %v3126_v31, 5  ;;  %2082 = vmatpush.bf16.msra.mxu0 %v3251_v10  ;;  %v1203_v19 = vrot.slane %v1201_v54, 5  ;;  %v1155_v31 = vld [vmem:[#allocation2 + $0x28] sm:$0xf]  ;;  %v2322_v55 = vor.u32 %v2648_v34, %v2321_v33 }
  0x55   : > { %1123 = vmatmul.bf16.gmra.mxu3 %v2410_v30  ;;  %v2370_v26 = vrot.slane %v845_v21, 9  ;;  %v1215_v30 = vshll.u32 %v3254_v22, 16  ;;  %1669 = vmatpush.bf16.msrb.mxu2 %v2707_v24  ;;  %v1213_v45 = vrot.slane %v1212_v29, 4  ;;  %v1220_v52 = vshrl.u32 %v1155_v31, 16  ;;  %v2716_v60 = vld [vmem:[%s3480_s1 + $0x1c8] sm:$0xff] }
  0x56   : > { %v337_v25 = vmax.f32 %v329_v15, 0.0  ;;  %v892_v49 = vsel %vm3022_vm10, %v2369_v4, %v891_v14  ;;  %v1223_v53 = vshll.u32 %v1155_v31, 16  ;;  %v1234_v1 = vshrl.u32 %v1157_v37, 16  ;;  %v3293_v15 = vld [vmem:[#allocation2 + $0x2c] sm:$0x1]  ;;  %1913 = vmatpush.bf16.msrb.mxu3 %v2716_v60  ;;  %v2726_v4 = vld [vmem:[%s3480_s1 + $0x218] sm:$0xff] }
  0x57   : > { %817 = vmatmul.bf16.vlgmr.msrb.gmra.mxu1 %v2318_v2  ;;  %v896_v39 = vsel %vm3022_vm10, %v2370_v26, %v895_v27  ;;  %v1217_v46 = vrot.slane %v1215_v30, 5  ;;  %v919_v57 = vunpack.c.l.b16 %v892_v49  ;;  %v1237_v3 = vshll.u32 %v1157_v37, 16  ;;  %v2696_v54 = vld [vmem:[%s3480_s1 + $0x148] sm:$0xff]  ;;  %v2715_v14 = vld [vmem:[%s3480_s1 + $0x1c0] sm:$0xff] }
  0x58   : > { %1531 = vmatpush.bf16.msra.mxu1 %v2699_v35  ;;  %v345_v28 = vpack.c.bf16 %v337_v25, %v337_v25  ;;  %v1199_v35 = vrot.slane %v1198_v38, 4  ;;  %v920_v58 = vunpack.c.l.b16 %v896_v39  ;;  %v1222_v17 = vrot.slane %v1220_v52, 4  ;;  %v2649_v39 = vld [vmem:[#allocation2 + $0x24] sm:$0xf0] }
  0x59   : > { %2781 = vmatpush.bf16.msra.mxu2 %v3198_v7  ;;  %v3278_v7 = vld [vmem:[%s3480_s1 + $0x220] sm:$0xff]  ;;  %v1225_v20 = vrot.slane %v1223_v53, 5  ;;  %v1716_v21 = vshrl.u32 %v1699_v9, 16  ;;  %v1719_v0 = vshll.u32 %v1699_v9, 16  ;;  %v1236_v32 = vrot.slane %v1234_v1, 4 }
  0x5a   : > { %v403_v11 = vshrl.u32 %v345_v28, 16  ;;  %v406_v6 = vshll.u32 %v345_v28, 16  ;;  %v1204_v56 = vsel %vm3040_vm11, %v1199_v35, %v1203_v19  ;;  %2083 = vmatpush.bf16.msra.mxu0 %v3278_v7  ;;  %v1239_v38 = vrot.slane %v1237_v3, 5  ;;  %v2417_v28 = vld [vmem:[#allocation2 + $0x38] sm:$0xf]  ;;  %1914 = vmatpush.bf16.msrb.mxu3 %v2715_v14  ;;  %v2724_v3 = vld [vmem:[%s3480_s1 + $0x208] sm:$0xff] }
  0x5b   : > { %995 = vmatmul.bf16.gmra.mxu2 %v923_v23  ;;  %v1701_v23 = vld [vmem:[#allocation2 + $0x18] sm:$0xf]  ;;  %v1293_v13 = vunpack.c.l.b16 %v1204_v56  ;;  %v1229_v26 = vshll.u32 %v3293_v15, 16  ;;  %v1243_v27 = vshll.u32 %v3295_v59, 16  ;;  %v1718_v29 = vrot.slane %v1716_v21, 4 }
  0x5c   : > { %1532 = vmatpush.bf16.msra.mxu1 %v2698_v12  ;;  %v405_v40 = vrot.slane %v403_v11, 7  ;;  %v1218_v12 = vsel %vm3040_vm11, %v1213_v45, %v1217_v46  ;;  %v1730_v18 = vshrl.u32 %v1701_v23, 16  ;;  %v1733_v24 = vshll.u32 %v1701_v23, 16  ;;  %v3309_v35 = vld [vmem:[#allocation2 + $0x14] sm:$0x1] }
  0x5d   : > { %2782 = vmatpush.bf16.msra.mxu2 %v3228_v43  ;;  %v1294_v25 = vunpack.c.l.b16 %v1218_v12  ;;  %v924_v43 = vpack.c.b16 %v920_v58, %v919_v57  ;;  %v1721_v30 = vrot.slane %v1719_v0, 5  ;;  %v2325_v19 = vld [vmem:[#allocation2 + $0x20] sm:$0xf]  ;;  %v1231_v49 = vrot.slane %v1229_v26, 5  ;;  %v1705_v57 = vld [vmem:[#allocation2 + $0x28] sm:$0xf] }
  0x5e   : > { %v408_v2 = vor.u32 %v406_v6, %v405_v40  ;;  %v409_v36 = vrot.slane %v405_v40, 4  ;;  %2084 = vmatpush.bf16.msra.mxu0 %v2726_v4  ;;  %v1732_v33 = vrot.slane %v1730_v18, 4  ;;  %v1735_v34 = vrot.slane %v1733_v24, 5  ;;  %v1159_v40 = vld [vmem:[#allocation2 + $0x38] sm:$0xf] }
  0x5f   : > { %1363 = vmatmul.bf16.vlgmr.msrb.gmra.mxu0 %v1299_v5  ;;  %v1226_v5 = vor.u32 %v1225_v20, %v1222_v17  ;;  %v1240_v6 = vor.u32 %v1239_v38, %v1236_v32  ;;  %v1722_v41 = vor.u32 %v1721_v30, %v1718_v29  ;;  %v2326_v52 = vor.u32 %v2649_v39, %v2325_v19  ;;  %v1703_v56 = vld [vmem:[#allocation2 + $0x20] sm:$0xf]  ;;  %v2525_v9 = vld [vmem:[#allocation2 + $0x10] sm:$0xf]  ;;  %v2703_v17 = vld [vmem:[#allocation2 + $0x14] sm:$0xf0] }
  0x60   : > { %1533 = vmatpush.bf16.msra.mxu1 %v2697_v42  ;;  %v476_v63 = vsel %vm2959_vm7, %v408_v2, %v475_v48  ;;  %v479_v8 = vsel %vm2972_vm8, %v409_v36, %v478_v50  ;;  %v1725_v42 = vshll.u32 %v3309_v35, 16  ;;  %v1736_v45 = vor.u32 %v1735_v34, %v1732_v33  ;;  %v2695_v2 = vld [vmem:[%s3480_s1 + $0x140] sm:$0xff]  ;;  %v3342_v19 = vld [vmem:[#allocation2 + $0x2c] sm:$0x1] }
  0x61   : > { %477 = vst [vmem:[#allocation2 + $0x40] sm:$0xf] %v476_v63  ;;  %2783 = vmatpush.bf16.msra.mxu2 %v3251_v10  ;;  %v3311_v10 = vld [vmem:[#allocation2 + $0x1c] sm:$0x1]  ;;  %v1227_v37 = vrot.slane %v1226_v5, 4  ;;  %v1241_v48 = vrot.slane %v1240_v6, 4 }
  0x62   : > { %480 = vst [vmem:[#allocation2 + $0x44] sm:$0x1] %v479_v8  ;;  %v1739_v46 = vshll.u32 %v3311_v10, 16  ;;  %v1245_v50 = vrot.slane %v1243_v27, 5  ;;  %v1723_v58 = vrot.slane %v1722_v41, 4  ;;  %v1727_v60 = vrot.slane %v1725_v42, 5 }
  0x63   : > { %v1232_v53 = vsel %vm3040_vm11, %v1227_v37, %v1231_v49  ;;  %v1737_v63 = vrot.slane %v1736_v45, 4  ;;  %v1251_v23 = vshll.u32 %v1159_v40, 16  ;;  %v1744_v20 = vshrl.u32 %v1703_v56, 16  ;;  %v2723_v27 = vld [vmem:[%s3480_s1 + $0x200] sm:$0xff] }
  0x64   : > { %1534 = vmatpush.bf16.msra.mxu1 %v2696_v54  ;;  %v1741_v1 = vrot.slane %v1739_v46, 5  ;;  %v1246_v8 = vsel %vm3040_vm11, %v1241_v48, %v1245_v50  ;;  %v1747_v21 = vshll.u32 %v1703_v56, 16  ;;  %v1758_v0 = vshrl.u32 %v1705_v57, 16  ;;  %v3340_v6 = vld [vmem:[#allocation2 + $0x24] sm:$0x1] }
  0x65   : > { %1128 = vmatmul.bf16.gmra.mxu3 %v2414_v47  ;;  %v1300_v47 = vpack.c.b16 %v1294_v25, %v1293_v13  ;;  %2784 = vmatpush.bf16.msra.mxu2 %v3278_v7  ;;  %v2725_v7 = vld [vmem:[%s3480_s1 + $0x210] sm:$0xff]  ;;  %v1761_v18 = vshll.u32 %v1705_v57, 16  ;;  %v1295_v24 = vunpack.c.l.b16 %v1232_v53  ;;  %v1296_v25 = vunpack.c.l.b16 %v1246_v8  ;;  %v2650_v53 = vld [vmem:[#allocation2 + $0x34] sm:$0xf0] }
  0x66   : > { %2085 = vmatpush.bf16.msra.mxu0 %v2725_v7  ;;  %v1728_v32 = vsel %vm3040_vm11, %v1723_v58, %v1727_v60  ;;  %v1742_v38 = vsel %vm3040_vm11, %v1737_v63, %v1741_v1  ;;  %v2526_v54 = vor.u32 %v2703_v17, %v2525_v9  ;;  %v1253_v14 = vrot.slane %v1251_v23, 5  ;;  %v2329_v50 = vld [vmem:[#allocation2 + $0x30] sm:$0xf]  ;;  %v1709_v63 = vld [vmem:[#allocation2 + $0x38] sm:$0xf] }
  0x67   : > { %822 = vmatmul.bf16.gmra.mxu1 %v2322_v55  ;;  %v1248_v55 = vshrl.u32 %v1159_v40, 16  ;;  %v1746_v29 = vrot.slane %v1744_v20, 4  ;;  %v1749_v30 = vrot.slane %v1747_v21, 5  ;;  %v1760_v33 = vrot.slane %v1758_v0, 4  ;;  %v1707_v60 = vld [vmem:[#allocation2 + $0x30] sm:$0xf] }
  0x68   : > { %v2678_v11 = vld [vmem:[#allocation2 + $0x3c] sm:$0xf0]  ;;  %1535 = vmatpush.bf16.msra.mxu1 %v2695_v2  ;;  %v1763_v34 = vrot.slane %v1761_v18, 5  ;;  %v1753_v42 = vshll.u32 %v3340_v6, 16  ;;  %v1767_v46 = vshll.u32 %v3342_v19, 16  ;;  %v2330_v1 = vor.u32 %v2650_v53, %v2329_v50 }
  0x69   : > { %v2418_v31 = vor.u32 %v2678_v11, %v2417_v28  ;;  %v1161_v36 = vld [vmem:[#allocation2 + $0x40] sm:$0xf]  ;;  %2785 = vmatpush.bf16.msra.mxu2 %v2726_v4  ;;  %v3333_v4 = vld [vmem:[#allocation2 + $0x3c] sm:$0x1]  ;;  %v3338_v28 = vld [vmem:[#allocation2 + $0x44] sm:$0x1]  ;;  %v1844_v11 = vunpack.c.l.b16 %v1742_v38  ;;  %v1750_v41 = vor.u32 %v1749_v30, %v1746_v29 }
  0x6a   : > { %v1262_v12 = vshrl.u32 %v1161_v36, 16  ;;  %v1265_v13 = vshll.u32 %v1161_v36, 16  ;;  %2086 = vmatpush.bf16.msra.mxu0 %v2724_v3  ;;  %v1257_v49 = vshll.u32 %v3333_v4, 16  ;;  %v1271_v40 = vshll.u32 %v3338_v28, 16  ;;  %v2529_v9 = vld [vmem:[#allocation2 + $0x20] sm:$0xf] }
  0x6b   : > { %1000 = vmatmul.bf16.gmra.mxu2 %v924_v43  ;;  %v1250_v43 = vrot.slane %v1248_v55, 4  ;;  %v1764_v45 = vor.u32 %v1763_v34, %v1760_v33  ;;  %v1751_v55 = vrot.slane %v1750_v41, 4  ;;  %v1755_v56 = vrot.slane %v1753_v42, 5  ;;  %v2704_v23 = vld [vmem:[#allocation2 + $0x24] sm:$0xf0] }
  0x6c   : > { %v1264_v5 = vrot.slane %v1262_v12, 4  ;;  %v1267_v26 = vrot.slane %v1265_v13, 5  ;;  %v1769_v58 = vrot.slane %v1767_v46, 5  ;;  %v1392_v12 = vld [vmem:[#allocation2 + $0x8] sm:$0xe]  ;;  %v1772_v21 = vshrl.u32 %v1707_v60, 16 }
  0x6d   : > { %2786 = vmatpush.bf16.msra.mxu2 %v2725_v7  ;;  %v1254_v37 = vor.u32 %v1253_v14, %v1250_v43  ;;  %v1259_v7 = vrot.slane %v1257_v49, 5  ;;  %v1765_v57 = vrot.slane %v1764_v45, 4  ;;  %v1756_v13 = vsel %vm3040_vm11, %v1751_v55, %v1755_v56  ;;  %v1393_v20 = vld [vmem:[#allocation2 + $0x10] sm:$0xe] }
  0x6e   : > { %2087 = vmatpush.bf16.msra.mxu0 %v2723_v27  ;;  %v1268_v39 = vor.u32 %v1267_v26, %v1264_v5  ;;  %v1775_v0 = vshll.u32 %v1707_v60, 16  ;;  %v1786_v18 = vshrl.u32 %v1709_v63, 16  ;;  %v1422_v43 = vrot.slane %v3200_v16, 5  ;;  %v1944_v49 = vld [vmem:[#allocation2 + $0x10] sm:$0xe] }
  0x6f   : > { %1368 = vmatmul.bf16.gmra.mxu0 %v1300_v47  ;;  %v1843_v47 = vunpack.c.l.b16 %v1728_v32  ;;  %v1255_v2 = vrot.slane %v1254_v37, 4  ;;  %v1770_v17 = vsel %vm3040_vm11, %v1765_v57, %v1769_v58  ;;  %v2483_v14 = vrot.slane %v1392_v12, 9  ;;  %v1711_v58 = vld [vmem:[#allocation2 + $0x40] sm:$0xf]  ;;  %v1713_v60 = vld [vmem:[#allocation2 + $0x48] sm:$0xf] }
  0x70   : > { %v1269_v36 = vrot.slane %v1268_v39, 4  ;;  %v2484_v5 = vrot.slane %v1393_v20, 9  ;;  %v1845_v26 = vunpack.c.l.b16 %v1756_v13  ;;  %v1774_v29 = vrot.slane %v1772_v21, 4  ;;  %v1945_v39 = vld [vmem:[#allocation2 + $0x18] sm:$0xe] }
  0x71   : > { %2787 = vmatpush.bf16.msra.mxu2 %v2724_v3  ;;  %v1851_v48 = vpack.c.b16 %v1844_v11, %v1843_v47  ;;  %v1260_v3 = vsel %vm3040_vm11, %v1255_v2, %v1259_v7  ;;  %v1777_v30 = vrot.slane %v1775_v0, 5  ;;  %v1788_v33 = vrot.slane %v1786_v18, 4  ;;  %v3358_v47 = vld [vmem:[#allocation2 + $0x34] sm:$0x1]  ;;  %v3360_v11 = vld [vmem:[#allocation2 + $0x3c] sm:$0x1] }
  0x72   : > { %v1297_v32 = vunpack.c.l.b16 %v1260_v3  ;;  %v1423_v16 = vsel %vm3022_vm10, %v2484_v5, %v1422_v43  ;;  %v1781_v41 = vshll.u32 %v3358_v47, 16  ;;  %v1795_v45 = vshll.u32 %v3360_v11, 16  ;;  %v2533_v3 = vld [vmem:[#allocation2 + $0x30] sm:$0xf] }
  0x73   : > { %v1970_v50 = vrot.slane %v3309_v35, 5  ;;  %v1974_v2 = vrot.slane %v3311_v10, 5  ;;  %v2603_v7 = vrot.slane %v1944_v49, 9  ;;  %v2705_v35 = vld [vmem:[#allocation2 + $0x34] sm:$0xf0]  ;;  %v1800_v12 = vshrl.u32 %v1711_v58, 16 }
  0x74   : > { %v1783_v53 = vrot.slane %v1781_v41, 5  ;;  %v1797_v56 = vrot.slane %v1795_v45, 5  ;;  %v1395_v10 = vld [vmem:[#allocation2 + $0x20] sm:$0xe]  ;;  %v1803_v13 = vshll.u32 %v1711_v58, 16  ;;  %v1817_v20 = vshll.u32 %v1713_v60, 16 }
  0x75   : > { %1133 = vmatmul.bf16.gmra.mxu3 %v2418_v31  ;;  %v1301_v31 = vpack.c.b16 %v1296_v25, %v1295_v24  ;;  %2788 = vmatpush.bf16.msra.mxu2 %v2723_v27  ;;  %v1789_v24 = vshll.u32 %v1709_v63, 16  ;;  %v1418_v25 = vrot.slane %v3190_v62, 5  ;;  %v1846_v27 = vunpack.c.l.b16 %v1770_v17  ;;  %v1397_v58 = vld [vmem:[#allocation2 + $0x30] sm:$0xe] }
  0x76   : > { %v1971_v63 = vsel %vm3022_vm10, %v2603_v7, %v1970_v50  ;;  %v1814_v17 = vshrl.u32 %v1713_v60, 16  ;;  %v2534_v18 = vor.u32 %v2705_v35, %v2533_v3  ;;  %v2486_v43 = vrot.slane %v1395_v10, 9 }
  0x77   : > { %827 = vmatmul.bf16.gmra.mxu1 %v2326_v52  ;;  %v1273_v52 = vrot.slane %v1271_v40, 5  ;;  %v1791_v34 = vrot.slane %v1789_v24, 5  ;;  %v1419_v62 = vsel %vm3022_vm10, %v2483_v14, %v1418_v25  ;;  %v1852_v37 = vpack.c.b16 %v1846_v27, %v1845_v26  ;;  %v1946_v14 = vld [vmem:[#allocation2 + $0x20] sm:$0xe] }
  0x78   : > { %v1778_v40 = vor.u32 %v1777_v30, %v1774_v29  ;;  %v1464_v46 = vunpack.c.l.b16 %v1419_v62  ;;  %v2016_v21 = vunpack.c.l.b16 %v1971_v63  ;;  %v1426_v25 = vrot.slane %v3240_v61, 5 }
  0x79   : > { %v1274_v8 = vsel %vm3040_vm11, %v1269_v36, %v1273_v52  ;;  %v1792_v42 = vor.u32 %v1791_v34, %v1788_v33  ;;  %v2604_v36 = vrot.slane %v1945_v39, 9  ;;  %v1802_v5 = vrot.slane %v1800_v12, 4  ;;  %v3380_v33 = vld [vmem:[#allocation2 + $0x44] sm:$0x1]  ;;  %v3382_v34 = vld [vmem:[#allocation2 + $0x4c] sm:$0x1] }
  0x7a   : > { %v1298_v38 = vunpack.c.l.b16 %v1274_v8  ;;  %v1779_v52 = vrot.slane %v1778_v40, 4  ;;  %v1394_v8 = vld [vmem:[#allocation2 + $0x18] sm:$0xe]  ;;  %v1805_v26 = vrot.slane %v1803_v13, 5  ;;  %v1816_v27 = vrot.slane %v1814_v17, 4 }
  0x7b   : > { %1670 = vmatmul.bf16.vlgmr.msrb.gmra.mxu2 %v2526_v54  ;;  %v2530_v54 = vor.u32 %v2704_v23, %v2529_v9  ;;  %v1793_v55 = vrot.slane %v1792_v42, 4  ;;  %v2485_v24 = vrot.slane %v1394_v8, 9  ;;  %v1819_v29 = vrot.slane %v1817_v20, 5  ;;  %v1950_v13 = vld [vmem:[#allocation2 + $0x40] sm:$0xe] }
  0x7c   : > { %v1784_v9 = vsel %vm3040_vm11, %v1779_v52, %v1783_v53  ;;  %v1806_v49 = vor.u32 %v1805_v26, %v1802_v5  ;;  %v1809_v39 = vshll.u32 %v3380_v33, 16  ;;  %v1823_v41 = vshll.u32 %v3382_v34, 16  ;;  %v1951_v17 = vld [vmem:[#allocation2 + $0x48] sm:$0xe] }
  0x7d   : > { %v1798_v23 = vsel %vm3040_vm11, %v1793_v55, %v1797_v56  ;;  %v1820_v40 = vor.u32 %v1819_v29, %v1816_v27  ;;  %v2537_v55 = vld [vmem:[#allocation2 + $0x40] sm:$0xf]  ;;  %v2706_v56 = vld [vmem:[#allocation2 + $0x44] sm:$0xf0]  ;;  %v1434_v8 = vrot.slane %v3293_v15, 5  ;;  %v2488_v10 = vrot.slane %v1397_v58, 9 }
  0x7e   : > { %v1811_v7 = vrot.slane %v1809_v39, 5  ;;  %v1948_v15 = vld [vmem:[#allocation2 + $0x30] sm:$0xe]  ;;  %v1990_v26 = vrot.slane %v3360_v11, 5  ;;  %v1399_v11 = vld [vmem:[#allocation2 + $0x40] sm:$0xe] }
  0x7f   : > { %1373 = vmatmul.bf16.gmra.mxu0 %v1301_v31  ;;  %v1302_v31 = vpack.c.b16 %v1298_v38, %v1297_v32  ;;  %v1430_v32 = vrot.slane %v3254_v22, 5  ;;  %v1847_v38 = vunpack.c.l.b16 %v1784_v9  ;;  %v1947_v22 = vld [vmem:[#allocation2 + $0x28] sm:$0xe]  ;;  %v1438_v9 = vrot.slane %v3295_v59, 5 }
  0x81   : > { %v1431_v61 = vsel %vm3022_vm10, %v2486_v43, %v1430_v32  ;;  %v1439_v51 = vsel %vm3022_vm10, %v2488_v10, %v1438_v9  ;;  %v1949_v43 = vld [vmem:[#allocation2 + $0x38] sm:$0xe] }
  0x82   : > { %v1467_v45 = vunpack.c.l.b16 %v1431_v61  ;;  %v2608_v5 = vrot.slane %v1949_v43, 9 }
  0x85   : > { %1915 = vmatmul.bf16.vlgmr.msrb.gmra.mxu3 %v1851_v48  ;;  %v1465_v48 = vunpack.c.l.b16 %v1423_v16  ;;  %v2605_v16 = vrot.slane %v1946_v14, 9  ;;  %v1986_v14 = vrot.slane %v3358_v47, 5  ;;  %v1991_v47 = vsel %vm3022_vm10, %v2608_v5, %v1990_v26 }
  0x87   : > { %832 = vmatmul.bf16.gmra.mxu1 %v2330_v1  ;;  %v1472_v57 = vpack.c.b16 %v1465_v48, %v1464_v46  ;;  %v1975_v1 = vsel %vm3022_vm10, %v2604_v36, %v1974_v2  ;;  %v2606_v46 = vrot.slane %v1947_v22, 9  ;;  %v1982_v48 = vrot.slane %v3342_v19, 5  ;;  %v1398_v22 = vld [vmem:[#allocation2 + $0x38] sm:$0xe] }
  0x88   : > { %v2017_v0 = vunpack.c.l.b16 %v1975_v1  ;;  %v1807_v2 = vrot.slane %v1806_v49, 4  ;;  %v1821_v36 = vrot.slane %v1820_v40, 4  ;;  %v2538_v1 = vor.u32 %v2706_v56, %v2537_v55 }
  0x89   : > { %v1983_v53 = vsel %vm3022_vm10, %v2606_v46, %v1982_v48  ;;  %v2489_v39 = vrot.slane %v1398_v22, 9  ;;  %v1442_v40 = vrot.slane %v3333_v4, 5 }
  0x8a   : > { %v2024_v30 = vpack.c.b16 %v2017_v0, %v2016_v21  ;;  %v2019_v63 = vunpack.c.l.b16 %v1983_v53  ;;  %v1812_v19 = vsel %vm3040_vm11, %v1807_v2, %v1811_v7  ;;  %v1994_v0 = vrot.slane %v3380_v33, 5 }
  0x8b   : > { %1675 = vmatmul.bf16.gmra.mxu2 %v2530_v54  ;;  %v1848_v54 = vunpack.c.l.b16 %v1798_v23  ;;  %v1849_v23 = vunpack.c.l.b16 %v1812_v19 }
  0x8d   : > { %v1853_v62 = vpack.c.b16 %v1848_v54, %v1847_v38  ;;  %v1469_v38 = vunpack.c.l.b16 %v1439_v51  ;;  %v2607_v54 = vrot.slane %v1948_v15, 9 }
  0x8f   : > { %1378 = vmatmul.bf16.gmra.mxu0 %v1302_v31  ;;  %v1427_v31 = vsel %vm3022_vm10, %v2485_v24, %v1426_v25  ;;  %v2609_v24 = vrot.slane %v1950_v13, 9  ;;  %v2610_v25 = vrot.slane %v1951_v17, 9  ;;  %v1987_v61 = vsel %vm3022_vm10, %v2607_v54, %v1986_v14 }
  0x90   : > { %v1466_v42 = vunpack.c.l.b16 %v1427_v31 }
  0x91   : > { %v1995_v27 = vsel %vm3022_vm10, %v2609_v24, %v1994_v0 }
  0x92   : > { %v1473_v52 = vpack.c.b16 %v1467_v45, %v1466_v42  ;;  %v2022_v33 = vunpack.c.l.b16 %v1995_v27  ;;  %v1446_v42 = vrot.slane %v3338_v28, 5 }
  0x95   : > { %1920 = vmatmul.bf16.gmra.mxu3 %v1852_v37  ;;  %v1978_v37 = vrot.slane %v3340_v6, 5  ;;  %v1825_v6 = vrot.slane %v1823_v41, 5  ;;  %v2490_v41 = vrot.slane %v1399_v11, 9 }
  0x97   : > { %1536 = vmatmul.bf16.vlgmr.msra.gmra.mxu1 %v1472_v57  ;;  %v1979_v50 = vsel %vm3022_vm10, %v2605_v16, %v1978_v37  ;;  %v1396_v57 = vld [vmem:[#allocation2 + $0x28] sm:$0xe]  ;;  %v1826_v3 = vsel %vm3040_vm11, %v1821_v36, %v1825_v6  ;;  %v2021_v16 = vunpack.c.l.b16 %v1991_v47  ;;  %v1447_v2 = vsel %vm3022_vm10, %v2490_v41, %v1446_v42 }
  0x98   : > { %v2018_v60 = vunpack.c.l.b16 %v1979_v50  ;;  %v2487_v35 = vrot.slane %v1396_v57, 9  ;;  %v1850_v12 = vunpack.c.l.b16 %v1826_v3  ;;  %v1443_v50 = vsel %vm3022_vm10, %v2489_v39, %v1442_v40 }
  0x99   : > { %v1470_v7 = vunpack.c.l.b16 %v1443_v50  ;;  %v1471_v36 = vunpack.c.l.b16 %v1447_v2 }
  0x9a   : > { %v2025_v20 = vpack.c.b16 %v2019_v63, %v2018_v60  ;;  %v1435_v21 = vsel %vm3022_vm10, %v2487_v35, %v1434_v8  ;;  %v1854_v59 = vpack.c.b16 %v1850_v12, %v1849_v23 }
  0x9b   : > { %1680 = vmatmul.bf16.gmra.mxu2 %v2534_v18  ;;  %v1998_v18 = vrot.slane %v3382_v34, 5  ;;  %v1468_v32 = vunpack.c.l.b16 %v1435_v21 }
  0x9d   : > { %v1999_v29 = vsel %vm3022_vm10, %v2610_v25, %v1998_v18 }
  0x9e   : > { %v2023_v34 = vunpack.c.l.b16 %v1999_v29 }
  0x9f   : > { %2088 = vmatmul.bf16.vlgmr.msra.gmra.mxu0 %v2024_v30  ;;  %v1474_v30 = vpack.c.b16 %v1469_v38, %v1468_v32 }
  0xa0   : > { %v2027_v37 = vpack.c.b16 %v2023_v34, %v2022_v33 }
  0xa5   : > { %1925 = vmatmul.bf16.gmra.mxu3 %v1853_v62  ;;  %v2020_v62 = vunpack.c.l.b16 %v1987_v61 }
  0xa7   : > { %1541 = vmatmul.bf16.gmra.mxu1 %v1473_v52  ;;  %v2026_v46 = vpack.c.b16 %v2021_v16, %v2020_v62  ;;  %v1475_v52 = vpack.c.b16 %v1471_v36, %v1470_v7 }
  0xab   : > { %1685 = vmatmul.bf16.gmra.mxu2 %v2538_v1 }
  0xaf   : > { %2093 = vmatmul.bf16.gmra.mxu0 %v2025_v20 }
  0xb4   : > { %v3414_v31 = vpop.f32.mrf.mxu1 }
  0xb5   : > { %1930 = vmatmul.bf16.gmra.mxu3 %v1854_v59 }
  0xb7   : > { %1546 = vmatmul.bf16.gmra.mxu1 %v1474_v30  ;;  %v717_v49 = vpop.f32.mrf.mxu0 }
  0xba   : > { %v986_v45 = vpop.f32.mrf.mxu2 }
  0xbb   : > { %2103 = vmatmul.bf16.vlgmr.msra.gmra.mxu2 %v2027_v37 }
  0xbc   : > { %v729_v48 = vpop.f32.mrf.mxu1 }
  0xbf   : > { %2098 = vmatmul.bf16.gmra.mxu0 %v2026_v46  ;;  %v719_v6 = vpop.f32.mrf.mxu0 }
  0xc2   : > { %v988_v53 = vpop.f32.mrf.mxu2 }
  0xc4   : > { %v732_v4 = vpop.f32.mrf.mxu1 }
  0xc7   : > { %1551 = vmatmul.bf16.gmra.mxu1 %v1475_v52 }
  0xc8   : > { %v1119_v55 = vpop.f32.mrf.mxu3 }
  0xcc   : > { %v722_v28 = vpop.f32.mrf.mxu0  ;;  %v734_v56 = vpop.f32.mrf.mxu1 }
  0xce   : > { %v991_v58 = vpop.f32.mrf.mxu2 }
  0xd0   : > { %v1121_v57 = vpop.f32.mrf.mxu3 }
  0xd4   : > { %v724_v60 = vpop.f32.mrf.mxu0  ;;  %v818_v63 = vpop.f32.mrf.mxu1 }
  0xd5   : > { %v819_v1 = vadd.f32 %v818_v63, %v717_v49 }
  0xd6   : > { %v993_v3 = vpop.f32.mrf.mxu2 }
  0xd7   : > { %v1006_v44 = vadd.f32 %v986_v45, %v819_v1 }
  0xd8   : > { %v1124_v19 = vpop.f32.mrf.mxu3 }
  0xd9   : > { %v1139_v35 = vadd.f32 %v1119_v55, %v1006_v44 }
  0xdc   : > { %v1364_v8 = vpop.f32.mrf.mxu0  ;;  %v820_v10 = vpop.f32.mrf.mxu1 }
  0xdd   : > { %v1384_v9 = vadd.f32 %v1364_v8, %v1139_v35  ;;  %v821_v23 = vadd.f32 %v820_v10, %v719_v6 }
  0xde   : > { %v996_v13 = vpop.f32.mrf.mxu2 }
  0xdf   : > { %v1007_v17 = vadd.f32 %v988_v53, %v821_v23 }
  0xe0   : > { %v3426_v12 = vpop.f32.mrf.mxu3 }
  0xe1   : > { %v1140_v55 = vadd.f32 %v1121_v57, %v1007_v17 }
  0xe4   : > { %v1366_v20 = vpop.f32.mrf.mxu0  ;;  %v823_v21 = vpop.f32.mrf.mxu1 }
  0xe5   : > { %v824_v51 = vadd.f32 %v823_v21, %v722_v28 }
  0xe6   : > { %v998_v18 = vpop.f32.mrf.mxu2 }
  0xe7   : > { %v1008_v15 = vadd.f32 %v991_v58, %v824_v51 }
  0xe8   : > { %v1129_v0 = vpop.f32.mrf.mxu3 }
  0xe9   : > { %v1141_v24 = vadd.f32 %v1124_v19, %v1008_v15 }
  0xec   : > { %v1369_v25 = vpop.f32.mrf.mxu0  ;;  %v825_v59 = vpop.f32.mrf.mxu1 }
  0xed   : > { %v1386_v43 = vadd.f32 %v1369_v25, %v1141_v24  ;;  %v826_v32 = vadd.f32 %v825_v59, %v724_v60 }
  0xee   : > { %v1001_v54 = vpop.f32.mrf.mxu2 }
  0xef   : > { %v1009_v14 = vadd.f32 %v993_v3, %v826_v32 }
  0xf0   : > { %v3428_v38 = vpop.f32.mrf.mxu3 }
  0xf4   : > { %v1371_v5 = vpop.f32.mrf.mxu0  ;;  %v828_v26 = vpop.f32.mrf.mxu1 }
  0xf5   : > { %v829_v27 = vadd.f32 %v828_v26, %v3414_v31 }
  0xf6   : > { %v1003_v30 = vpop.f32.mrf.mxu2 }
  0xf7   : > { %v1010_v33 = vadd.f32 %v996_v13, %v829_v27 }
  0xf8   : > { %v3431_v29 = vpop.f32.mrf.mxu3 }
  0xf9   : > { %v1143_v34 = vadd.f32 %v1129_v0, %v1010_v33 }
  0xfc   : > { %v1374_v61 = vpop.f32.mrf.mxu0  ;;  %v830_v47 = vpop.f32.mrf.mxu1 }
  0xfd   : > { %v3433_v22 = vadd.f32 %v1374_v61, %v1143_v34  ;;  %v831_v11 = vadd.f32 %v830_v47, %v729_v48 }
  0xfe   : > { %v1671_v62 = vpop.f32.mrf.mxu2 }
  0xff   : > { %v1011_v16 = vadd.f32 %v998_v18, %v831_v11 }
 0x100   : > { %v3435_v37 = vpop.f32.mrf.mxu3 }
 0x104   : > { %v3437_v49 = vpop.f32.mrf.mxu0  ;;  %v833_v39 = vpop.f32.mrf.mxu1 }
 0x105   : > { %v834_v40 = vadd.f32 %v833_v39, %v732_v4  ;;  %v1385_v4 = vadd.f32 %v1366_v20, %v1140_v55  ;;  %v1144_v39 = vadd.f32 %v3428_v38, %v1011_v16 }
 0x106   : > { %v1673_v41 = vpop.f32.mrf.mxu2 }
 0x107   : > { %v3439_v31 = vadd.f32 %v1001_v54, %v834_v40 }
 0x108   : > { %v1916_v42 = vpop.f32.mrf.mxu3 }
 0x10c   : > { %v3441_v45 = vpop.f32.mrf.mxu0  ;;  %v835_v46 = vpop.f32.mrf.mxu1 }
 0x10d   : > { %v836_v50 = vadd.f32 %v835_v46, %v734_v56 }
 0x10e   : > { %v1676_v2 = vpop.f32.mrf.mxu2 }
 0x10f   : > { %v3443_v7 = vadd.f32 %v1003_v30, %v836_v50 }
 0x110   : > { %v1918_v48 = vpop.f32.mrf.mxu3 }
 0x114   : > { %v3445_v36 = vpop.f32.mrf.mxu0  ;;  %v1537_v6 = vpop.f32.mrf.mxu1 }
 0x115   : > { %v1557_v52 = vadd.f32 %v1537_v6, %v1384_v9  ;;  %v1142_v9 = vadd.f32 %v3426_v12, %v1009_v14 }
 0x116   : > { %v1678_v53 = vpop.f32.mrf.mxu2 }
 0x117   : > { %v1691_v28 = vadd.f32 %v1671_v62, %v1557_v52  ;;  %v1387_v25 = vadd.f32 %v1371_v5, %v1142_v9 }
 0x118   : > { %v1921_v1 = vpop.f32.mrf.mxu3 }
 0x119   : > { %v1936_v19 = vadd.f32 %v1916_v42, %v1691_v28 }
 0x11c   : > { %v2089_v58 = vpop.f32.mrf.mxu0  ;;  %v1539_v60 = vpop.f32.mrf.mxu1 }
 0x11d   : > { %v1558_v63 = vadd.f32 %v1539_v60, %v1385_v4  ;;  %v2109_v35 = vadd.f32 %v2089_v58, %v1936_v19 }
 0x11e   : > { %v1681_v56 = vpop.f32.mrf.mxu2 }
 0x11f   : > { %v1692_v3 = vadd.f32 %v1673_v41, %v1558_v63  ;;  %v2147_v21 = vmul.f32 %v2109_v35, %v2109_v35 }
 0x120   : > { %v1923_v0 = vpop.f32.mrf.mxu3 }
 0x121   : > { %v1937_v44 = vadd.f32 %v1918_v48, %v1692_v3 }
 0x124   : > { %v2091_v8 = vpop.f32.mrf.mxu0  ;;  %v1542_v10 = vpop.f32.mrf.mxu1 }
 0x125   : > { %v2110_v23 = vadd.f32 %v2091_v8, %v1937_v44  ;;  %v1559_v13 = vadd.f32 %v1542_v10, %v1386_v43 }
 0x126   : > { %v1683_v15 = vpop.f32.mrf.mxu2 }
 0x127   : > { %v2750_v57 = vpack.c.bf16 %v2110_v23, %v2109_v35  ;;  %v2133_v17 = vadd.f32 %v2110_v23, %v2109_v35  ;;  %v2148_v20 = vmul.f32 %v2110_v23, %v2110_v23  ;;  %v1693_v51 = vadd.f32 %v1676_v2, %v1559_v13 }
 0x128   : > { %v1926_v30 = vpop.f32.mrf.mxu3  ;;  %v1389_v2 = vadd.f32 %v3437_v49, %v1144_v39 }
 0x129   : > { %2751 = vst [vmem:[%s3453_s29] sm:$0xff] %v2750_v57   ;;  %v2155_v18 = vadd.f32 %v2148_v20, %v2147_v21  ;;  %v1938_v24 = vadd.f32 %v1921_v1, %v1693_v51 }
 0x12c   : > { %v2094_v59 = vpop.f32.mrf.mxu0  ;;  %v1544_v12 = vpop.f32.mrf.mxu1 }
 0x12d   : > { %v2111_v43 = vadd.f32 %v2094_v59, %v1938_v24  ;;  %v1560_v32 = vadd.f32 %v1544_v12, %v1387_v25 }
 0x12e   : > { %v1686_v34 = vpop.f32.mrf.mxu2 }
 0x12f   : > { %v2134_v54 = vadd.f32 %v2133_v17, %v2111_v43  ;;  %v2149_v14 = vmul.f32 %v2111_v43, %v2111_v43  ;;  %v1694_v26 = vadd.f32 %v1678_v53, %v1560_v32 }
 0x130   : > { %v1928_v48 = vpop.f32.mrf.mxu3 }
 0x131   : > { %v2156_v27 = vadd.f32 %v2155_v18, %v2149_v14  ;;  %v1939_v33 = vadd.f32 %v1923_v0, %v1694_v26 }
 0x134   : > { %v2096_v61 = vpop.f32.mrf.mxu0  ;;  %v1547_v47 = vpop.f32.mrf.mxu1 }
 0x135   : > { %v2112_v11 = vadd.f32 %v2096_v61, %v1939_v33  ;;  %v1561_v62 = vadd.f32 %v1547_v47, %v3433_v22  ;;  %v1145_v22 = vadd.f32 %v3431_v29, %v3439_v31 }
 0x136   : > { %v1688_v28 = vpop.f32.mrf.mxu2 }
 0x137   : > { %v2755_v5 = vpack.c.bf16 %v2112_v11, %v2111_v43  ;;  %v2135_v40 = vadd.f32 %v2134_v54, %v2112_v11  ;;  %v2150_v41 = vmul.f32 %v2112_v11, %v2112_v11  ;;  %v1695_v42 = vadd.f32 %v1681_v56, %v1561_v62 }
 0x138   : > { %v1390_v63 = vadd.f32 %v3441_v45, %v1145_v22  ;;  %v1146_v56 = vadd.f32 %v3435_v37, %v3443_v7  ;;  %v1931_v44 = vpop.f32.mrf.mxu3 }
 0x139   : > { %2770 = vst [vmem:[%s3453_s29 + $0x8] sm:$0xff] %v2755_v5   ;;  %v2157_v46 = vadd.f32 %v2156_v27, %v2150_v41  ;;  %v1940_v50 = vadd.f32 %v1926_v30, %v1695_v42 }
 0x13a   : > { %v1391_v9 = vadd.f32 %v3445_v36, %v1146_v56 }
 0x13c   : > { %v2099_v6 = vpop.f32.mrf.mxu0  ;;  %v1549_v52 = vpop.f32.mrf.mxu1 }
 0x13d   : > { %v2113_v53 = vadd.f32 %v2099_v6, %v1940_v50  ;;  %v1562_v55 = vadd.f32 %v1549_v52, %v1389_v2 }
 0x13e   : > { %v2104_v31 = vpop.f32.mrf.mxu2 }
 0x13f   : > { %v2136_v4 = vadd.f32 %v2135_v40, %v2113_v53  ;;  %v2151_v38 = vmul.f32 %v2113_v53, %v2113_v53  ;;  %v1696_v16 = vadd.f32 %v1683_v15, %v1562_v55 }
 0x140   : > { %v1933_v37 = vpop.f32.mrf.mxu3 }
 0x141   : > { %v2158_v58 = vadd.f32 %v2157_v46, %v2151_v38  ;;  %v1941_v60 = vadd.f32 %v1928_v48, %v1696_v16 }
 0x144   : > { %v2101_v1 = vpop.f32.mrf.mxu0  ;;  %v1552_v19 = vpop.f32.mrf.mxu1 }
 0x145   : > { %v2114_v49 = vadd.f32 %v2101_v1, %v1941_v60  ;;  %v1563_v3 = vadd.f32 %v1552_v19, %v1390_v63 }
 0x146   : > { %v2106_v18 = vpop.f32.mrf.mxu2 }
 0x147   : > { %v2760_v35 = vpack.c.bf16 %v2114_v49, %v2113_v53  ;;  %v2137_v8 = vadd.f32 %v2136_v4, %v2114_v49  ;;  %v2152_v10 = vmul.f32 %v2114_v49, %v2114_v49  ;;  %v1697_v29 = vadd.f32 %v1686_v34, %v1563_v3 }
 0x149   : > { %2771 = vst [vmem:[%s3453_s29 + $0x10] sm:$0xff] %v2760_v35   ;;  %v2159_v23 = vadd.f32 %v2158_v58, %v2152_v10  ;;  %v1942_v13 = vadd.f32 %v1931_v44, %v1697_v29 }
 0x14b   : > { %v2115_v45 = vadd.f32 %v2104_v31, %v1942_v13 }
 0x14c   : > { %v1554_v21 = vpop.f32.mrf.mxu1 }
 0x14d   : > { %v2138_v57 = vadd.f32 %v2137_v8, %v2115_v45  ;;  %v2153_v17 = vmul.f32 %v2115_v45, %v2115_v45  ;;  %v1564_v20 = vadd.f32 %v1554_v21, %v1391_v9 }
 0x14f   : > { %v2160_v51 = vadd.f32 %v2159_v23, %v2153_v17  ;;  %v1698_v0 = vadd.f32 %v1688_v28, %v1564_v20 }
 0x151   : > { %v1943_v7 = vadd.f32 %v1933_v37, %v1698_v0 }
 0x153   : > { %v2116_v15 = vadd.f32 %v2106_v18, %v1943_v7 }
 0x155   : > { %v2765_v24 = vpack.c.bf16 %v2116_v15, %v2115_v45  ;;  %v2139_v25 = vadd.f32 %v2138_v57, %v2116_v15  ;;  %v2154_v59 = vmul.f32 %v2116_v15, %v2116_v15 }
 0x157   : > { %2772 = vst [vmem:[%s3453_s29 + $0x18] sm:$0xff] %v2765_v24   ;;  %v2140_v12 = vrot.slane %v2139_v25, 4  ;;  %v2161_v43 = vadd.f32 %v2160_v51, %v2154_v59 }
 0x159   : > { %v2141_v36 = vadd.f32 %v2140_v12, %v2139_v25  ;;  %v2162_v32 = vrot.slane %v2161_v43, 4 }
 0x15b   : > { %v2142_v54 = vrot.slane %v2141_v36, 2  ;;  %v2163_v14 = vadd.f32 %v2162_v32, %v2161_v43 }
 0x15d   : > { %v2143_v26 = vadd.f32 %v2142_v54, %v2141_v36  ;;  %v2164_v27 = vrot.slane %v2163_v14, 2 }
 0x15f   : > { %v2144_v30 = vrot.slane %v2143_v26, 1  ;;  %v2165_v33 = vadd.f32 %v2164_v27, %v2163_v14 }
 0x161   : > { %v2145_v34 = vadd.f32 %v2144_v30, %v2143_v26  ;;  %v2166_v61 = vrot.slane %v2165_v33, 1 }
 0x163   : > { %2146 = vst [vmem:[%s265_s7] sm:$0x1] %v2145_v34  ;;  %v2167_v47 = vadd.f32 %v2166_v61, %v2165_v33 }
 0x165   : > { %2168 = vst [vmem:[%s268_s11] sm:$0x1] %v2167_v47 }
 0x166 PF: > { %s17_s21 = sadd.s32 1, %s2806_s21  }
 0x167   : > { %p14_p4 = scmp.ge.s32.totalorder %s17_s21, 4  }
 0x169   :  { %16 = sbr.rel (!%p14_p4) target bundleno = 1 (0x1), region = 92 }

</bundles_post_ra>
